<compile_context>
chip_gen: v7x
topology: tpu7x:2x2x1
jax: 0.10.0
libtpu: 0.0.40
codegen_flags: <defaults>
</compile_context>

<pallas_src>
import functools
import math

import jax
import jax.numpy as jnp
import numpy as np
from jax.experimental import pallas as pl
from jax.experimental.pallas import tpu as pltpu

LANE = 128   # TPU lane width: channel dims are padded to this
SUB = 8      # sublane granularity: in_net input channels padded to this


def _round_up(x, m):
    return (x + m - 1) // m * m


def _nbytes(shape, dtype):
    return math.prod(shape) * np.dtype(dtype).itemsize


# ------------------------------ fused kernel --------------------------------

def _resnet1d_kernel(x_ref, *refs, compute_dtype, shortcuts):
    o_ref = refs[-1]
    wrefs = refs[:-1]

    def dot2(a2, w_ref, b_ref):
        # (M, K) @ (K, N) on the MXU, f32 accumulation, f32 bias epilogue.
        return (jnp.dot(a2.astype(compute_dtype), w_ref[...],
                        preferred_element_type=jnp.float32) + b_ref[...])

    def conv_same(h, w_ref, b_ref, K, relu, keep_f32=False):
        # 'same' stride-1 conv over a (B, L, C) activation tile as ONE im2col
        # matmul with M = B*L rows.  The padded buffer and the K-way lane
        # concat are built in bf16 (compute_dtype), halving the bytes of the
        # K-expanded cols intermediate (the store-bound path).
        B, L, C = h.shape
        pad = (K - 1) // 2
        z = jnp.zeros((B, pad, C), h.dtype)
        hp = jnp.concatenate([z, h, z], axis=1)                  # (B, L+K-1, C)
        cols = jnp.concatenate([hp[:, k:k + L, :] for k in range(K)], axis=-1)
        out = dot2(cols.reshape(B * L, K * C), w_ref, b_ref)     # f32 (B*L, Cout)
        if relu:
            out = jnp.maximum(out, 0.0)
        out = out.reshape(B, L, out.shape[-1])
        return out if keep_f32 else out.astype(compute_dtype)

    it = iter(wrefs)

    def take(n):
        return [next(it) for _ in range(n)]

    # ---- in_net: Conv1d(in_dim, n_dim, 7, stride=2, padding=3).
    # The stride-2 im2col was built in the wrapper from the raw input, so this
    # is exactly one matmul (no ReLU after in_net in the reference model).
    x = x_ref[...]                                     # (B, L1, KCp) bf16
    B, L1, KCp = x.shape
    in_w, in_b = take(2)
    h = dot2(x.reshape(B * L1, KCp), in_w, in_b)       # f32
    h = h.reshape(B, L1, h.shape[-1]).astype(compute_dtype)

    # ---- res_net: three standard residual blocks:
    #      conv7+ReLU -> conv5+ReLU -> conv3, shortcut (identity or 1x1 conv),
    #      output = ReLU(main + shortcut).  Residual add + ReLU in f32, the
    #      carried activation h in bf16.
    for has_sc in shortcuts:
        w0, b0, w1, b1, w2, b2 = take(6)
        m = conv_same(h, w0, b0, 7, relu=True)
        m = conv_same(m, w1, b1, 5, relu=True)
        m = conv_same(m, w2, b2, 3, relu=False, keep_f32=True)   # f32
        if has_sc:
            ws, bs = take(2)
            Bc, Lc, Cc = h.shape
            s = dot2(h.reshape(Bc * Lc, Cc), ws, bs)             # 1x1 conv shortcut
            s = s.reshape(Bc, Lc, ws.shape[-1])
        else:
            s = h.astype(jnp.float32)                            # identity shortcut
        h = jnp.maximum(m + s, 0.0).astype(compute_dtype)

    # ---- head: AdaptiveAvgPool1d(1) (cross-sublane reduce), out_net Linear,
    # projector (ReLU -> Linear -> ReLU -> Linear); all with M = B_TILE rows.
    p = jnp.mean(h.astype(jnp.float32), axis=1)                  # (B, C2)
    out_w, out_b, p0_w, p0_b, p1_w, p1_b = take(6)
    e = dot2(p, out_w, out_b)                                    # out_net
    e = dot2(jnp.maximum(e, 0.0), p0_w, p0_b)                    # projector
    e = dot2(jnp.maximum(e, 0.0), p1_w, p1_b)
    o_ref[0] = e.astype(o_ref.dtype)


# --------------------------- parameter construction ------------------------
# Parameters are initialized at their TRUE shapes (PyTorch-style uniform
# init), then packed once into lane-padded, im2col-flattened, bf16 weights.

def _uniform(key, shape, fan_in):
    bound = 1.0 / float(fan_in) ** 0.5
    return jax.random.uniform(key, shape, jnp.float32, -bound, bound)


def init_conv(key, K, cin, cout):
    kw, kb = jax.random.split(key)
    fan_in = cin * K
    return _uniform(kw, (K, cin, cout), fan_in), _uniform(kb, (cout,), fan_in)


def init_linear(key, din, dout):
    kw, kb = jax.random.split(key)
    return _uniform(kw, (din, dout), din), _uniform(kb, (dout,), din)


def init_block(key, cin, cout):
    keys = jax.random.split(key, 4)
    p = {}
    p['w0'], p['b0'] = init_conv(keys[0], 7, cin, cout)
    p['w1'], p['b1'] = init_conv(keys[1], 5, cout, cout)
    p['w2'], p['b2'] = init_conv(keys[2], 3, cout, cout)
    if cin != cout:
        p['ws'], p['bs'] = init_conv(keys[3], 1, cin, cout)   # 1x1 conv shortcut
    return p


def init_resnet1d(key, in_dim, n_dim, out_dim):
    keys = jax.random.split(key, 7)
    params = {}
    params['in_w'], params['in_b'] = init_conv(keys[0], 7, in_dim, n_dim)
    params['block_0'] = init_block(keys[1], n_dim, n_dim)
    params['block_1'] = init_block(keys[2], n_dim, 2 * n_dim)
    params['block_2'] = init_block(keys[3], 2 * n_dim, 2 * n_dim)
    params['out_w'], params['out_b'] = init_linear(keys[4], 2 * n_dim, out_dim)
    params['p0_w'], params['p0_b'] = init_linear(keys[5], out_dim, 2 * out_dim)
    params['p1_w'], params['p1_b'] = init_linear(keys[6], 2 * out_dim, out_dim)
    return params


def _pack_conv(w, b, cin_p, cout_p, dtype, rows_p=None):
    # (K, cin, cout) f32 -> (K*cin_p [padded to rows_p], cout_p) im2col weight
    # (zero padded), bias -> (1, cout_p) f32.  Flattened index = k*cin_p + c
    # matches the kernel-side lane-concatenation order.
    K, cin, cout = w.shape
    w_p = jnp.zeros((K, cin_p, cout_p), jnp.float32).at[:, :cin, :cout].set(w)
    w_p = w_p.reshape(K * cin_p, cout_p)
    if rows_p is not None and rows_p > K * cin_p:
        w_p = jnp.concatenate(
            [w_p, jnp.zeros((rows_p - K * cin_p, cout_p), jnp.float32)], axis=0)
    b_p = jnp.zeros((1, cout_p), jnp.float32).at[0, :cout].set(b)
    return w_p.astype(dtype), b_p


def _pack_linear(w, b, din_p, dout_p, dtype):
    din, dout = w.shape
    w_p = jnp.zeros((din_p, dout_p), jnp.float32).at[:din, :dout].set(w)
    b_p = jnp.zeros((1, dout_p), jnp.float32).at[0, :dout].set(b)
    return w_p.astype(dtype), b_p


def pack_resnet1d(params, dtype=jnp.bfloat16):
    in_dim = params['in_w'].shape[1]
    n_dim = params['in_w'].shape[2]
    out_dim = params['out_w'].shape[1]
    cin0 = _round_up(in_dim, SUB)          # per-tap padded in_net input channels
    c1 = _round_up(n_dim, LANE)
    c2 = _round_up(2 * n_dim, LANE)
    d1 = _round_up(out_dim, LANE)
    d2 = _round_up(2 * out_dim, LANE)

    def pack_block(p, cin_p, cout_p):
        q = {}
        q['w0'], q['b0'] = _pack_conv(p['w0'], p['b0'], cin_p, cout_p, dtype)
        q['w1'], q['b1'] = _pack_conv(p['w1'], p['b1'], cout_p, cout_p, dtype)
        q['w2'], q['b2'] = _pack_conv(p['w2'], p['b2'], cout_p, cout_p, dtype)
        if 'ws' in p:
            q['ws'], q['bs'] = _pack_conv(p['ws'], p['bs'], cin_p, cout_p, dtype)
        return q

    pk = {}
    # in_net im2col rows padded to a 128 multiple -> lane-dense input DMA/LHS.
    pk['in_w'], pk['in_b'] = _pack_conv(params['in_w'], params['in_b'],
                                        cin0, c1, dtype,
                                        rows_p=_round_up(7 * cin0, LANE))
    pk['block_0'] = pack_block(params['block_0'], c1, c1)
    pk['block_1'] = pack_block(params['block_1'], c1, c2)
    pk['block_2'] = pack_block(params['block_2'], c2, c2)
    pk['out_w'], pk['out_b'] = _pack_linear(params['out_w'], params['out_b'], c2, d1, dtype)
    pk['p0_w'], pk['p0_b'] = _pack_linear(params['p0_w'], params['p0_b'], d1, d2, dtype)
    pk['p1_w'], pk['p1_b'] = _pack_linear(params['p1_w'], params['p1_b'], d2, d1, dtype)
    return pk


# ------------------------------ forward pass --------------------------------

@functools.partial(jax.jit, static_argnames=("out_dim", "normalize"))
def resnet1d_forward(packed, ts, *, out_dim, normalize=True):
    compute_dtype = packed['in_w'].dtype

    ts = ts.astype(jnp.float32)
    if normalize:
        # TODO(synk): _normalize_t is external to the provided module; using
        # per-instance, per-channel z-normalization over the time axis.
        mu = jnp.mean(ts, axis=-1, keepdims=True)
        sd = jnp.std(ts, axis=-1, keepdims=True)
        ts = (ts - mu) / (sd + 1e-8)

    x = jnp.transpose(ts, (0, 2, 1))                  # (N, L, Cin) channels-last
    N, L, cin = x.shape

    # Build the im2col of the stride-2 / pad-3 / K=7 in_net conv directly from
    # the raw (tiny) input: x_col[n, i, k*cin_p + c] = x_padded[n, 2*i + k, c].
    K0, S0, P0 = 7, 2, 3
    cin_p = _round_up(cin, SUB)
    x = jnp.pad(x, ((0, 0), (P0, P0), (0, cin_p - cin)))
    L1 = (L + 2 * P0 - K0) // S0 + 1
    span = S0 * (L1 - 1) + 1
    x_col = jnp.concatenate([x[:, k:k + span:S0, :] for k in range(K0)], axis=-1)
    kc = K0 * cin_p
    kc_p = packed['in_w'].shape[0]                    # lane-padded im2col rows
    if kc_p > kc:
        x_col = jnp.pad(x_col, ((0, 0), (0, 0), (0, kc_p - kc)))
    x_col = x_col.astype(compute_dtype)               # bf16 at the HBM boundary

    # ---- batch tiling: B_TILE samples per grid step so each conv's im2col
    # dot has M = B_TILE*L1 (>= ~256) rows and the head dots have M = B_TILE.
    TARGET_ROWS = 256
    b_tile = max(1, -(-TARGET_ROWS // L1))
    b_tile = min(b_tile, N)
    n_pad = -(-N // b_tile) * b_tile
    if n_pad > N:
        x_col = jnp.pad(x_col, ((0, n_pad - N), (0, 0), (0, 0)))
    n_blocks = n_pad // b_tile

    weights = [packed['in_w'], packed['in_b']]
    shortcuts = []
    for name in ('block_0', 'block_1', 'block_2'):
        blk = packed[name]
        weights += [blk['w0'], blk['b0'], blk['w1'], blk['b1'], blk['w2'], blk['b2']]
        has_sc = 'ws' in blk
        shortcuts.append(has_sc)
        if has_sc:
            weights += [blk['ws'], blk['bs']]
    weights += [packed['out_w'], packed['out_b'],
                packed['p0_w'], packed['p0_b'],
                packed['p1_w'], packed['p1_b']]
    shortcuts = tuple(shortcuts)

    d1 = packed['p1_w'].shape[1]                      # lane-padded out_dim
    c2 = packed['out_w'].shape[0]                     # widest channel dim

    # Constant index_map => each weight is DMA'd to VMEM once and stays
    # resident across the whole batch grid (no per-step weight re-fetch).
    # TODO(synk): on v7x, mark weight specs single-buffered
    # (pipeline_mode=pl.Buffered(1)) to halve resident-weight VMEM.
    in_specs = [pl.BlockSpec((b_tile, L1, kc_p), lambda n: (n, 0, 0))]
    in_specs += [pl.BlockSpec(w.shape, lambda n, _nd=w.ndim: (0,) * _nd)
                 for w in weights]

    # Explicit VMEM budget: resident weights (x2 buffers) + double-buffered
    # input/output blocks + the largest in-kernel cols/acc intermediates,
    # with headroom; clamped so it also fits v7x's 64 MiB per-TC VMEM.
    weight_bytes = sum(_nbytes(w.shape, w.dtype) for w in weights)
    blk_in = _nbytes((b_tile, L1, kc_p), compute_dtype)
    blk_out = _nbytes((b_tile, d1), jnp.float32)
    interm = b_tile * L1 * c2 * (7 * 2 + 4 * 4)       # bf16 cols + f32 copies
    est = 2 * (2 * weight_bytes + 2 * blk_in + 2 * blk_out + interm)
    vmem_limit = int(min(max(est, 32 * 1024 * 1024), 48 * 1024 * 1024))

    # Advisory cost so XLA overlaps the fused call with the surrounding
    # normalization / im2col gather ops.
    flops = 0
    head_start = len(weights) - 6
    for idx in range(0, len(weights), 2):
        w = weights[idx]
        m_rows = n_pad if idx >= head_start else n_pad * L1
        flops += 2 * m_rows * w.shape[0] * w.shape[1]
    bytes_accessed = (_nbytes((n_pad, L1, kc_p), compute_dtype) + weight_bytes
                      + _nbytes((n_pad, d1), jnp.float32))
    cost = pl.CostEstimate(flops=int(flops), transcendentals=0,
                           bytes_accessed=int(bytes_accessed))

    # TODO(synk): for very long sequences, add an L-tile grid axis with a
    # (K-1)-row halo (marked "parallel") so tiles fit v7x's 64 MiB VMEM and
    # both v7x TensorCores stay busy even at batch 1.
    # TODO(synk): on v5e, replace the K-expanded im2col with K accumulated
    # 128-deep dots (acc += shift_k(h) @ W_k) to avoid the store-bound cols
    # materialization; the single dot is kept since it feeds v6e/v7x's
    # 256-deep MXU better.
    out = pl.pallas_call(
        functools.partial(_resnet1d_kernel,
                          compute_dtype=compute_dtype, shortcuts=shortcuts),
        out_shape=jax.ShapeDtypeStruct((n_blocks, b_tile, d1), jnp.float32),
        grid=(n_blocks,),
        in_specs=in_specs,
        out_specs=pl.BlockSpec((1, b_tile, d1), lambda n: (n, 0, 0)),
        compiler_params=pltpu.CompilerParams(
            dimension_semantics=("parallel",),
            vmem_limit_bytes=vmem_limit),
        cost_estimate=cost,
    )(x_col, *weights)

    return out.reshape(n_pad, d1)[:N, :out_dim]       # drop batch/lane padding


# ---------------------------------- main ------------------------------------

if __name__ == "__main__":
    key = jax.random.PRNGKey(0)
    kp, kx = jax.random.split(key)

    # small shapes: batch=2, in_dim=4 channels, seq length=32, n_dim=16, out_dim=32
    N, IN_DIM, L = 2, 4, 32
    N_DIM, OUT_DIM = 16, 32

    params = init_resnet1d(kp, IN_DIM, N_DIM, OUT_DIM)
    packed = pack_resnet1d(params, dtype=jnp.bfloat16)
    ts = jax.random.normal(kx, (N, IN_DIM, L), jnp.float32)

    out = jax.block_until_ready(resnet1d_forward(packed, ts, out_dim=OUT_DIM))

    assert out.shape == (N, OUT_DIM), out.shape
    assert out.dtype == jnp.float32
    print("KERNEL_OK")
</pallas_src>

<mosaic_0001>
module attributes {stable_mosaic.version = 11 : i64} {
  func.func @_resnet1d_kernel(%arg0: i32, %arg1: memref<2x16x128xbf16, #tpu.memory_space<vmem>>, %arg2: memref<128x128xbf16, #tpu.memory_space<vmem>>, %arg3: memref<1x128xf32, #tpu.memory_space<vmem>>, %arg4: memref<896x128xbf16, #tpu.memory_space<vmem>>, %arg5: memref<1x128xf32, #tpu.memory_space<vmem>>, %arg6: memref<640x128xbf16, #tpu.memory_space<vmem>>, %arg7: memref<1x128xf32, #tpu.memory_space<vmem>>, %arg8: memref<384x128xbf16, #tpu.memory_space<vmem>>, %arg9: memref<1x128xf32, #tpu.memory_space<vmem>>, %arg10: memref<896x128xbf16, #tpu.memory_space<vmem>>, %arg11: memref<1x128xf32, #tpu.memory_space<vmem>>, %arg12: memref<640x128xbf16, #tpu.memory_space<vmem>>, %arg13: memref<1x128xf32, #tpu.memory_space<vmem>>, %arg14: memref<384x128xbf16, #tpu.memory_space<vmem>>, %arg15: memref<1x128xf32, #tpu.memory_space<vmem>>, %arg16: memref<128x128xbf16, #tpu.memory_space<vmem>>, %arg17: memref<1x128xf32, #tpu.memory_space<vmem>>, %arg18: memref<896x128xbf16, #tpu.memory_space<vmem>>, %arg19: memref<1x128xf32, #tpu.memory_space<vmem>>, %arg20: memref<640x128xbf16, #tpu.memory_space<vmem>>, %arg21: memref<1x128xf32, #tpu.memory_space<vmem>>, %arg22: memref<384x128xbf16, #tpu.memory_space<vmem>>, %arg23: memref<1x128xf32, #tpu.memory_space<vmem>>, %arg24: memref<128x128xbf16, #tpu.memory_space<vmem>>, %arg25: memref<1x128xf32, #tpu.memory_space<vmem>>, %arg26: memref<128x128xbf16, #tpu.memory_space<vmem>>, %arg27: memref<1x128xf32, #tpu.memory_space<vmem>>, %arg28: memref<128x128xbf16, #tpu.memory_space<vmem>>, %arg29: memref<1x128xf32, #tpu.memory_space<vmem>>, %arg30: memref<1x2x128xf32, #tpu.memory_space<vmem>>) attributes {dimension_semantics = [#tpu.dimension_semantics<parallel>], iteration_bounds = array<i64: 1>, scalar_prefetch = 0 : i64, scratch_operands = 0 : i64, tpu.core_type = #tpu.core_type<tc>, window_params = [{transform_indices = @transform_0, window_bounds = array<i64: 2, 16, 128>}, {pipeline_mode = #tpu.pipeline_mode<synchronous>, transform_indices = @transform_1, window_bounds = array<i64: 128, 128>}, {pipeline_mode = #tpu.pipeline_mode<synchronous>, transform_indices = @transform_2, window_bounds = array<i64: 1, 128>}, {pipeline_mode = #tpu.pipeline_mode<synchronous>, transform_indices = @transform_3, window_bounds = array<i64: 896, 128>}, {pipeline_mode = #tpu.pipeline_mode<synchronous>, transform_indices = @transform_4, window_bounds = array<i64: 1, 128>}, {pipeline_mode = #tpu.pipeline_mode<synchronous>, transform_indices = @transform_5, window_bounds = array<i64: 640, 128>}, {pipeline_mode = #tpu.pipeline_mode<synchronous>, transform_indices = @transform_6, window_bounds = array<i64: 1, 128>}, {pipeline_mode = #tpu.pipeline_mode<synchronous>, transform_indices = @transform_7, window_bounds = array<i64: 384, 128>}, {pipeline_mode = #tpu.pipeline_mode<synchronous>, transform_indices = @transform_8, window_bounds = array<i64: 1, 128>}, {pipeline_mode = #tpu.pipeline_mode<synchronous>, transform_indices = @transform_9, window_bounds = array<i64: 896, 128>}, {pipeline_mode = #tpu.pipeline_mode<synchronous>, transform_indices = @transform_10, window_bounds = array<i64: 1, 128>}, {pipeline_mode = #tpu.pipeline_mode<synchronous>, transform_indices = @transform_11, window_bounds = array<i64: 640, 128>}, {pipeline_mode = #tpu.pipeline_mode<synchronous>, transform_indices = @transform_12, window_bounds = array<i64: 1, 128>}, {pipeline_mode = #tpu.pipeline_mode<synchronous>, transform_indices = @transform_13, window_bounds = array<i64: 384, 128>}, {pipeline_mode = #tpu.pipeline_mode<synchronous>, transform_indices = @transform_14, window_bounds = array<i64: 1, 128>}, {pipeline_mode = #tpu.pipeline_mode<synchronous>, transform_indices = @transform_15, window_bounds = array<i64: 128, 128>}, {pipeline_mode = #tpu.pipeline_mode<synchronous>, transform_indices = @transform_16, window_bounds = array<i64: 1, 128>}, {pipeline_mode = #tpu.pipeline_mode<synchronous>, transform_indices = @transform_17, window_bounds = array<i64: 896, 128>}, {pipeline_mode = #tpu.pipeline_mode<synchronous>, transform_indices = @transform_18, window_bounds = array<i64: 1, 128>}, {pipeline_mode = #tpu.pipeline_mode<synchronous>, transform_indices = @transform_19, window_bounds = array<i64: 640, 128>}, {pipeline_mode = #tpu.pipeline_mode<synchronous>, transform_indices = @transform_20, window_bounds = array<i64: 1, 128>}, {pipeline_mode = #tpu.pipeline_mode<synchronous>, transform_indices = @transform_21, window_bounds = array<i64: 384, 128>}, {pipeline_mode = #tpu.pipeline_mode<synchronous>, transform_indices = @transform_22, window_bounds = array<i64: 1, 128>}, {pipeline_mode = #tpu.pipeline_mode<synchronous>, transform_indices = @transform_23, window_bounds = array<i64: 128, 128>}, {pipeline_mode = #tpu.pipeline_mode<synchronous>, transform_indices = @transform_24, window_bounds = array<i64: 1, 128>}, {pipeline_mode = #tpu.pipeline_mode<synchronous>, transform_indices = @transform_25, window_bounds = array<i64: 128, 128>}, {pipeline_mode = #tpu.pipeline_mode<synchronous>, transform_indices = @transform_26, window_bounds = array<i64: 1, 128>}, {pipeline_mode = #tpu.pipeline_mode<synchronous>, transform_indices = @transform_27, window_bounds = array<i64: 128, 128>}, {pipeline_mode = #tpu.pipeline_mode<synchronous>, transform_indices = @transform_28, window_bounds = array<i64: 1, 128>}, {transform_indices = @transform_29, window_bounds = array<i64: 1, 2, 128>}]} {
    %c0 = arith.constant 0 : index
    %c0_0 = arith.constant 0 : index
    %c0_1 = arith.constant 0 : index
    %0 = vector.load %arg1[%c0, %c0_0, %c0_1] : memref<2x16x128xbf16, #tpu.memory_space<vmem>>, vector<2x16x128xbf16>
    %1 = vector.shape_cast %0 : vector<2x16x128xbf16> to vector<32x128xbf16>
    %c0_2 = arith.constant 0 : index
    %c0_3 = arith.constant 0 : index
    %2 = vector.load %arg2[%c0_2, %c0_3] : memref<128x128xbf16, #tpu.memory_space<vmem>>, vector<128x128xbf16>
    %cst = arith.constant dense<0.000000e+00> : vector<32x128xf32>
    %3 = tpu.matmul %1, %2, %cst {dimension_numbers = #tpu.dot_dimension_numbers<[1], [0], [0], [1], [0, 0, 1, 1], [], []>} : vector<32x128xbf16>, vector<128x128xbf16>, vector<32x128xf32> -> vector<32x128xf32>
    %c0_4 = arith.constant 0 : index
    %c0_5 = arith.constant 0 : index
    %4 = vector.load %arg3[%c0_4, %c0_5] : memref<1x128xf32, #tpu.memory_space<vmem>>, vector<1x128xf32>
    %5 = vector.broadcast %4 : vector<1x128xf32> to vector<32x128xf32>
    %6 = arith.addf %3, %5 : vector<32x128xf32>
    %7 = vector.shape_cast %6 : vector<32x128xf32> to vector<2x16x128xf32>
    %8 = arith.truncf %7 : vector<2x16x128xf32> to vector<2x16x128xbf16>
    %cst_6 = arith.constant 0.000000e+00 : bf16
    %9 = vector.broadcast %cst_6 : bf16 to vector<2x3x128xbf16>
    %10 = tpu.concatenate %9, %8, %9 in 1 : vector<2x3x128xbf16>, vector<2x16x128xbf16>, vector<2x3x128xbf16> -> vector<2x22x128xbf16>
    %11 = vector.extract_strided_slice %10 {offsets = [0, 0, 0], sizes = [2, 16, 128], strides = [1, 1, 1]} : vector<2x22x128xbf16> to vector<2x16x128xbf16>
    %12 = vector.extract_strided_slice %10 {offsets = [0, 1, 0], sizes = [2, 16, 128], strides = [1, 1, 1]} : vector<2x22x128xbf16> to vector<2x16x128xbf16>
    %13 = vector.extract_strided_slice %10 {offsets = [0, 2, 0], sizes = [2, 16, 128], strides = [1, 1, 1]} : vector<2x22x128xbf16> to vector<2x16x128xbf16>
    %14 = vector.extract_strided_slice %10 {offsets = [0, 3, 0], sizes = [2, 16, 128], strides = [1, 1, 1]} : vector<2x22x128xbf16> to vector<2x16x128xbf16>
    %15 = vector.extract_strided_slice %10 {offsets = [0, 4, 0], sizes = [2, 16, 128], strides = [1, 1, 1]} : vector<2x22x128xbf16> to vector<2x16x128xbf16>
    %16 = vector.extract_strided_slice %10 {offsets = [0, 5, 0], sizes = [2, 16, 128], strides = [1, 1, 1]} : vector<2x22x128xbf16> to vector<2x16x128xbf16>
    %17 = vector.extract_strided_slice %10 {offsets = [0, 6, 0], sizes = [2, 16, 128], strides = [1, 1, 1]} : vector<2x22x128xbf16> to vector<2x16x128xbf16>
    %18 = tpu.concatenate %11, %12, %13, %14, %15, %16, %17 in 2 : vector<2x16x128xbf16>, vector<2x16x128xbf16>, vector<2x16x128xbf16>, vector<2x16x128xbf16>, vector<2x16x128xbf16>, vector<2x16x128xbf16>, vector<2x16x128xbf16> -> vector<2x16x896xbf16>
    %19 = vector.shape_cast %18 : vector<2x16x896xbf16> to vector<32x896xbf16>
    %c0_7 = arith.constant 0 : index
    %c0_8 = arith.constant 0 : index
    %20 = vector.load %arg4[%c0_7, %c0_8] : memref<896x128xbf16, #tpu.memory_space<vmem>>, vector<896x128xbf16>
    %cst_9 = arith.constant dense<0.000000e+00> : vector<32x128xf32>
    %21 = tpu.matmul %19, %20, %cst_9 {dimension_numbers = #tpu.dot_dimension_numbers<[1], [0], [0], [1], [0, 0, 1, 1], [], []>} : vector<32x896xbf16>, vector<896x128xbf16>, vector<32x128xf32> -> vector<32x128xf32>
    %c0_10 = arith.constant 0 : index
    %c0_11 = arith.constant 0 : index
    %22 = vector.load %arg5[%c0_10, %c0_11] : memref<1x128xf32, #tpu.memory_space<vmem>>, vector<1x128xf32>
    %23 = vector.broadcast %22 : vector<1x128xf32> to vector<32x128xf32>
    %24 = arith.addf %21, %23 : vector<32x128xf32>
    %cst_12 = arith.constant 0.000000e+00 : f32
    %25 = vector.broadcast %cst_12 : f32 to vector<32x128xf32>
    %26 = arith.maximumf %24, %25 : vector<32x128xf32>
    %27 = vector.shape_cast %26 : vector<32x128xf32> to vector<2x16x128xf32>
    %28 = arith.truncf %27 : vector<2x16x128xf32> to vector<2x16x128xbf16>
    %cst_13 = arith.constant 0.000000e+00 : bf16
    %29 = vector.broadcast %cst_13 : bf16 to vector<2x2x128xbf16>
    %30 = tpu.concatenate %29, %28, %29 in 1 : vector<2x2x128xbf16>, vector<2x16x128xbf16>, vector<2x2x128xbf16> -> vector<2x20x128xbf16>
    %31 = vector.extract_strided_slice %30 {offsets = [0, 0, 0], sizes = [2, 16, 128], strides = [1, 1, 1]} : vector<2x20x128xbf16> to vector<2x16x128xbf16>
    %32 = vector.extract_strided_slice %30 {offsets = [0, 1, 0], sizes = [2, 16, 128], strides = [1, 1, 1]} : vector<2x20x128xbf16> to vector<2x16x128xbf16>
    %33 = vector.extract_strided_slice %30 {offsets = [0, 2, 0], sizes = [2, 16, 128], strides = [1, 1, 1]} : vector<2x20x128xbf16> to vector<2x16x128xbf16>
    %34 = vector.extract_strided_slice %30 {offsets = [0, 3, 0], sizes = [2, 16, 128], strides = [1, 1, 1]} : vector<2x20x128xbf16> to vector<2x16x128xbf16>
    %35 = vector.extract_strided_slice %30 {offsets = [0, 4, 0], sizes = [2, 16, 128], strides = [1, 1, 1]} : vector<2x20x128xbf16> to vector<2x16x128xbf16>
    %36 = tpu.concatenate %31, %32, %33, %34, %35 in 2 : vector<2x16x128xbf16>, vector<2x16x128xbf16>, vector<2x16x128xbf16>, vector<2x16x128xbf16>, vector<2x16x128xbf16> -> vector<2x16x640xbf16>
    %37 = vector.shape_cast %36 : vector<2x16x640xbf16> to vector<32x640xbf16>
    %c0_14 = arith.constant 0 : index
    %c0_15 = arith.constant 0 : index
    %38 = vector.load %arg6[%c0_14, %c0_15] : memref<640x128xbf16, #tpu.memory_space<vmem>>, vector<640x128xbf16>
    %cst_16 = arith.constant dense<0.000000e+00> : vector<32x128xf32>
    %39 = tpu.matmul %37, %38, %cst_16 {dimension_numbers = #tpu.dot_dimension_numbers<[1], [0], [0], [1], [0, 0, 1, 1], [], []>} : vector<32x640xbf16>, vector<640x128xbf16>, vector<32x128xf32> -> vector<32x128xf32>
    %c0_17 = arith.constant 0 : index
    %c0_18 = arith.constant 0 : index
    %40 = vector.load %arg7[%c0_17, %c0_18] : memref<1x128xf32, #tpu.memory_space<vmem>>, vector<1x128xf32>
    %41 = vector.broadcast %40 : vector<1x128xf32> to vector<32x128xf32>
    %42 = arith.addf %39, %41 : vector<32x128xf32>
    %cst_19 = arith.constant 0.000000e+00 : f32
    %43 = vector.broadcast %cst_19 : f32 to vector<32x128xf32>
    %44 = arith.maximumf %42, %43 : vector<32x128xf32>
    %45 = vector.shape_cast %44 : vector<32x128xf32> to vector<2x16x128xf32>
    %46 = arith.truncf %45 : vector<2x16x128xf32> to vector<2x16x128xbf16>
    %cst_20 = arith.constant 0.000000e+00 : bf16
    %47 = vector.broadcast %cst_20 : bf16 to vector<2x1x128xbf16>
    %48 = tpu.concatenate %47, %46, %47 in 1 : vector<2x1x128xbf16>, vector<2x16x128xbf16>, vector<2x1x128xbf16> -> vector<2x18x128xbf16>
    %49 = vector.extract_strided_slice %48 {offsets = [0, 0, 0], sizes = [2, 16, 128], strides = [1, 1, 1]} : vector<2x18x128xbf16> to vector<2x16x128xbf16>
    %50 = vector.extract_strided_slice %48 {offsets = [0, 1, 0], sizes = [2, 16, 128], strides = [1, 1, 1]} : vector<2x18x128xbf16> to vector<2x16x128xbf16>
    %51 = vector.extract_strided_slice %48 {offsets = [0, 2, 0], sizes = [2, 16, 128], strides = [1, 1, 1]} : vector<2x18x128xbf16> to vector<2x16x128xbf16>
    %52 = tpu.concatenate %49, %50, %51 in 2 : vector<2x16x128xbf16>, vector<2x16x128xbf16>, vector<2x16x128xbf16> -> vector<2x16x384xbf16>
    %53 = vector.shape_cast %52 : vector<2x16x384xbf16> to vector<32x384xbf16>
    %c0_21 = arith.constant 0 : index
    %c0_22 = arith.constant 0 : index
    %54 = vector.load %arg8[%c0_21, %c0_22] : memref<384x128xbf16, #tpu.memory_space<vmem>>, vector<384x128xbf16>
    %cst_23 = arith.constant dense<0.000000e+00> : vector<32x128xf32>
    %55 = tpu.matmul %53, %54, %cst_23 {dimension_numbers = #tpu.dot_dimension_numbers<[1], [0], [0], [1], [0, 0, 1, 1], [], []>} : vector<32x384xbf16>, vector<384x128xbf16>, vector<32x128xf32> -> vector<32x128xf32>
    %c0_24 = arith.constant 0 : index
    %c0_25 = arith.constant 0 : index
    %56 = vector.load %arg9[%c0_24, %c0_25] : memref<1x128xf32, #tpu.memory_space<vmem>>, vector<1x128xf32>
    %57 = vector.broadcast %56 : vector<1x128xf32> to vector<32x128xf32>
    %58 = arith.addf %55, %57 : vector<32x128xf32>
    %59 = vector.shape_cast %58 : vector<32x128xf32> to vector<2x16x128xf32>
    %60 = arith.extf %8 : vector<2x16x128xbf16> to vector<2x16x128xf32>
    %61 = arith.addf %59, %60 : vector<2x16x128xf32>
    %cst_26 = arith.constant 0.000000e+00 : f32
    %62 = vector.broadcast %cst_26 : f32 to vector<2x16x128xf32>
    %63 = arith.maximumf %61, %62 : vector<2x16x128xf32>
    %64 = arith.truncf %63 : vector<2x16x128xf32> to vector<2x16x128xbf16>
    %cst_27 = arith.constant 0.000000e+00 : bf16
    %65 = vector.broadcast %cst_27 : bf16 to vector<2x3x128xbf16>
    %66 = tpu.concatenate %65, %64, %65 in 1 : vector<2x3x128xbf16>, vector<2x16x128xbf16>, vector<2x3x128xbf16> -> vector<2x22x128xbf16>
    %67 = vector.extract_strided_slice %66 {offsets = [0, 0, 0], sizes = [2, 16, 128], strides = [1, 1, 1]} : vector<2x22x128xbf16> to vector<2x16x128xbf16>
    %68 = vector.extract_strided_slice %66 {offsets = [0, 1, 0], sizes = [2, 16, 128], strides = [1, 1, 1]} : vector<2x22x128xbf16> to vector<2x16x128xbf16>
    %69 = vector.extract_strided_slice %66 {offsets = [0, 2, 0], sizes = [2, 16, 128], strides = [1, 1, 1]} : vector<2x22x128xbf16> to vector<2x16x128xbf16>
    %70 = vector.extract_strided_slice %66 {offsets = [0, 3, 0], sizes = [2, 16, 128], strides = [1, 1, 1]} : vector<2x22x128xbf16> to vector<2x16x128xbf16>
    %71 = vector.extract_strided_slice %66 {offsets = [0, 4, 0], sizes = [2, 16, 128], strides = [1, 1, 1]} : vector<2x22x128xbf16> to vector<2x16x128xbf16>
    %72 = vector.extract_strided_slice %66 {offsets = [0, 5, 0], sizes = [2, 16, 128], strides = [1, 1, 1]} : vector<2x22x128xbf16> to vector<2x16x128xbf16>
    %73 = vector.extract_strided_slice %66 {offsets = [0, 6, 0], sizes = [2, 16, 128], strides = [1, 1, 1]} : vector<2x22x128xbf16> to vector<2x16x128xbf16>
    %74 = tpu.concatenate %67, %68, %69, %70, %71, %72, %73 in 2 : vector<2x16x128xbf16>, vector<2x16x128xbf16>, vector<2x16x128xbf16>, vector<2x16x128xbf16>, vector<2x16x128xbf16>, vector<2x16x128xbf16>, vector<2x16x128xbf16> -> vector<2x16x896xbf16>
    %75 = vector.shape_cast %74 : vector<2x16x896xbf16> to vector<32x896xbf16>
    %c0_28 = arith.constant 0 : index
    %c0_29 = arith.constant 0 : index
    %76 = vector.load %arg10[%c0_28, %c0_29] : memref<896x128xbf16, #tpu.memory_space<vmem>>, vector<896x128xbf16>
    %cst_30 = arith.constant dense<0.000000e+00> : vector<32x128xf32>
    %77 = tpu.matmul %75, %76, %cst_30 {dimension_numbers = #tpu.dot_dimension_numbers<[1], [0], [0], [1], [0, 0, 1, 1], [], []>} : vector<32x896xbf16>, vector<896x128xbf16>, vector<32x128xf32> -> vector<32x128xf32>
    %c0_31 = arith.constant 0 : index
    %c0_32 = arith.constant 0 : index
    %78 = vector.load %arg11[%c0_31, %c0_32] : memref<1x128xf32, #tpu.memory_space<vmem>>, vector<1x128xf32>
    %79 = vector.broadcast %78 : vector<1x128xf32> to vector<32x128xf32>
    %80 = arith.addf %77, %79 : vector<32x128xf32>
    %cst_33 = arith.constant 0.000000e+00 : f32
    %81 = vector.broadcast %cst_33 : f32 to vector<32x128xf32>
    %82 = arith.maximumf %80, %81 : vector<32x128xf32>
    %83 = vector.shape_cast %82 : vector<32x128xf32> to vector<2x16x128xf32>
    %84 = arith.truncf %83 : vector<2x16x128xf32> to vector<2x16x128xbf16>
    %cst_34 = arith.constant 0.000000e+00 : bf16
    %85 = vector.broadcast %cst_34 : bf16 to vector<2x2x128xbf16>
    %86 = tpu.concatenate %85, %84, %85 in 1 : vector<2x2x128xbf16>, vector<2x16x128xbf16>, vector<2x2x128xbf16> -> vector<2x20x128xbf16>
    %87 = vector.extract_strided_slice %86 {offsets = [0, 0, 0], sizes = [2, 16, 128], strides = [1, 1, 1]} : vector<2x20x128xbf16> to vector<2x16x128xbf16>
    %88 = vector.extract_strided_slice %86 {offsets = [0, 1, 0], sizes = [2, 16, 128], strides = [1, 1, 1]} : vector<2x20x128xbf16> to vector<2x16x128xbf16>
    %89 = vector.extract_strided_slice %86 {offsets = [0, 2, 0], sizes = [2, 16, 128], strides = [1, 1, 1]} : vector<2x20x128xbf16> to vector<2x16x128xbf16>
    %90 = vector.extract_strided_slice %86 {offsets = [0, 3, 0], sizes = [2, 16, 128], strides = [1, 1, 1]} : vector<2x20x128xbf16> to vector<2x16x128xbf16>
    %91 = vector.extract_strided_slice %86 {offsets = [0, 4, 0], sizes = [2, 16, 128], strides = [1, 1, 1]} : vector<2x20x128xbf16> to vector<2x16x128xbf16>
    %92 = tpu.concatenate %87, %88, %89, %90, %91 in 2 : vector<2x16x128xbf16>, vector<2x16x128xbf16>, vector<2x16x128xbf16>, vector<2x16x128xbf16>, vector<2x16x128xbf16> -> vector<2x16x640xbf16>
    %93 = vector.shape_cast %92 : vector<2x16x640xbf16> to vector<32x640xbf16>
    %c0_35 = arith.constant 0 : index
    %c0_36 = arith.constant 0 : index
    %94 = vector.load %arg12[%c0_35, %c0_36] : memref<640x128xbf16, #tpu.memory_space<vmem>>, vector<640x128xbf16>
    %cst_37 = arith.constant dense<0.000000e+00> : vector<32x128xf32>
    %95 = tpu.matmul %93, %94, %cst_37 {dimension_numbers = #tpu.dot_dimension_numbers<[1], [0], [0], [1], [0, 0, 1, 1], [], []>} : vector<32x640xbf16>, vector<640x128xbf16>, vector<32x128xf32> -> vector<32x128xf32>
    %c0_38 = arith.constant 0 : index
    %c0_39 = arith.constant 0 : index
    %96 = vector.load %arg13[%c0_38, %c0_39] : memref<1x128xf32, #tpu.memory_space<vmem>>, vector<1x128xf32>
    %97 = vector.broadcast %96 : vector<1x128xf32> to vector<32x128xf32>
    %98 = arith.addf %95, %97 : vector<32x128xf32>
    %cst_40 = arith.constant 0.000000e+00 : f32
    %99 = vector.broadcast %cst_40 : f32 to vector<32x128xf32>
    %100 = arith.maximumf %98, %99 : vector<32x128xf32>
    %101 = vector.shape_cast %100 : vector<32x128xf32> to vector<2x16x128xf32>
    %102 = arith.truncf %101 : vector<2x16x128xf32> to vector<2x16x128xbf16>
    %cst_41 = arith.constant 0.000000e+00 : bf16
    %103 = vector.broadcast %cst_41 : bf16 to vector<2x1x128xbf16>
    %104 = tpu.concatenate %103, %102, %103 in 1 : vector<2x1x128xbf16>, vector<2x16x128xbf16>, vector<2x1x128xbf16> -> vector<2x18x128xbf16>
    %105 = vector.extract_strided_slice %104 {offsets = [0, 0, 0], sizes = [2, 16, 128], strides = [1, 1, 1]} : vector<2x18x128xbf16> to vector<2x16x128xbf16>
    %106 = vector.extract_strided_slice %104 {offsets = [0, 1, 0], sizes = [2, 16, 128], strides = [1, 1, 1]} : vector<2x18x128xbf16> to vector<2x16x128xbf16>
    %107 = vector.extract_strided_slice %104 {offsets = [0, 2, 0], sizes = [2, 16, 128], strides = [1, 1, 1]} : vector<2x18x128xbf16> to vector<2x16x128xbf16>
    %108 = tpu.concatenate %105, %106, %107 in 2 : vector<2x16x128xbf16>, vector<2x16x128xbf16>, vector<2x16x128xbf16> -> vector<2x16x384xbf16>
    %109 = vector.shape_cast %108 : vector<2x16x384xbf16> to vector<32x384xbf16>
    %c0_42 = arith.constant 0 : index
    %c0_43 = arith.constant 0 : index
    %110 = vector.load %arg14[%c0_42, %c0_43] : memref<384x128xbf16, #tpu.memory_space<vmem>>, vector<384x128xbf16>
    %cst_44 = arith.constant dense<0.000000e+00> : vector<32x128xf32>
    %111 = tpu.matmul %109, %110, %cst_44 {dimension_numbers = #tpu.dot_dimension_numbers<[1], [0], [0], [1], [0, 0, 1, 1], [], []>} : vector<32x384xbf16>, vector<384x128xbf16>, vector<32x128xf32> -> vector<32x128xf32>
    %c0_45 = arith.constant 0 : index
    %c0_46 = arith.constant 0 : index
    %112 = vector.load %arg15[%c0_45, %c0_46] : memref<1x128xf32, #tpu.memory_space<vmem>>, vector<1x128xf32>
    %113 = vector.broadcast %112 : vector<1x128xf32> to vector<32x128xf32>
    %114 = arith.addf %111, %113 : vector<32x128xf32>
    %115 = vector.shape_cast %114 : vector<32x128xf32> to vector<2x16x128xf32>
    %116 = vector.shape_cast %64 : vector<2x16x128xbf16> to vector<32x128xbf16>
    %c0_47 = arith.constant 0 : index
    %c0_48 = arith.constant 0 : index
    %117 = vector.load %arg16[%c0_47, %c0_48] : memref<128x128xbf16, #tpu.memory_space<vmem>>, vector<128x128xbf16>
    %cst_49 = arith.constant dense<0.000000e+00> : vector<32x128xf32>
    %118 = tpu.matmul %116, %117, %cst_49 {dimension_numbers = #tpu.dot_dimension_numbers<[1], [0], [0], [1], [0, 0, 1, 1], [], []>} : vector<32x128xbf16>, vector<128x128xbf16>, vector<32x128xf32> -> vector<32x128xf32>
    %c0_50 = arith.constant 0 : index
    %c0_51 = arith.constant 0 : index
    %119 = vector.load %arg17[%c0_50, %c0_51] : memref<1x128xf32, #tpu.memory_space<vmem>>, vector<1x128xf32>
    %120 = vector.broadcast %119 : vector<1x128xf32> to vector<32x128xf32>
    %121 = arith.addf %118, %120 : vector<32x128xf32>
    %122 = vector.shape_cast %121 : vector<32x128xf32> to vector<2x16x128xf32>
    %123 = arith.addf %115, %122 : vector<2x16x128xf32>
    %cst_52 = arith.constant 0.000000e+00 : f32
    %124 = vector.broadcast %cst_52 : f32 to vector<2x16x128xf32>
    %125 = arith.maximumf %123, %124 : vector<2x16x128xf32>
    %126 = arith.truncf %125 : vector<2x16x128xf32> to vector<2x16x128xbf16>
    %cst_53 = arith.constant 0.000000e+00 : bf16
    %127 = vector.broadcast %cst_53 : bf16 to vector<2x3x128xbf16>
    %128 = tpu.concatenate %127, %126, %127 in 1 : vector<2x3x128xbf16>, vector<2x16x128xbf16>, vector<2x3x128xbf16> -> vector<2x22x128xbf16>
    %129 = vector.extract_strided_slice %128 {offsets = [0, 0, 0], sizes = [2, 16, 128], strides = [1, 1, 1]} : vector<2x22x128xbf16> to vector<2x16x128xbf16>
    %130 = vector.extract_strided_slice %128 {offsets = [0, 1, 0], sizes = [2, 16, 128], strides = [1, 1, 1]} : vector<2x22x128xbf16> to vector<2x16x128xbf16>
    %131 = vector.extract_strided_slice %128 {offsets = [0, 2, 0], sizes = [2, 16, 128], strides = [1, 1, 1]} : vector<2x22x128xbf16> to vector<2x16x128xbf16>
    %132 = vector.extract_strided_slice %128 {offsets = [0, 3, 0], sizes = [2, 16, 128], strides = [1, 1, 1]} : vector<2x22x128xbf16> to vector<2x16x128xbf16>
    %133 = vector.extract_strided_slice %128 {offsets = [0, 4, 0], sizes = [2, 16, 128], strides = [1, 1, 1]} : vector<2x22x128xbf16> to vector<2x16x128xbf16>
    %134 = vector.extract_strided_slice %128 {offsets = [0, 5, 0], sizes = [2, 16, 128], strides = [1, 1, 1]} : vector<2x22x128xbf16> to vector<2x16x128xbf16>
    %135 = vector.extract_strided_slice %128 {offsets = [0, 6, 0], sizes = [2, 16, 128], strides = [1, 1, 1]} : vector<2x22x128xbf16> to vector<2x16x128xbf16>
    %136 = tpu.concatenate %129, %130, %131, %132, %133, %134, %135 in 2 : vector<2x16x128xbf16>, vector<2x16x128xbf16>, vector<2x16x128xbf16>, vector<2x16x128xbf16>, vector<2x16x128xbf16>, vector<2x16x128xbf16>, vector<2x16x128xbf16> -> vector<2x16x896xbf16>
    %137 = vector.shape_cast %136 : vector<2x16x896xbf16> to vector<32x896xbf16>
    %c0_54 = arith.constant 0 : index
    %c0_55 = arith.constant 0 : index
    %138 = vector.load %arg18[%c0_54, %c0_55] : memref<896x128xbf16, #tpu.memory_space<vmem>>, vector<896x128xbf16>
    %cst_56 = arith.constant dense<0.000000e+00> : vector<32x128xf32>
    %139 = tpu.matmul %137, %138, %cst_56 {dimension_numbers = #tpu.dot_dimension_numbers<[1], [0], [0], [1], [0, 0, 1, 1], [], []>} : vector<32x896xbf16>, vector<896x128xbf16>, vector<32x128xf32> -> vector<32x128xf32>
    %c0_57 = arith.constant 0 : index
    %c0_58 = arith.constant 0 : index
    %140 = vector.load %arg19[%c0_57, %c0_58] : memref<1x128xf32, #tpu.memory_space<vmem>>, vector<1x128xf32>
    %141 = vector.broadcast %140 : vector<1x128xf32> to vector<32x128xf32>
    %142 = arith.addf %139, %141 : vector<32x128xf32>
    %cst_59 = arith.constant 0.000000e+00 : f32
    %143 = vector.broadcast %cst_59 : f32 to vector<32x128xf32>
    %144 = arith.maximumf %142, %143 : vector<32x128xf32>
    %145 = vector.shape_cast %144 : vector<32x128xf32> to vector<2x16x128xf32>
    %146 = arith.truncf %145 : vector<2x16x128xf32> to vector<2x16x128xbf16>
    %cst_60 = arith.constant 0.000000e+00 : bf16
    %147 = vector.broadcast %cst_60 : bf16 to vector<2x2x128xbf16>
    %148 = tpu.concatenate %147, %146, %147 in 1 : vector<2x2x128xbf16>, vector<2x16x128xbf16>, vector<2x2x128xbf16> -> vector<2x20x128xbf16>
    %149 = vector.extract_strided_slice %148 {offsets = [0, 0, 0], sizes = [2, 16, 128], strides = [1, 1, 1]} : vector<2x20x128xbf16> to vector<2x16x128xbf16>
    %150 = vector.extract_strided_slice %148 {offsets = [0, 1, 0], sizes = [2, 16, 128], strides = [1, 1, 1]} : vector<2x20x128xbf16> to vector<2x16x128xbf16>
    %151 = vector.extract_strided_slice %148 {offsets = [0, 2, 0], sizes = [2, 16, 128], strides = [1, 1, 1]} : vector<2x20x128xbf16> to vector<2x16x128xbf16>
    %152 = vector.extract_strided_slice %148 {offsets = [0, 3, 0], sizes = [2, 16, 128], strides = [1, 1, 1]} : vector<2x20x128xbf16> to vector<2x16x128xbf16>
    %153 = vector.extract_strided_slice %148 {offsets = [0, 4, 0], sizes = [2, 16, 128], strides = [1, 1, 1]} : vector<2x20x128xbf16> to vector<2x16x128xbf16>
    %154 = tpu.concatenate %149, %150, %151, %152, %153 in 2 : vector<2x16x128xbf16>, vector<2x16x128xbf16>, vector<2x16x128xbf16>, vector<2x16x128xbf16>, vector<2x16x128xbf16> -> vector<2x16x640xbf16>
    %155 = vector.shape_cast %154 : vector<2x16x640xbf16> to vector<32x640xbf16>
    %c0_61 = arith.constant 0 : index
    %c0_62 = arith.constant 0 : index
    %156 = vector.load %arg20[%c0_61, %c0_62] : memref<640x128xbf16, #tpu.memory_space<vmem>>, vector<640x128xbf16>
    %cst_63 = arith.constant dense<0.000000e+00> : vector<32x128xf32>
    %157 = tpu.matmul %155, %156, %cst_63 {dimension_numbers = #tpu.dot_dimension_numbers<[1], [0], [0], [1], [0, 0, 1, 1], [], []>} : vector<32x640xbf16>, vector<640x128xbf16>, vector<32x128xf32> -> vector<32x128xf32>
    %c0_64 = arith.constant 0 : index
    %c0_65 = arith.constant 0 : index
    %158 = vector.load %arg21[%c0_64, %c0_65] : memref<1x128xf32, #tpu.memory_space<vmem>>, vector<1x128xf32>
    %159 = vector.broadcast %158 : vector<1x128xf32> to vector<32x128xf32>
    %160 = arith.addf %157, %159 : vector<32x128xf32>
    %cst_66 = arith.constant 0.000000e+00 : f32
    %161 = vector.broadcast %cst_66 : f32 to vector<32x128xf32>
    %162 = arith.maximumf %160, %161 : vector<32x128xf32>
    %163 = vector.shape_cast %162 : vector<32x128xf32> to vector<2x16x128xf32>
    %164 = arith.truncf %163 : vector<2x16x128xf32> to vector<2x16x128xbf16>
    %cst_67 = arith.constant 0.000000e+00 : bf16
    %165 = vector.broadcast %cst_67 : bf16 to vector<2x1x128xbf16>
    %166 = tpu.concatenate %165, %164, %165 in 1 : vector<2x1x128xbf16>, vector<2x16x128xbf16>, vector<2x1x128xbf16> -> vector<2x18x128xbf16>
    %167 = vector.extract_strided_slice %166 {offsets = [0, 0, 0], sizes = [2, 16, 128], strides = [1, 1, 1]} : vector<2x18x128xbf16> to vector<2x16x128xbf16>
    %168 = vector.extract_strided_slice %166 {offsets = [0, 1, 0], sizes = [2, 16, 128], strides = [1, 1, 1]} : vector<2x18x128xbf16> to vector<2x16x128xbf16>
    %169 = vector.extract_strided_slice %166 {offsets = [0, 2, 0], sizes = [2, 16, 128], strides = [1, 1, 1]} : vector<2x18x128xbf16> to vector<2x16x128xbf16>
    %170 = tpu.concatenate %167, %168, %169 in 2 : vector<2x16x128xbf16>, vector<2x16x128xbf16>, vector<2x16x128xbf16> -> vector<2x16x384xbf16>
    %171 = vector.shape_cast %170 : vector<2x16x384xbf16> to vector<32x384xbf16>
    %c0_68 = arith.constant 0 : index
    %c0_69 = arith.constant 0 : index
    %172 = vector.load %arg22[%c0_68, %c0_69] : memref<384x128xbf16, #tpu.memory_space<vmem>>, vector<384x128xbf16>
    %cst_70 = arith.constant dense<0.000000e+00> : vector<32x128xf32>
    %173 = tpu.matmul %171, %172, %cst_70 {dimension_numbers = #tpu.dot_dimension_numbers<[1], [0], [0], [1], [0, 0, 1, 1], [], []>} : vector<32x384xbf16>, vector<384x128xbf16>, vector<32x128xf32> -> vector<32x128xf32>
    %c0_71 = arith.constant 0 : index
    %c0_72 = arith.constant 0 : index
    %174 = vector.load %arg23[%c0_71, %c0_72] : memref<1x128xf32, #tpu.memory_space<vmem>>, vector<1x128xf32>
    %175 = vector.broadcast %174 : vector<1x128xf32> to vector<32x128xf32>
    %176 = arith.addf %173, %175 : vector<32x128xf32>
    %177 = vector.shape_cast %176 : vector<32x128xf32> to vector<2x16x128xf32>
    %178 = arith.extf %126 : vector<2x16x128xbf16> to vector<2x16x128xf32>
    %179 = arith.addf %177, %178 : vector<2x16x128xf32>
    %cst_73 = arith.constant 0.000000e+00 : f32
    %180 = vector.broadcast %cst_73 : f32 to vector<2x16x128xf32>
    %181 = arith.maximumf %179, %180 : vector<2x16x128xf32>
    %182 = arith.truncf %181 : vector<2x16x128xf32> to vector<2x16x128xbf16>
    %183 = arith.extf %182 : vector<2x16x128xbf16> to vector<2x16x128xf32>
    %cst_74 = arith.constant dense<0.000000e+00> : vector<2x128xf32>
    %184 = vector.multi_reduction <add>, %183, %cst_74 [1] : vector<2x16x128xf32> to vector<2x128xf32>
    %cst_75 = arith.constant 1.600000e+01 : f32
    %185 = vector.broadcast %cst_75 : f32 to vector<2x128xf32>
    %186 = arith.divf %184, %185 : vector<2x128xf32>
    %187 = arith.truncf %186 : vector<2x128xf32> to vector<2x128xbf16>
    %c0_76 = arith.constant 0 : index
    %c0_77 = arith.constant 0 : index
    %188 = vector.load %arg24[%c0_76, %c0_77] : memref<128x128xbf16, #tpu.memory_space<vmem>>, vector<128x128xbf16>
    %cst_78 = arith.constant dense<0.000000e+00> : vector<2x128xf32>
    %189 = tpu.matmul %187, %188, %cst_78 {dimension_numbers = #tpu.dot_dimension_numbers<[1], [0], [0], [1], [0, 0, 1, 1], [], []>} : vector<2x128xbf16>, vector<128x128xbf16>, vector<2x128xf32> -> vector<2x128xf32>
    %c0_79 = arith.constant 0 : index
    %c0_80 = arith.constant 0 : index
    %190 = vector.load %arg25[%c0_79, %c0_80] : memref<1x128xf32, #tpu.memory_space<vmem>>, vector<1x128xf32>
    %191 = vector.broadcast %190 : vector<1x128xf32> to vector<2x128xf32>
    %192 = arith.addf %189, %191 : vector<2x128xf32>
    %cst_81 = arith.constant 0.000000e+00 : f32
    %193 = vector.broadcast %cst_81 : f32 to vector<2x128xf32>
    %194 = arith.maximumf %192, %193 : vector<2x128xf32>
    %195 = arith.truncf %194 : vector<2x128xf32> to vector<2x128xbf16>
    %c0_82 = arith.constant 0 : index
    %c0_83 = arith.constant 0 : index
    %196 = vector.load %arg26[%c0_82, %c0_83] : memref<128x128xbf16, #tpu.memory_space<vmem>>, vector<128x128xbf16>
    %cst_84 = arith.constant dense<0.000000e+00> : vector<2x128xf32>
    %197 = tpu.matmul %195, %196, %cst_84 {dimension_numbers = #tpu.dot_dimension_numbers<[1], [0], [0], [1], [0, 0, 1, 1], [], []>} : vector<2x128xbf16>, vector<128x128xbf16>, vector<2x128xf32> -> vector<2x128xf32>
    %c0_85 = arith.constant 0 : index
    %c0_86 = arith.constant 0 : index
    %198 = vector.load %arg27[%c0_85, %c0_86] : memref<1x128xf32, #tpu.memory_space<vmem>>, vector<1x128xf32>
    %199 = vector.broadcast %198 : vector<1x128xf32> to vector<2x128xf32>
    %200 = arith.addf %197, %199 : vector<2x128xf32>
    %cst_87 = arith.constant 0.000000e+00 : f32
    %201 = vector.broadcast %cst_87 : f32 to vector<2x128xf32>
    %202 = arith.maximumf %200, %201 : vector<2x128xf32>
    %203 = arith.truncf %202 : vector<2x128xf32> to vector<2x128xbf16>
    %c0_88 = arith.constant 0 : index
    %c0_89 = arith.constant 0 : index
    %204 = vector.load %arg28[%c0_88, %c0_89] : memref<128x128xbf16, #tpu.memory_space<vmem>>, vector<128x128xbf16>
    %cst_90 = arith.constant dense<0.000000e+00> : vector<2x128xf32>
    %205 = tpu.matmul %203, %204, %cst_90 {dimension_numbers = #tpu.dot_dimension_numbers<[1], [0], [0], [1], [0, 0, 1, 1], [], []>} : vector<2x128xbf16>, vector<128x128xbf16>, vector<2x128xf32> -> vector<2x128xf32>
    %c0_91 = arith.constant 0 : index
    %c0_92 = arith.constant 0 : index
    %206 = vector.load %arg29[%c0_91, %c0_92] : memref<1x128xf32, #tpu.memory_space<vmem>>, vector<1x128xf32>
    %207 = vector.broadcast %206 : vector<1x128xf32> to vector<2x128xf32>
    %208 = arith.addf %205, %207 : vector<2x128xf32>
    %c0_93 = arith.constant 0 : index
    %c0_94 = arith.constant 0 : index
    %c0_95 = arith.constant 0 : index
    %209 = vector.load %arg30[%c0_93, %c0_94, %c0_95] : memref<1x2x128xf32, #tpu.memory_space<vmem>>, vector<1x2x128xf32>
    %210 = vector.shape_cast %209 : vector<1x2x128xf32> to vector<2x128xf32>
    %211 = vector.shape_cast %208 : vector<2x128xf32> to vector<1x2x128xf32>
    tpu.vector_store %arg30[%c0_93, %c0_94, %c0_95], %211 {strides = array<i32>} : memref<1x2x128xf32, #tpu.memory_space<vmem>>, vector<1x2x128xf32>,
    return
  }
  func.func @transform_0(%arg0: i32) -> (i32, i32, i32) {
    %c0_i32 = arith.constant 0 : i32
    %c0_i32_0 = arith.constant 0 : i32
    %c0_i32_1 = arith.constant 0 : i32
    return %arg0, %c0_i32, %c0_i32_0 : i32, i32, i32
  }
  func.func @transform_1(%arg0: i32) -> (i32, i32) {
    %c0_i32 = arith.constant 0 : i32
    %c0_i32_0 = arith.constant 0 : i32
    %c0_i32_1 = arith.constant 0 : i32
    return %c0_i32, %c0_i32_0 : i32, i32
  }
  func.func @transform_2(%arg0: i32) -> (i32, i32) {
    %c0_i32 = arith.constant 0 : i32
    %c0_i32_0 = arith.constant 0 : i32
    %c0_i32_1 = arith.constant 0 : i32
    return %c0_i32, %c0_i32_0 : i32, i32
  }
  func.func @transform_3(%arg0: i32) -> (i32, i32) {
    %c0_i32 = arith.constant 0 : i32
    %c0_i32_0 = arith.constant 0 : i32
    %c0_i32_1 = arith.constant 0 : i32
    return %c0_i32, %c0_i32_0 : i32, i32
  }
  func.func @transform_4(%arg0: i32) -> (i32, i32) {
    %c0_i32 = arith.constant 0 : i32
    %c0_i32_0 = arith.constant 0 : i32
    %c0_i32_1 = arith.constant 0 : i32
    return %c0_i32, %c0_i32_0 : i32, i32
  }
  func.func @transform_5(%arg0: i32) -> (i32, i32) {
    %c0_i32 = arith.constant 0 : i32
    %c0_i32_0 = arith.constant 0 : i32
    %c0_i32_1 = arith.constant 0 : i32
    return %c0_i32, %c0_i32_0 : i32, i32
  }
  func.func @transform_6(%arg0: i32) -> (i32, i32) {
    %c0_i32 = arith.constant 0 : i32
    %c0_i32_0 = arith.constant 0 : i32
    %c0_i32_1 = arith.constant 0 : i32
    return %c0_i32, %c0_i32_0 : i32, i32
  }
  func.func @transform_7(%arg0: i32) -> (i32, i32) {
    %c0_i32 = arith.constant 0 : i32
    %c0_i32_0 = arith.constant 0 : i32
    %c0_i32_1 = arith.constant 0 : i32
    return %c0_i32, %c0_i32_0 : i32, i32
  }
  func.func @transform_8(%arg0: i32) -> (i32, i32) {
    %c0_i32 = arith.constant 0 : i32
    %c0_i32_0 = arith.constant 0 : i32
    %c0_i32_1 = arith.constant 0 : i32
    return %c0_i32, %c0_i32_0 : i32, i32
  }
  func.func @transform_9(%arg0: i32) -> (i32, i32) {
    %c0_i32 = arith.constant 0 : i32
    %c0_i32_0 = arith.constant 0 : i32
    %c0_i32_1 = arith.constant 0 : i32
    return %c0_i32, %c0_i32_0 : i32, i32
  }
  func.func @transform_10(%arg0: i32) -> (i32, i32) {
    %c0_i32 = arith.constant 0 : i32
    %c0_i32_0 = arith.constant 0 : i32
    %c0_i32_1 = arith.constant 0 : i32
    return %c0_i32, %c0_i32_0 : i32, i32
  }
  func.func @transform_11(%arg0: i32) -> (i32, i32) {
    %c0_i32 = arith.constant 0 : i32
    %c0_i32_0 = arith.constant 0 : i32
    %c0_i32_1 = arith.constant 0 : i32
    return %c0_i32, %c0_i32_0 : i32, i32
  }
  func.func @transform_12(%arg0: i32) -> (i32, i32) {
    %c0_i32 = arith.constant 0 : i32
    %c0_i32_0 = arith.constant 0 : i32
    %c0_i32_1 = arith.constant 0 : i32
    return %c0_i32, %c0_i32_0 : i32, i32
  }
  func.func @transform_13(%arg0: i32) -> (i32, i32) {
    %c0_i32 = arith.constant 0 : i32
    %c0_i32_0 = arith.constant 0 : i32
    %c0_i32_1 = arith.constant 0 : i32
    return %c0_i32, %c0_i32_0 : i32, i32
  }
  func.func @transform_14(%arg0: i32) -> (i32, i32) {
    %c0_i32 = arith.constant 0 : i32
    %c0_i32_0 = arith.constant 0 : i32
    %c0_i32_1 = arith.constant 0 : i32
    return %c0_i32, %c0_i32_0 : i32, i32
  }
  func.func @transform_15(%arg0: i32) -> (i32, i32) {
    %c0_i32 = arith.constant 0 : i32
    %c0_i32_0 = arith.constant 0 : i32
    %c0_i32_1 = arith.constant 0 : i32
    return %c0_i32, %c0_i32_0 : i32, i32
  }
  func.func @transform_16(%arg0: i32) -> (i32, i32) {
    %c0_i32 = arith.constant 0 : i32
    %c0_i32_0 = arith.constant 0 : i32
    %c0_i32_1 = arith.constant 0 : i32
    return %c0_i32, %c0_i32_0 : i32, i32
  }
  func.func @transform_17(%arg0: i32) -> (i32, i32) {
    %c0_i32 = arith.constant 0 : i32
    %c0_i32_0 = arith.constant 0 : i32
    %c0_i32_1 = arith.constant 0 : i32
    return %c0_i32, %c0_i32_0 : i32, i32
  }
  func.func @transform_18(%arg0: i32) -> (i32, i32) {
    %c0_i32 = arith.constant 0 : i32
    %c0_i32_0 = arith.constant 0 : i32
    %c0_i32_1 = arith.constant 0 : i32
    return %c0_i32, %c0_i32_0 : i32, i32
  }
  func.func @transform_19(%arg0: i32) -> (i32, i32) {
    %c0_i32 = arith.constant 0 : i32
    %c0_i32_0 = arith.constant 0 : i32
    %c0_i32_1 = arith.constant 0 : i32
    return %c0_i32, %c0_i32_0 : i32, i32
  }
  func.func @transform_20(%arg0: i32) -> (i32, i32) {
    %c0_i32 = arith.constant 0 : i32
    %c0_i32_0 = arith.constant 0 : i32
    %c0_i32_1 = arith.constant 0 : i32
    return %c0_i32, %c0_i32_0 : i32, i32
  }
  func.func @transform_21(%arg0: i32) -> (i32, i32) {
    %c0_i32 = arith.constant 0 : i32
    %c0_i32_0 = arith.constant 0 : i32
    %c0_i32_1 = arith.constant 0 : i32
    return %c0_i32, %c0_i32_0 : i32, i32
  }
  func.func @transform_22(%arg0: i32) -> (i32, i32) {
    %c0_i32 = arith.constant 0 : i32
    %c0_i32_0 = arith.constant 0 : i32
    %c0_i32_1 = arith.constant 0 : i32
    return %c0_i32, %c0_i32_0 : i32, i32
  }
  func.func @transform_23(%arg0: i32) -> (i32, i32) {
    %c0_i32 = arith.constant 0 : i32
    %c0_i32_0 = arith.constant 0 : i32
    %c0_i32_1 = arith.constant 0 : i32
    return %c0_i32, %c0_i32_0 : i32, i32
  }
  func.func @transform_24(%arg0: i32) -> (i32, i32) {
    %c0_i32 = arith.constant 0 : i32
    %c0_i32_0 = arith.constant 0 : i32
    %c0_i32_1 = arith.constant 0 : i32
    return %c0_i32, %c0_i32_0 : i32, i32
  }
  func.func @transform_25(%arg0: i32) -> (i32, i32) {
    %c0_i32 = arith.constant 0 : i32
    %c0_i32_0 = arith.constant 0 : i32
    %c0_i32_1 = arith.constant 0 : i32
    return %c0_i32, %c0_i32_0 : i32, i32
  }
  func.func @transform_26(%arg0: i32) -> (i32, i32) {
    %c0_i32 = arith.constant 0 : i32
    %c0_i32_0 = arith.constant 0 : i32
    %c0_i32_1 = arith.constant 0 : i32
    return %c0_i32, %c0_i32_0 : i32, i32
  }
  func.func @transform_27(%arg0: i32) -> (i32, i32) {
    %c0_i32 = arith.constant 0 : i32
    %c0_i32_0 = arith.constant 0 : i32
    %c0_i32_1 = arith.constant 0 : i32
    return %c0_i32, %c0_i32_0 : i32, i32
  }
  func.func @transform_28(%arg0: i32) -> (i32, i32) {
    %c0_i32 = arith.constant 0 : i32
    %c0_i32_0 = arith.constant 0 : i32
    %c0_i32_1 = arith.constant 0 : i32
    return %c0_i32, %c0_i32_0 : i32, i32
  }
  func.func @transform_29(%arg0: i32) -> (i32, i32, i32) {
    %c0_i32 = arith.constant 0 : i32
    %c0_i32_0 = arith.constant 0 : i32
    %c0_i32_1 = arith.constant 0 : i32
    return %arg0, %c0_i32, %c0_i32_0 : i32, i32, i32
  }
}

</mosaic_0001>

<bundles_post_ra>
// kernel: resnet1d_forward.1
= control target key start
LH: loop header
LB: loop body
LE: loop exit
PB: predicated region body
PF: predicated region fallthrough
CT: control target
= control target key end

     0   :  { %s8527_s6 = smov 1   ;;  %s8528_s10 = smov 2   ;;  %s9441_s0 = inlined_call_operand.smem [shape: u32[30], index: -1, kind: input, shape index: {}] }
   0x1   :  { %s8591_s5 = sld [smem:[%s9441_s0]]   ;;  %s8529_s14 = smov 3  }
   0x2   :  { %s8596_s9 = sld [smem:[%s9441_s0 + %s8527_s6]]   ;;  %s8530_s18 = smov 4  }
   0x3   :  { %s8601_s13 = sld [smem:[%s9441_s0 + %s8528_s10]]   ;;  %s8531_s22 = smov 5  }
   0x4   :  { %s8606_s17 = sld [smem:[%s9441_s0 + %s8529_s14]]   ;;  %s8532_s26 = smov 6  }
   0x5   :  { %s8611_s21 = sld [smem:[%s9441_s0 + %s8530_s18]]   ;;  %s8533_s30 = smov 7  }
   0x6   :  { %s8616_s25 = sld [smem:[%s9441_s0 + %s8531_s22]]   ;;  %s8534_s4 = smov 8  }
   0x7   :  { %9452 = sst [smem:[#allocation51_spill]] %s8591_s5  ;;  %s8535_s10 = smov 9  }
   0x8   :  { %s8621_s29 = sld [smem:[%s9441_s0 + %s8532_s26]]   ;;  %s8536_s15 = smov 10  }
   0x9   :  { %9453 = sst [smem:[#allocation52_spill]] %s8601_s13  ;;  %s8537_s20 = smov 11  }
   0xa   :  { %9454 = sst [smem:[#allocation53_spill]] %s8606_s17  ;;  %s8538_s26 = smov 12  }
   0xb   :  { %s8626_s3 = sld [smem:[%s9441_s0 + %s8533_s30]]   ;;  %s8539_s1 = smov 13  }
   0xc   :  { %s8631_s8 = sld [smem:[%s9441_s0 + %s8534_s4]]   ;;  %s8540_s7 = smov 14  }
   0xd   :  { %s8636_s14 = sld [smem:[%s9441_s0 + %s8535_s10]]   ;;  %s8542_s22 = smov 16  }
   0xe   :  { %s8641_s19 = sld [smem:[%s9441_s0 + %s8536_s15]]   ;;  %s8541_s15 = smov 15  }
   0xf   :  { %s8646_s24 = sld [smem:[%s9441_s0 + %s8537_s20]]   ;;  %s8543_s28 = smov 17  }
  0x10   :  { %s8651_s30 = sld [smem:[%s9441_s0 + %s8538_s26]]  }
  0x11   :  { %s8656_s6 = sld [smem:[%s9441_s0 + %s8539_s1]]  }
  0x12   :  { %s8661_s12 = sld [smem:[%s9441_s0 + %s8540_s7]]   ;;  %s8544_s7 = smov 18  }
  0x13   :  { %s8666_s20 = sld [smem:[%s9441_s0 + %s8541_s15]]   ;;  %s8545_s15 = smov 19  }
  0x14   :  { %s8671_s27 = sld [smem:[%s9441_s0 + %s8542_s22]]   ;;  %s8546_s22 = smov 20  }
  0x15   :  { %9455 = sst [smem:[#allocation54_spill]] %s8646_s24 }
  0x16   :  { %s8676_s4 = sld [smem:[%s9441_s0 + %s8543_s28]]   ;;  %s8547_s28 = smov 21  }
  0x17   :  { %9456 = sst [smem:[#allocation55_spill]] %s8656_s6 }
  0x18   :  { %s8681_s13 = sld [smem:[%s9441_s0 + %s8544_s7]]   ;;  %s8548_s7 = smov 22  }
  0x19   :  { %9457 = sst [smem:[#allocation56_spill]] %s8666_s20 }
  0x1a   :  { %s8686_s17 = sld [smem:[%s9441_s0 + %s8545_s15]]   ;;  %s8549_s15 = smov 23  }
  0x1b   :  { %s8691_s5 = sld [smem:[%s9441_s0 + %s8546_s22]]   ;;  %s8550_s22 = smov 24  }
  0x1c   :  { %9458 = sst [smem:[#allocation57_spill]] %s8676_s4 }
  0x1d   :  { %s8696_s4 = sld [smem:[%s9441_s0 + %s8547_s28]]   ;;  %s8551_s28 = smov 25  }
  0x1e   :  { %s8701_s20 = sld [smem:[%s9441_s0 + %s8548_s7]]   ;;  %s8552_s7 = smov 26  }
  0x1f   :  { %s8716_s6 = sld [smem:[%s9441_s0 + %s8551_s28]]   ;;  %s8555_s28 = smov 29  }
  0x20   :  { %9459 = sst [smem:[#allocation58_spill]] %s8686_s17 }
  0x21   :  { %9460 = sst [smem:[#allocation59_spill]] %s8691_s5 }
  0x22   :  { %s8706_s17 = sld [smem:[%s9441_s0 + %s8549_s15]]   ;;  %s8553_s15 = smov 27  }
  0x23   :  { %s8711_s5 = sld [smem:[%s9441_s0 + %s8550_s22]]   ;;  %s8554_s22 = smov 28  }
  0x24   :  { %9461 = sst [smem:[#allocation60_spill]] %s8701_s20 }
  0x25   :  { %9463 = sst [smem:[#allocation62_spill]] %s8716_s6 }
  0x26   :  { %s8721_s20 = sld [smem:[%s9441_s0 + %s8552_s7]]  }
  0x27   :  { %s8726_s24 = sld [smem:[%s9441_s0 + %s8553_s15]]  }
  0x28   :  { %s8736_s6 = sld [smem:[%s9441_s0 + %s8555_s28]]  }
  0x29   :  { %9462 = sst [smem:[#allocation61_spill]] %s8711_s5 }
  0x2a   :  { %s8731_s5 = sld [smem:[%s9441_s0 + %s8554_s22]]  }
  0x2b   :  { %64 = vsyncpa [#allocation3], 0 }
  0x2c   :  { %65 = vsyncpa [#allocation6], 0 }
  0x2d   :  { %66 = vsyncpa [#allocation9], 0 }
  0x2e   :  { %67 = vsyncpa [#allocation12], 0 }
  0x2f   :  { %68 = vsyncpa [#allocation15], 0 }
  0x30   :  { %69 = vsyncpa [#allocation18], 0 }
  0x31   :  { %70 = vsyncpa [#allocation21], 0 }
  0x32   :  { %71 = vsyncpa [#allocation24], 0 }
  0x33   :  { %72 = vsyncpa [#allocation27], 0 }
  0x34   :  { %73 = vsyncpa [#allocation30], 0 }
  0x35   :  { %74 = vsyncpa [#allocation33], 0 }
  0x36   :  { %75 = vsyncpa [#allocation36], 0 }
  0x37   :  { %76 = vsyncpa [#allocation4], 0  ;;  %s8556_s7 = smov [#allocation5]   ;;  %s8557_s0 = smov [#allocation8]  }
  0x38   :  { %s101_s10 = sshll.u32 %s8556_s7, 4  ;;  %s123_s11 = sshll.u32 %s8557_s0, 4  ;;  %s102_s10 = int_to_ptr.vmem [resolvable:$true] %s101_s10  ;;  %s124_s11 = int_to_ptr.vmem [resolvable:$true] %s123_s11 }
  0x39   :  { %s7995_s15 = scalar_lea.hbm %s8611_s21, 16 }
  0x3a   :  { %p7996_p0 = scmp.ne.s32.totalorder %s8611_s21, %s7995_s15  ;;  %p7999_p1 = scmp.lt.u32.totalorder %s7995_s15, %s8611_s21 }
  0x3c   :  { %p8001_p2 = pnand %p7999_p1, %p7996_p0 }
  0x3e   :  { %8004 = shalt.err (!%p8001_p2)
}
  0x3f   :  { %s8005_s16 = scalar_lea.vmem %s102_s10, 16  ;;  %s8009_s18 = scalar_lea.vmem %s102_s10, 32 }
  0x40   :  { %p8006_p3 = scmp.ne.s32.totalorder %s102_s10, %s8005_s16  ;;  %p8010_p4 = scmp.lt.s32.totalorder %s102_s10, %s102_s10 }
  0x41   :  { %p8011_p5 = scmp.lt.s32.totalorder %s8009_s18, %s8005_s16 }
  0x43   :  { %p8012_p6 = por %p8011_p5, %p8010_p4 }
  0x45   :  { %p8013_p7 = pnand %p8012_p6, %p8006_p3 }
  0x47   :  { %8016 = shalt.err (!%p8013_p7)
}
  0x48   :  { %104 = dma.hbm_to_vmem [thread:$0]  %s8611_s21, 16, %s102_s10, [#allocation6]  }
  0x49   :  { %s8017_s22 = scalar_lea.hbm %s8621_s29, 16 }
  0x4a   :  { %p8018_p8 = scmp.ne.s32.totalorder %s8621_s29, %s8017_s22  ;;  %p8021_p9 = scmp.lt.u32.totalorder %s8017_s22, %s8621_s29 }
  0x4c   :  { %p8023_p10 = pnand %p8021_p9, %p8018_p8 }
  0x4e   :  { %8026 = shalt.err (!%p8023_p10)
}
  0x4f   :  { %s8027_s23 = scalar_lea.vmem %s124_s11, 16  ;;  %s8031_s26 = scalar_lea.vmem %s124_s11, 32 }
  0x50   :  { %p8028_p11 = scmp.ne.s32.totalorder %s124_s11, %s8027_s23  ;;  %p8032_p12 = scmp.lt.s32.totalorder %s124_s11, %s124_s11 }
  0x51   :  { %p8033_p13 = scmp.lt.s32.totalorder %s8031_s26, %s8027_s23 }
  0x53   :  { %p8034_p0 = por %p8033_p13, %p8032_p12 }
  0x55   :  { %p8035_p1 = pnand %p8034_p0, %p8028_p11 }
  0x57   :  { %8038 = shalt.err (!%p8035_p1)
}
  0x58   :  { %126 = dma.hbm_to_vmem [thread:$0]  %s8621_s29, 16, %s124_s11, [#allocation9]  }
  0x59   :  { %s8558_s28 = smov [#allocation11]   ;;  %s8559_s1 = smov [#allocation14]  }
  0x5a   :  { %s145_s21 = sshll.u32 %s8558_s28, 4  ;;  %s167_s2 = sshll.u32 %s8559_s1, 4  ;;  %s146_s21 = int_to_ptr.vmem [resolvable:$true] %s145_s21  ;;  %s168_s2 = int_to_ptr.vmem [resolvable:$true] %s167_s2 }
  0x5b   :  { %s8039_s7 = scalar_lea.hbm %s8631_s8, 16 }
  0x5c   :  { %p8040_p2 = scmp.ne.s32.totalorder %s8631_s8, %s8039_s7  ;;  %p8043_p3 = scmp.lt.u32.totalorder %s8039_s7, %s8631_s8 }
  0x5e   :  { %p8045_p4 = pnand %p8043_p3, %p8040_p2 }
  0x60   :  { %8048 = shalt.err (!%p8045_p4)
}
  0x61   :  { %s8049_s10 = scalar_lea.vmem %s146_s21, 16  ;;  %s8053_s0 = scalar_lea.vmem %s146_s21, 32 }
  0x62   :  { %p8050_p5 = scmp.ne.s32.totalorder %s146_s21, %s8049_s10  ;;  %p8054_p6 = scmp.lt.s32.totalorder %s146_s21, %s146_s21 }
  0x63   :  { %p8055_p7 = scmp.lt.s32.totalorder %s8053_s0, %s8049_s10 }
  0x65   :  { %p8056_p8 = por %p8055_p7, %p8054_p6 }
  0x67   :  { %p8057_p9 = pnand %p8056_p8, %p8050_p5 }
  0x69   :  { %8060 = shalt.err (!%p8057_p9)
}
  0x6a   :  { %148 = dma.hbm_to_vmem [thread:$0]  %s8631_s8, 16, %s146_s21, [#allocation12]  }
  0x6b   :  { %s8061_s29 = scalar_lea.hbm %s8641_s19, 16 }
  0x6c   :  { %p8062_p10 = scmp.ne.s32.totalorder %s8641_s19, %s8061_s29  ;;  %p8065_p11 = scmp.lt.u32.totalorder %s8061_s29, %s8641_s19 }
  0x6e   :  { %p8067_p12 = pnand %p8065_p11, %p8062_p10 }
  0x70   :  { %8070 = shalt.err (!%p8067_p12)
}
  0x71   :  { %s8071_s11 = scalar_lea.vmem %s168_s2, 16  ;;  %s8075_s15 = scalar_lea.vmem %s168_s2, 32 }
  0x72   :  { %p8072_p13 = scmp.ne.s32.totalorder %s168_s2, %s8071_s11  ;;  %p8076_p0 = scmp.lt.s32.totalorder %s168_s2, %s168_s2 }
  0x73   :  { %p8077_p1 = scmp.lt.s32.totalorder %s8075_s15, %s8071_s11 }
  0x75   :  { %p8078_p2 = por %p8077_p1, %p8076_p0 }
  0x77   :  { %p8079_p3 = pnand %p8078_p2, %p8072_p13 }
  0x79   :  { %8082 = shalt.err (!%p8079_p3)
}
  0x7a   :  { %170 = dma.hbm_to_vmem [thread:$0]  %s8641_s19, 16, %s168_s2, [#allocation15]  }
  0x7b   :  { %s8560_s16 = smov [#allocation17]   ;;  %s8561_s18 = smov [#allocation20]  }
  0x7c   :  { %s189_s8 = sshll.u32 %s8560_s16, 4  ;;  %s211_s22 = sshll.u32 %s8561_s18, 4  ;;  %s190_s8 = int_to_ptr.vmem [resolvable:$true] %s189_s8  ;;  %s212_s22 = int_to_ptr.vmem [resolvable:$true] %s211_s22 }
  0x7d   :  { %s8083_s23 = scalar_lea.hbm %s8651_s30, 16 }
  0x7e   :  { %p8084_p4 = scmp.ne.s32.totalorder %s8651_s30, %s8083_s23  ;;  %p8087_p5 = scmp.lt.u32.totalorder %s8083_s23, %s8651_s30 }
  0x80   :  { %p8089_p6 = pnand %p8087_p5, %p8084_p4 }
  0x82   :  { %8092 = shalt.err (!%p8089_p6)
}
  0x83   :  { %s8093_s26 = scalar_lea.vmem %s190_s8, 16  ;;  %s8097_s28 = scalar_lea.vmem %s190_s8, 32 }
  0x84   :  { %p8094_p7 = scmp.ne.s32.totalorder %s190_s8, %s8093_s26  ;;  %p8098_p8 = scmp.lt.s32.totalorder %s190_s8, %s190_s8 }
  0x85   :  { %p8099_p9 = scmp.lt.s32.totalorder %s8097_s28, %s8093_s26 }
  0x87   :  { %p8100_p10 = por %p8099_p9, %p8098_p8 }
  0x89   :  { %p8101_p11 = pnand %p8100_p10, %p8094_p7 }
  0x8b   :  { %8104 = shalt.err (!%p8101_p11)
}
  0x8c   :  { %192 = dma.hbm_to_vmem [thread:$0]  %s8651_s30, 16, %s190_s8, [#allocation18]  }
  0x8d   :  { %s8105_s19 = scalar_lea.hbm %s8661_s12, 16 }
  0x8e   :  { %p8106_p12 = scmp.ne.s32.totalorder %s8661_s12, %s8105_s19  ;;  %p8109_p13 = scmp.lt.u32.totalorder %s8105_s19, %s8661_s12 }
  0x90   :  { %p8111_p0 = pnand %p8109_p13, %p8106_p12 }
  0x92   :  { %8114 = shalt.err (!%p8111_p0)
}
  0x93   :  { %s8115_s21 = scalar_lea.vmem %s212_s22, 16  ;;  %s8119_s1 = scalar_lea.vmem %s212_s22, 32 }
  0x94   :  { %p8116_p1 = scmp.ne.s32.totalorder %s212_s22, %s8115_s21  ;;  %p8120_p2 = scmp.lt.s32.totalorder %s212_s22, %s212_s22 }
  0x95   :  { %p8121_p3 = scmp.lt.s32.totalorder %s8119_s1, %s8115_s21 }
  0x97   :  { %p8122_p4 = por %p8121_p3, %p8120_p2 }
  0x99   :  { %p8123_p5 = pnand %p8122_p4, %p8116_p1 }
  0x9b   :  { %8126 = shalt.err (!%p8123_p5)
}
  0x9c   :  { %214 = dma.hbm_to_vmem [thread:$0]  %s8661_s12, 16, %s212_s22, [#allocation21]  }
  0x9d   :  { %s8562_s2 = smov [#allocation23]   ;;  %s8563_s7 = smov [#allocation26]  }
  0x9e   :  { %s233_s30 = sshll.u32 %s8562_s2, 4  ;;  %s255_s10 = sshll.u32 %s8563_s7, 4  ;;  %s234_s30 = int_to_ptr.vmem [resolvable:$true] %s233_s30  ;;  %s256_s10 = int_to_ptr.vmem [resolvable:$true] %s255_s10 }
  0x9f   :  { %s8127_s0 = scalar_lea.hbm %s8671_s27, 16 }
  0xa0   :  { %p8128_p6 = scmp.ne.s32.totalorder %s8671_s27, %s8127_s0  ;;  %p8131_p7 = scmp.lt.u32.totalorder %s8127_s0, %s8671_s27 }
  0xa2   :  { %p8133_p8 = pnand %p8131_p7, %p8128_p6 }
  0xa4   :  { %8136 = shalt.err (!%p8133_p8)
}
  0xa5   :  { %s8137_s29 = scalar_lea.vmem %s234_s30, 16  ;;  %s8141_s11 = scalar_lea.vmem %s234_s30, 32 }
  0xa6   :  { %p8138_p9 = scmp.ne.s32.totalorder %s234_s30, %s8137_s29  ;;  %p8142_p10 = scmp.lt.s32.totalorder %s234_s30, %s234_s30 }
  0xa7   :  { %p8143_p11 = scmp.lt.s32.totalorder %s8141_s11, %s8137_s29 }
  0xa9   :  { %p8144_p12 = por %p8143_p11, %p8142_p10 }
  0xab   :  { %p8145_p13 = pnand %p8144_p12, %p8138_p9 }
  0xad   :  { %8148 = shalt.err (!%p8145_p13)
}
  0xae   :  { %236 = dma.hbm_to_vmem [thread:$0]  %s8671_s27, 16, %s234_s30, [#allocation24]  }
  0xaf   :  { %s8149_s12 = scalar_lea.hbm %s8681_s13, 16 }
  0xb0   :  { %p8150_p0 = scmp.ne.s32.totalorder %s8681_s13, %s8149_s12  ;;  %p8153_p1 = scmp.lt.u32.totalorder %s8149_s12, %s8681_s13 }
  0xb2   :  { %p8155_p2 = pnand %p8153_p1, %p8150_p0 }
  0xb4   :  { %8158 = shalt.err (!%p8155_p2)
}
  0xb5   :  { %s8159_s15 = scalar_lea.vmem %s256_s10, 16  ;;  %s8163_s16 = scalar_lea.vmem %s256_s10, 32 }
  0xb6   :  { %p8160_p3 = scmp.ne.s32.totalorder %s256_s10, %s8159_s15  ;;  %p8164_p4 = scmp.lt.s32.totalorder %s256_s10, %s256_s10 }
  0xb7   :  { %p8165_p5 = scmp.lt.s32.totalorder %s8163_s16, %s8159_s15 }
  0xb9   :  { %p8166_p6 = por %p8165_p5, %p8164_p4 }
  0xbb   :  { %p8167_p7 = pnand %p8166_p6, %p8160_p3 }
  0xbd   :  { %8170 = shalt.err (!%p8167_p7)
}
  0xbe   :  { %258 = dma.hbm_to_vmem [thread:$0]  %s8681_s13, 16, %s256_s10, [#allocation27]  }
  0xbf   :  { %s8564_s8 = smov [#allocation29]   ;;  %s8565_s18 = smov [#allocation32]  }
  0xc0   :  { %s276_s27 = sshll.u32 %s8564_s8, 4  ;;  %s298_s22 = sshll.u32 %s8565_s18, 4  ;;  %s277_s27 = int_to_ptr.vmem [resolvable:$true] %s276_s27  ;;  %s8770_s22 = int_to_ptr.vmem [resolvable:$true] %s298_s22 }
  0xc1   :  { %s8171_s23 = scalar_lea.hbm %s8696_s4, 3072 }
  0xc2   :  { %p8172_p8 = scmp.ne.s32.totalorder %s8696_s4, %s8171_s23  ;;  %p8175_p9 = scmp.lt.u32.totalorder %s8171_s23, %s8696_s4 }
  0xc4   :  { %p8177_p10 = pnand %p8175_p9, %p8172_p8 }
  0xc6   :  { %8180 = shalt.err (!%p8177_p10)
}
  0xc7   :  { %s8181_s26 = scalar_lea.vmem %s277_s27, 3072  ;;  %p8186_p12 = scmp.lt.s32.totalorder %s277_s27, %s277_s27 }
  0xc8   :  { %p8182_p11 = scmp.ne.s32.totalorder %s277_s27, %s8181_s26  ;;  %p8187_p13 = scmp.lt.s32.totalorder %s8181_s26, %s8181_s26 }
  0xca   :  { %p8188_p0 = por %p8187_p13, %p8186_p12 }
  0xcc   :  { %p8189_p1 = pnand %p8188_p0, %p8182_p11 }
  0xce   :  { %8192 = shalt.err (!%p8189_p1)
}
  0xcf   :  { %s8566_s13 = smov 64   ;;  %s8567_s28 = smov 4  }
  0xd0   :  { %282 = dma.hbm_to_vmem [thread:$0]  %s8696_s4, 3072, %s277_s27, [#allocation30], %s8566_s13, %s8566_s13, %s8567_s28  }
  0xd1   :  { %s8193_s19 = scalar_lea.hbm %s8706_s17, 1024 }
  0xd2   :  { %p8194_p2 = scmp.ne.s32.totalorder %s8706_s17, %s8193_s19  ;;  %p8197_p3 = scmp.lt.u32.totalorder %s8193_s19, %s8706_s17 }
  0xd4   :  { %p8199_p4 = pnand %p8197_p3, %p8194_p2 }
  0xd6   :  { %8202 = shalt.err (!%p8199_p4)
}
  0xd7   :  { %s8203_s21 = scalar_lea.vmem %s8770_s22, 1024  ;;  %p8208_p6 = scmp.lt.s32.totalorder %s8770_s22, %s8770_s22 }
  0xd8   :  { %p8204_p5 = scmp.ne.s32.totalorder %s8770_s22, %s8203_s21  ;;  %p8209_p7 = scmp.lt.s32.totalorder %s8203_s21, %s8203_s21 }
  0xda   :  { %p8210_p8 = por %p8209_p7, %p8208_p6 }
  0xdc   :  { %p8211_p9 = pnand %p8210_p8, %p8204_p5 }
  0xde   :  { %8214 = shalt.err (!%p8211_p9)
}
  0xdf   :  { %304 = dma.hbm_to_vmem [thread:$0]  %s8706_s17, 1024, %s8770_s22, [#allocation33], %s8566_s13, %s8566_s13, %s8567_s28  }
  0xe0   :  { %s8568_s4 = smov [#allocation2]   ;;  %s8569_s2 = smov [#allocation7]  }
  0xe1   :  { %s84_s1 = sshll.u32 %s8568_s4, 4  ;;  %s110_s30 = sshll.u32 %s8569_s2, 4  ;;  %s85_s1 = int_to_ptr.vmem [resolvable:$true] %s84_s1  ;;  %s8791_s30 = int_to_ptr.vmem [resolvable:$true] %s110_s30 }
  0xe2   :  { %s8215_s7 = scalar_lea.hbm %s8596_s9, 1024 }
  0xe3   :  { %p8216_p10 = scmp.ne.s32.totalorder %s8596_s9, %s8215_s7  ;;  %p8219_p11 = scmp.lt.u32.totalorder %s8215_s7, %s8596_s9 }
  0xe5   :  { %p8221_p12 = pnand %p8219_p11, %p8216_p10 }
  0xe7   :  { %8224 = shalt.err (!%p8221_p12)
}
  0xe8   :  { %s8225_s10 = scalar_lea.vmem %s85_s1, 1024  ;;  %p8230_p0 = scmp.lt.s32.totalorder %s85_s1, %s85_s1 }
  0xe9   :  { %p8226_p13 = scmp.ne.s32.totalorder %s85_s1, %s8225_s10  ;;  %p8231_p1 = scmp.lt.s32.totalorder %s8225_s10, %s8225_s10 }
  0xeb   :  { %p8232_p2 = por %p8231_p1, %p8230_p0 }
  0xed   :  { %p8233_p3 = pnand %p8232_p2, %p8226_p13 }
  0xef   :  { %8236 = shalt.err (!%p8233_p3)
}
  0xf0   :  { %90 = dma.hbm_to_vmem [thread:$0]  %s8596_s9, 1024, %s85_s1, [#allocation3], %s8566_s13, %s8566_s13, %s8567_s28  }
  0xf1   :  { %s8237_s17 = scalar_lea.hbm %s8616_s25, 5120 }
  0xf2   :  { %p8238_p4 = scmp.ne.s32.totalorder %s8616_s25, %s8237_s17  ;;  %p8241_p5 = scmp.lt.u32.totalorder %s8237_s17, %s8616_s25 }
  0xf4   :  { %p8243_p6 = pnand %p8241_p5, %p8238_p4 }
  0xf6   :  { %8246 = shalt.err (!%p8243_p6)
}
  0xf7   :  { %s8247_s0 = scalar_lea.vmem %s8791_s30, 5120  ;;  %p8252_p8 = scmp.lt.s32.totalorder %s8791_s30, %s8791_s30 }
  0xf8   :  { %p8248_p7 = scmp.ne.s32.totalorder %s8791_s30, %s8247_s0  ;;  %p8253_p9 = scmp.lt.s32.totalorder %s8247_s0, %s8247_s0 }
  0xfa   :  { %p8254_p10 = por %p8253_p9, %p8252_p8 }
  0xfc   :  { %p8255_p11 = pnand %p8254_p10, %p8248_p7 }
  0xfe   :  { %8258 = shalt.err (!%p8255_p11)
}
  0xff   :  { %116 = dma.hbm_to_vmem [thread:$0]  %s8616_s25, 5120, %s8791_s30, [#allocation6], %s8566_s13, %s8566_s13, %s8567_s28  }
 0x100   :  { %s8570_s9 = smov [#allocation10]   ;;  %s8571_s11 = smov [#allocation13]  }
 0x101   :  { %s132_s29 = sshll.u32 %s8570_s9, 4  ;;  %s154_s12 = sshll.u32 %s8571_s11, 4  ;;  %s133_s29 = int_to_ptr.vmem [resolvable:$true] %s132_s29  ;;  %s8812_s12 = int_to_ptr.vmem [resolvable:$true] %s154_s12 }
 0x102   :  { %s8259_s15 = scalar_lea.hbm %s8626_s3, 3072 }
 0x103   :  { %p8260_p12 = scmp.ne.s32.totalorder %s8626_s3, %s8259_s15  ;;  %p8263_p13 = scmp.lt.u32.totalorder %s8259_s15, %s8626_s3 }
 0x105   :  { %p8265_p0 = pnand %p8263_p13, %p8260_p12 }
 0x107   :  { %8268 = shalt.err (!%p8265_p0)
}
 0x108   :  { %s8269_s16 = scalar_lea.vmem %s133_s29, 3072  ;;  %p8274_p2 = scmp.lt.s32.totalorder %s133_s29, %s133_s29 }
 0x109   :  { %p8270_p1 = scmp.ne.s32.totalorder %s133_s29, %s8269_s16  ;;  %p8275_p3 = scmp.lt.s32.totalorder %s8269_s16, %s8269_s16 }
 0x10b   :  { %p8276_p4 = por %p8275_p3, %p8274_p2 }
 0x10d   :  { %p8277_p5 = pnand %p8276_p4, %p8270_p1 }
 0x10f   :  { %8280 = shalt.err (!%p8277_p5)
}
 0x110   :  { %138 = dma.hbm_to_vmem [thread:$0]  %s8626_s3, 3072, %s133_s29, [#allocation9], %s8566_s13, %s8566_s13, %s8567_s28  }
 0x111   :  { %s8281_s25 = scalar_lea.hbm %s8636_s14, 7168 }
 0x112   :  { %p8282_p6 = scmp.ne.s32.totalorder %s8636_s14, %s8281_s25  ;;  %p8285_p7 = scmp.lt.u32.totalorder %s8281_s25, %s8636_s14 }
 0x114   :  { %p8287_p8 = pnand %p8285_p7, %p8282_p6 }
 0x116   :  { %8290 = shalt.err (!%p8287_p8)
}
 0x117   :  { %s8291_s8 = scalar_lea.vmem %s8812_s12, 7168  ;;  %p8296_p10 = scmp.lt.s32.totalorder %s8812_s12, %s8812_s12 }
 0x118   :  { %p8292_p9 = scmp.ne.s32.totalorder %s8812_s12, %s8291_s8  ;;  %p8297_p11 = scmp.lt.s32.totalorder %s8291_s8, %s8291_s8 }
 0x11a   :  { %p8298_p12 = por %p8297_p11, %p8296_p10 }
 0x11c   :  { %p8299_p13 = pnand %p8298_p12, %p8292_p9 }
 0x11e   :  { %8302 = shalt.err (!%p8299_p13)
}
 0x11f   :  { %s9464_s3 = sld [smem:[#allocation54_spill]]  ;;  %s8572_s27 = smov [#allocation16]  }
 0x120   :  { %160 = dma.hbm_to_vmem [thread:$0]  %s8636_s14, 7168, %s8812_s12, [#allocation12], %s8566_s13, %s8566_s13, %s8567_s28  }
 0x121   :  { %s176_s18 = sshll.u32 %s8572_s27, 4  ;;  %s8573_s22 = smov [#allocation19]   ;;  %s177_s18 = int_to_ptr.vmem [resolvable:$true] %s176_s18 }
 0x122   :  { %s198_s23 = sshll.u32 %s8573_s22, 4  ;;  %s8833_s23 = int_to_ptr.vmem [resolvable:$true] %s198_s23 }
 0x125   :  { %s8303_s26 = scalar_lea.hbm %s9464_s3, 5120 }
 0x126   :  { %p8304_p0 = scmp.ne.s32.totalorder %s9464_s3, %s8303_s26  ;;  %p8307_p1 = scmp.lt.u32.totalorder %s8303_s26, %s9464_s3 }
 0x128   :  { %p8309_p2 = pnand %p8307_p1, %p8304_p0 }
 0x12a   :  { %8312 = shalt.err (!%p8309_p2)
}
 0x12b   :  { %s8313_s19 = scalar_lea.vmem %s177_s18, 5120  ;;  %p8318_p4 = scmp.lt.s32.totalorder %s177_s18, %s177_s18 }
 0x12c   :  { %p8314_p3 = scmp.ne.s32.totalorder %s177_s18, %s8313_s19  ;;  %p8319_p5 = scmp.lt.s32.totalorder %s8313_s19, %s8313_s19 }
 0x12e   :  { %p8320_p6 = por %p8319_p5, %p8318_p4 }
 0x130   :  { %p8321_p7 = pnand %p8320_p6, %p8314_p3 }
 0x132   :  { %8324 = shalt.err (!%p8321_p7)
}
 0x133   :  { %s9465_s14 = sld [smem:[#allocation55_spill]] }
 0x134   :  { %182 = dma.hbm_to_vmem [thread:$0]  %s9464_s3, 5120, %s177_s18, [#allocation15], %s8566_s13, %s8566_s13, %s8567_s28  }
 0x139   :  { %s8325_s21 = scalar_lea.hbm %s9465_s14, 3072 }
 0x13a   :  { %p8326_p8 = scmp.ne.s32.totalorder %s9465_s14, %s8325_s21  ;;  %p8329_p9 = scmp.lt.u32.totalorder %s8325_s21, %s9465_s14 }
 0x13c   :  { %p8331_p10 = pnand %p8329_p9, %p8326_p8 }
 0x13e   :  { %8334 = shalt.err (!%p8331_p10)
}
 0x13f   :  { %s8335_s4 = scalar_lea.vmem %s8833_s23, 3072  ;;  %p8340_p12 = scmp.lt.s32.totalorder %s8833_s23, %s8833_s23 }
 0x140   :  { %p8336_p11 = scmp.ne.s32.totalorder %s8833_s23, %s8335_s4  ;;  %p8341_p13 = scmp.lt.s32.totalorder %s8335_s4, %s8335_s4 }
 0x142   :  { %p8342_p0 = por %p8341_p13, %p8340_p12 }
 0x144   :  { %p8343_p1 = pnand %p8342_p0, %p8336_p11 }
 0x146   :  { %8346 = shalt.err (!%p8343_p1)
}
 0x147   :  { %s9466_s1 = sld [smem:[#allocation56_spill]]  ;;  %s8574_s2 = smov [#allocation22]  }
 0x148   :  { %204 = dma.hbm_to_vmem [thread:$0]  %s9465_s14, 3072, %s8833_s23, [#allocation18], %s8566_s13, %s8566_s13, %s8567_s28  }
 0x149   :  { %s220_s30 = sshll.u32 %s8574_s2, 4  ;;  %s8575_s7 = smov [#allocation25]   ;;  %s221_s30 = int_to_ptr.vmem [resolvable:$true] %s220_s30 }
 0x14a   :  { %s242_s10 = sshll.u32 %s8575_s7, 4  ;;  %s8854_s10 = int_to_ptr.vmem [resolvable:$true] %s242_s10 }
 0x14d   :  { %s8347_s17 = scalar_lea.hbm %s9466_s1, 1024 }
 0x14e   :  { %p8348_p2 = scmp.ne.s32.totalorder %s9466_s1, %s8347_s17  ;;  %p8351_p3 = scmp.lt.u32.totalorder %s8347_s17, %s9466_s1 }
 0x150   :  { %p8353_p4 = pnand %p8351_p3, %p8348_p2 }
 0x152   :  { %8356 = shalt.err (!%p8353_p4)
}
 0x153   :  { %s8357_s0 = scalar_lea.vmem %s221_s30, 1024  ;;  %p8362_p6 = scmp.lt.s32.totalorder %s221_s30, %s221_s30 }
 0x154   :  { %p8358_p5 = scmp.ne.s32.totalorder %s221_s30, %s8357_s0  ;;  %p8363_p7 = scmp.lt.s32.totalorder %s8357_s0, %s8357_s0 }
 0x156   :  { %p8364_p8 = por %p8363_p7, %p8362_p6 }
 0x158   :  { %p8365_p9 = pnand %p8364_p8, %p8358_p5 }
 0x15a   :  { %8368 = shalt.err (!%p8365_p9)
}
 0x15b   :  { %s9467_s9 = sld [smem:[#allocation57_spill]] }
 0x15c   :  { %226 = dma.hbm_to_vmem [thread:$0]  %s9466_s1, 1024, %s221_s30, [#allocation21], %s8566_s13, %s8566_s13, %s8567_s28  }
 0x161   :  { %s8369_s29 = scalar_lea.hbm %s9467_s9, 7168 }
 0x162   :  { %p8370_p10 = scmp.ne.s32.totalorder %s9467_s9, %s8369_s29  ;;  %p8373_p11 = scmp.lt.u32.totalorder %s8369_s29, %s9467_s9 }
 0x164   :  { %p8375_p12 = pnand %p8373_p11, %p8370_p10 }
 0x166   :  { %8378 = shalt.err (!%p8375_p12)
}
 0x167   :  { %s8379_s11 = scalar_lea.vmem %s8854_s10, 7168  ;;  %p8384_p0 = scmp.lt.s32.totalorder %s8854_s10, %s8854_s10 }
 0x168   :  { %p8380_p13 = scmp.ne.s32.totalorder %s8854_s10, %s8379_s11  ;;  %p8385_p1 = scmp.lt.s32.totalorder %s8379_s11, %s8379_s11 }
 0x16a   :  { %p8386_p2 = por %p8385_p1, %p8384_p0 }
 0x16c   :  { %p8387_p3 = pnand %p8386_p2, %p8380_p13 }
 0x16e   :  { %8390 = shalt.err (!%p8387_p3)
}
 0x16f   :  { %s9468_s12 = sld [smem:[#allocation59_spill]]  ;;  %s8576_s15 = smov [#allocation28]  }
 0x170   :  { %248 = dma.hbm_to_vmem [thread:$0]  %s9467_s9, 7168, %s8854_s10, [#allocation24], %s8566_s13, %s8566_s13, %s8567_s28  }
 0x171   :  { %s267_s16 = sshll.u32 %s8576_s15, 4  ;;  %s8577_s25 = smov [#allocation31]   ;;  %s268_s16 = int_to_ptr.vmem [resolvable:$true] %s267_s16 }
 0x172   :  { %s289_s8 = sshll.u32 %s8577_s25, 4  ;;  %s290_s8 = int_to_ptr.vmem [resolvable:$true] %s289_s8 }
 0x175   :  { %s8391_s3 = scalar_lea.hbm %s9468_s12, 16 }
 0x176   :  { %p8392_p4 = scmp.ne.s32.totalorder %s9468_s12, %s8391_s3  ;;  %p8395_p5 = scmp.lt.u32.totalorder %s8391_s3, %s9468_s12 }
 0x178   :  { %p8397_p6 = pnand %p8395_p5, %p8392_p4 }
 0x17a   :  { %8400 = shalt.err (!%p8397_p6)
}
 0x17b   :  { %s8401_s27 = scalar_lea.vmem %s268_s16, 16  ;;  %s8405_s18 = scalar_lea.vmem %s268_s16, 32 }
 0x17c   :  { %p8402_p7 = scmp.ne.s32.totalorder %s268_s16, %s8401_s27  ;;  %p8406_p8 = scmp.lt.s32.totalorder %s268_s16, %s268_s16 }
 0x17d   :  { %p8407_p9 = scmp.lt.s32.totalorder %s8405_s18, %s8401_s27 }
 0x17f   :  { %p8408_p10 = por %p8407_p9, %p8406_p8 }
 0x181   :  { %p8409_p11 = pnand %p8408_p10, %p8402_p7 }
 0x183   :  { %8412 = shalt.err (!%p8409_p11)
}
 0x184   :  { %s9469_s22 = sld [smem:[#allocation60_spill]] }
 0x185   :  { %270 = dma.hbm_to_vmem [thread:$0]  %s9468_s12, 16, %s268_s16, [#allocation27]  }
 0x18a   :  { %s8413_s23 = scalar_lea.hbm %s9469_s22, 16 }
 0x18b   :  { %p8414_p12 = scmp.ne.s32.totalorder %s9469_s22, %s8413_s23  ;;  %p8417_p13 = scmp.lt.u32.totalorder %s8413_s23, %s9469_s22 }
 0x18d   :  { %p8419_p0 = pnand %p8417_p13, %p8414_p12 }
 0x18f   :  { %8422 = shalt.err (!%p8419_p0)
}
 0x190   :  { %s8423_s26 = scalar_lea.vmem %s290_s8, 16  ;;  %s8427_s19 = scalar_lea.vmem %s290_s8, 32 }
 0x191   :  { %p8424_p1 = scmp.ne.s32.totalorder %s290_s8, %s8423_s26  ;;  %p8428_p2 = scmp.lt.s32.totalorder %s290_s8, %s290_s8 }
 0x192   :  { %p8429_p3 = scmp.lt.s32.totalorder %s8427_s19, %s8423_s26 }
 0x194   :  { %p8430_p4 = por %p8429_p3, %p8428_p2 }
 0x196   :  { %p8431_p5 = pnand %p8430_p4, %p8424_p1 }
 0x198   :  { %8434 = shalt.err (!%p8431_p5)
}
 0x199   :  { %s9470_s14 = sld [smem:[#allocation62_spill]]  ;;  %s8578_s21 = smov [#allocation34]  }
 0x19a   :  { %292 = dma.hbm_to_vmem [thread:$0]  %s9469_s22, 16, %s290_s8, [#allocation30]  }
 0x19b   :  { %s312_s4 = sshll.u32 %s8578_s21, 4  ;;  %s8579_s1 = smov [#allocation35]   ;;  %s313_s4 = int_to_ptr.vmem [resolvable:$true] %s312_s4 }
 0x19c   :  { %s326_s2 = sshll.u32 %s8579_s1, 4  ;;  %s8883_s2 = int_to_ptr.vmem [resolvable:$true] %s326_s2 }
 0x19f   :  { %s8435_s30 = scalar_lea.hbm %s9470_s14, 1024 }
 0x1a0   :  { %p8436_p6 = scmp.ne.s32.totalorder %s9470_s14, %s8435_s30  ;;  %p8439_p7 = scmp.lt.u32.totalorder %s8435_s30, %s9470_s14 }
 0x1a2   :  { %p8441_p8 = pnand %p8439_p7, %p8436_p6 }
 0x1a4   :  { %8444 = shalt.err (!%p8441_p8)
}
 0x1a5   :  { %s8445_s7 = scalar_lea.vmem %s313_s4, 1024  ;;  %p8450_p10 = scmp.lt.s32.totalorder %s313_s4, %s313_s4 }
 0x1a6   :  { %p8446_p9 = scmp.ne.s32.totalorder %s313_s4, %s8445_s7  ;;  %p8451_p11 = scmp.lt.s32.totalorder %s8445_s7, %s8445_s7 }
 0x1a8   :  { %p8452_p12 = por %p8451_p11, %p8450_p10 }
 0x1aa   :  { %p8453_p13 = pnand %p8452_p12, %p8446_p9 }
 0x1ac   :  { %8456 = shalt.err (!%p8453_p13)
}
 0x1ad   :  { %318 = dma.hbm_to_vmem [thread:$0]  %s9470_s14, 1024, %s313_s4, [#allocation33], %s8566_s13, %s8566_s13, %s8567_s28  }
 0x1ae   :  { %s8457_s10 = scalar_lea.hbm %s8726_s24, 1024 }
 0x1af   :  { %p8458_p0 = scmp.ne.s32.totalorder %s8726_s24, %s8457_s10  ;;  %p8461_p1 = scmp.lt.u32.totalorder %s8457_s10, %s8726_s24 }
 0x1b1   :  { %p8463_p2 = pnand %p8461_p1, %p8458_p0 }
 0x1b3   :  { %8466 = shalt.err (!%p8463_p2)
}
 0x1b4   :  { %s8467_s17 = scalar_lea.vmem %s8883_s2, 1024  ;;  %p8472_p4 = scmp.lt.s32.totalorder %s8883_s2, %s8883_s2 }
 0x1b5   :  { %p8468_p3 = scmp.ne.s32.totalorder %s8883_s2, %s8467_s17  ;;  %p8473_p5 = scmp.lt.s32.totalorder %s8467_s17, %s8467_s17 }
 0x1b7   :  { %p8474_p6 = por %p8473_p5, %p8472_p4 }
 0x1b9   :  { %p8475_p7 = pnand %p8474_p6, %p8468_p3 }
 0x1bb   :  { %8478 = shalt.err (!%p8475_p7)
}
 0x1bc   :  { %332 = dma.hbm_to_vmem [thread:$0]  %s8726_s24, 1024, %s8883_s2, [#allocation36], %s8566_s13, %s8566_s13, %s8567_s28  }
 0x1bd   :  { %8501 = dma.done.wait [#allocation3], 1024  }
 0x1be   :  { %8502 = vsyncadd [#allocation3], 4294966272 }
 0x1bf   :  { %8503 = dma.done.wait [#allocation6], 5136  }
 0x1c0   :  { %8504 = vsyncadd [#allocation6], 4294962160 }
 0x1c1   :  { %8505 = dma.done.wait [#allocation9], 3088  }
 0x1c2   :  { %8506 = vsyncadd [#allocation9], 4294964208 }
 0x1c3   :  { %8507 = dma.done.wait [#allocation12], 7184  }
 0x1c4   :  { %8508 = vsyncadd [#allocation12], 4294960112 }
 0x1c5   :  { %8509 = dma.done.wait [#allocation15], 5136  }
 0x1c6   :  { %8510 = vsyncadd [#allocation15], 4294962160 }
 0x1c7   :  { %8511 = dma.done.wait [#allocation18], 3088  }
 0x1c8   :  { %8512 = vsyncadd [#allocation18], 4294964208 }
 0x1c9   :  { %8513 = dma.done.wait [#allocation21], 1040  }
 0x1ca   :  { %8514 = vsyncadd [#allocation21], 4294966256 }
 0x1cb   :  { %8515 = dma.done.wait [#allocation24], 7184  }
 0x1cc   :  { %8516 = vsyncadd [#allocation24], 4294960112 }
 0x1cd   :  { %8517 = dma.done.wait [#allocation27], 32  }
 0x1ce   :  { %8518 = vsyncadd [#allocation27], 4294967264 }
 0x1cf   :  { %8519 = dma.done.wait [#allocation30], 3088  }
 0x1d0   :  { %8520 = vsyncadd [#allocation30], 4294964208 }
 0x1d1   :  { %8521 = dma.done.wait [#allocation33], 2048  }
 0x1d2   :  { %8522 = vsyncadd [#allocation33], 4294965248 }
 0x1d3   :  { %8523 = dma.done.wait [#allocation36], 1024  }
 0x1d4   :  { %8524 = vsyncadd [#allocation36], 4294966272  ;;  %s9471_s24 = sld [smem:[#allocation51_spill]]  ;;  %s9472_s13 = sld [smem:[#allocation53_spill]]  ;;  %v7593_v0 = vld [vmem:[#allocation2] sm:$0xff]   ;;  %v7594_v1 = vld [vmem:[#allocation2 + $0x8] sm:$0xff]  }
 0x1d5   :  { %7245 = vmatprep.subr.bf16.mxu0 %v7593_v0  ;;  %v7595_v2 = vld [vmem:[#allocation2 + $0x10] sm:$0xff]   ;;  %v7596_v3 = vld [vmem:[#allocation2 + $0x18] sm:$0xff]   ;;  %v7597_v6 = vld [vmem:[#allocation2 + $0x20] sm:$0xff]   ;;  %s9473_s28 = sld [smem:[#allocation52_spill]]  ;;  %vm559_vm0 = vsmask.f32 1280 }
 0x1d6   :  { %7246 = vmatpush3.bf16.msra.mxu0 %v7593_v0  ;;  %v7598_v9 = vld [vmem:[#allocation2 + $0x28] sm:$0xff]   ;;  %v7599_v12 = vld [vmem:[#allocation2 + $0x30] sm:$0xff]   ;;  %v7600_v14 = vld [vmem:[#allocation2 + $0x38] sm:$0xff]   ;;  %vm558_vm1 = vcmask 1041408   ;;  %vm565_vm3 = vsmask.f32 7424 }
 0x1d7   :  { %7247 = vmatprep.subr.bf16.mxu0 %v7594_v1  ;;  %vm8953_vm2 = vmand %vm558_vm1, %vm559_vm0  ;;  %vm596_vm4 = vcmask 1046528   ;;  %vm605_vm5 = vsmask.f32 6400  ;;  %vm635_vm6 = vsmask.f32 5376  ;;  %vm652_vm7 = vcmask 1044480  }
 0x1d8   :  { %vm626_vm8 = vcmask 1045504   ;;  %vm1322_vm9 = vcmask 1040384   ;;  %vm1893_vm11 = vsmask.f32 256  ;;  %s9480_s0 = sld [smem:[#allocation58_spill]]  ;;  %vm8581_vm13 = vmmov 0  }
 0x1d9   :  { %vm9063_vm10 = vmneg %vm1322_vm9  ;;  %vm5802_vm14 = vcmask 1041409   ;;  %s9481_s9 = sld [smem:[#allocation61_spill]]  ;;  %s8582_s29 = smov [#allocation37]  }
 0x1da   :  { %7248 = vmatpush3.bf16.msra.mxu0 %v7594_v1  ;;  %v7601_v4 = vld [vmem:[%s9471_s24] sm:$0xff]   ;;  %v7607_v8 = vld [vmem:[%s9472_s13 + $0x48] sm:$0xff]   ;;  %v7611_v11 = vld [vmem:[%s9472_s13 + $0x50] sm:$0xff]   ;;  %s6127_s11 = sshll.u32 %s8582_s29, 4  ;;  %s6128_s11 = int_to_ptr.vmem [resolvable:$true] %s6127_s11 }
 0x1db   :  { %7249 = vmatprep.subr.bf16.mxu0 %v7595_v2  ;;  %7261 = vmatprep.mubr.bf16.mxu0 %v7601_v4  ;;  %v7603_v5 = vld [vmem:[%s9472_s13 + $0x40] sm:$0xff]   ;;  %v7609_v10 = vld [vmem:[%s9472_s13 + $0x8] sm:$0xff]   ;;  %v7613_v13 = vld [vmem:[%s9472_s13 + $0x10] sm:$0xff]   ;;  %s8479_s12 = scalar_lea.vmem %s6128_s11, 32  ;;  %p8484_p9 = scmp.lt.s32.totalorder %s6128_s11, %s6128_s11 }
 0x1dc   :  { %6614 = vmatprep.subr.bf16.mxu1 %v7603_v5  ;;  %v7605_v7 = vld [vmem:[%s9472_s13] sm:$0xff]   ;;  %v7602_v16 = vld [vmem:[%s9471_s24 + $0x8] sm:$0xff]   ;;  %v7612_v20 = vld [vmem:[%s9472_s13 + $0xd0] sm:$0xff]   ;;  %p8480_p8 = scmp.ne.s32.totalorder %s6128_s11, %s8479_s12  ;;  %p8485_p10 = scmp.lt.s32.totalorder %s8479_s12, %s8479_s12 }
 0x1dd   :  { %6615 = vmatpush3.bf16.msra.mxu1 %v7605_v7  ;;  %v7604_v15 = vld [vmem:[%s9472_s13 + $0xc0] sm:$0xff]   ;;  %v7608_v18 = vld [vmem:[%s9472_s13 + $0xc8] sm:$0xff]   ;;  %v7614_v21 = vld [vmem:[%s9472_s13 + $0x90] sm:$0xff]  }
 0x1de   :  { %7250 = vmatpush3.bf16.msra.mxu0 %v7595_v2  ;;  %6616 = vmatprep.subr.bf16.mxu1 %v7607_v8  ;;  %v7606_v17 = vld [vmem:[%s9472_s13 + $0x80] sm:$0xff]   ;;  %v7610_v19 = vld [vmem:[%s9472_s13 + $0x88] sm:$0xff]   ;;  %v7615_v22 = vld [vmem:[%s9472_s13 + $0x58] sm:$0xff]   ;;  %p8486_p11 = por %p8485_p10, %p8484_p9 }
 0x1df   :  { %7251 = vmatprep.subr.bf16.mxu0 %v7596_v3  ;;  %v7616_v23 = vld [vmem:[%s9472_s13 + $0xd8] sm:$0xff]   ;;  %v7619_v26 = vld [vmem:[%s9472_s13 + $0x60] sm:$0xff]   ;;  %v7623_v30 = vld [vmem:[%s9472_s13 + $0x68] sm:$0xff]  }
 0x1e0   :  { %v7617_v24 = vld [vmem:[%s9472_s13 + $0x18] sm:$0xff]   ;;  %v7620_v27 = vld [vmem:[%s9472_s13 + $0xe0] sm:$0xff]   ;;  %v7624_v31 = vld [vmem:[%s9472_s13 + $0xe8] sm:$0xff]   ;;  %p8487_p12 = pnand %p8486_p11, %p8480_p8 }
 0x1e1   :  { %6617 = vmatpush3.bf16.msra.mxu1 %v7609_v10  ;;  %v7618_v25 = vld [vmem:[%s9472_s13 + $0x98] sm:$0xff]   ;;  %v7621_v28 = vld [vmem:[%s9472_s13 + $0x20] sm:$0xff]   ;;  %v7625_v32 = vld [vmem:[%s9472_s13 + $0x28] sm:$0xff]  }
 0x1e2   :  { %7252 = vmatpush3.bf16.msra.mxu0 %v7596_v3  ;;  %6618 = vmatprep.subr.bf16.mxu1 %v7611_v11  ;;  %v7622_v29 = vld [vmem:[%s9472_s13 + $0xa0] sm:$0xff]   ;;  %v7626_v33 = vld [vmem:[%s9472_s13 + $0xa8] sm:$0xff]   ;;  %v7627_v34 = vld [vmem:[%s9472_s13 + $0x70] sm:$0xff]  }
 0x1e3   :  { %7253 = vmatprep.subr.bf16.mxu0 %v7597_v6  ;;  %v7628_v35 = vld [vmem:[%s9472_s13 + $0xf0] sm:$0xff]   ;;  %v7631_v38 = vld [vmem:[%s9472_s13 + $0x78] sm:$0xff]   ;;  %v7635_v42 = vld [vmem:[%s9472_s13 + $0x140] sm:$0xff]  }
 0x1e4   :  { %v7629_v36 = vld [vmem:[%s9472_s13 + $0x30] sm:$0xff]   ;;  %v7632_v39 = vld [vmem:[%s9472_s13 + $0xf8] sm:$0xff]   ;;  %v8940_v43 = vld [vmem:[%s9472_s13 + $0x180] sm:$0xff]  }
 0x1e5   :  { %6619 = vmatpush3.bf16.msra.mxu1 %v7613_v13  ;;  %v7630_v37 = vld [vmem:[%s9472_s13 + $0xb0] sm:$0xff]   ;;  %v7633_v40 = vld [vmem:[%s9472_s13 + $0x38] sm:$0xff]   ;;  %v6176_v44 = vld [vmem:[%s9473_s28] ss:$0 sm:$0xff] }
 0x1e6   :  { %7254 = vmatpush3.bf16.msra.mxu0 %v7597_v6  ;;  %6620 = vmatprep.subr.bf16.mxu1 %v7615_v22  ;;  %v7634_v41 = vld [vmem:[%s9472_s13 + $0xb8] sm:$0xff]   ;;  %vm9085_vm12 = vmand %vm1322_vm9, %vm1893_vm11 }
 0x1e7   :  { %7255 = vmatprep.subr.bf16.mxu0 %v7598_v9 }
 0x1e9   :  { %6621 = vmatpush3.bf16.msra.mxu1 %v7617_v24  ;;  %v7637_v24 = vld [vmem:[%s9472_s13 + $0x100] sm:$0xff]  }
 0x1ea   :  { %7256 = vmatpush3.bf16.msra.mxu0 %v7598_v9  ;;  %6622 = vmatprep.subr.bf16.mxu1 %v7619_v26 }
 0x1eb   :  { %7257 = vmatprep.subr.bf16.mxu0 %v7599_v12 }
 0x1ed   :  { %6623 = vmatpush3.bf16.msra.mxu1 %v7621_v28 }
 0x1ee   :  { %7258 = vmatpush3.bf16.msra.mxu0 %v7599_v12  ;;  %6624 = vmatprep.subr.bf16.mxu1 %v7623_v30 }
 0x1ef   :  { %7259 = vmatprep.subr.bf16.mxu0 %v7600_v14 }
 0x1f1   :  { %6625 = vmatpush3.bf16.msra.mxu1 %v7625_v32 }
 0x1f2   :  { %7260 = vmatpush3.bf16.msra.mxu0 %v7600_v14  ;;  %6626 = vmatprep.subr.bf16.mxu1 %v7627_v34  ;;  %v7639_v34 = vld [vmem:[%s9472_s13 + $0x188] sm:$0xff]  }
 0x1f3   :  { %6642 = vmatprep.subr.bf16.mxu0 %v7604_v15 }
 0x1f5   :  { %7262 = vmatmul.mubr.bf16.vlgmr.msra.gmra.mrb[0].mxu0 %v7602_v16  ;;  %6627 = vmatpush3.bf16.msra.mxu1 %v7629_v36 }
 0x1f6   :  { %6643 = vmatpush3.bf16.msra.mxu0 %v7606_v17  ;;  %6628 = vmatprep.subr.bf16.mxu1 %v7631_v38 }
 0x1f7   :  { %6644 = vmatprep.subr.bf16.mxu0 %v7608_v18 }
 0x1f9   :  { %6629 = vmatpush3.bf16.msra.mxu1 %v7633_v40 }
 0x1fa   :  { %6645 = vmatpush3.bf16.msra.mxu0 %v7610_v19  ;;  %6670 = vmatprep.subr.bf16.mxu1 %v7635_v42 }
 0x1fb   :  { %6646 = vmatprep.subr.bf16.mxu0 %v7612_v20 }
 0x1fe   :  { %6647 = vmatpush3.bf16.msra.mxu0 %v7614_v21 }
 0x1ff   :  { %6648 = vmatprep.subr.bf16.mxu0 %v7616_v23 }
 0x202   :  { %6649 = vmatpush3.bf16.msra.mxu0 %v7618_v25 }
 0x203   :  { %6650 = vmatprep.subr.bf16.mxu0 %v7620_v27 }
 0x206   :  { %6651 = vmatpush3.bf16.msra.mxu0 %v7622_v29 }
 0x207   :  { %6652 = vmatprep.subr.bf16.mxu0 %v7624_v31  ;;  %v7638_v31 = vld [vmem:[%s9472_s13 + $0x148] sm:$0xff]  }
 0x20a   :  { %6653 = vmatpush3.bf16.msra.mxu0 %v7626_v33 }
 0x20b   :  { %6654 = vmatprep.subr.bf16.mxu0 %v7628_v35 }
 0x20e   :  { %6655 = vmatpush3.bf16.msra.mxu0 %v7630_v37 }
 0x20f   :  { %6656 = vmatprep.subr.bf16.mxu0 %v7632_v39  ;;  %v7640_v39 = vld [vmem:[%s9472_s13 + $0x108] sm:$0xff]  }
 0x212   :  { %6657 = vmatpush3.bf16.msra.mxu0 %v7634_v41 }
 0x213   :  { %7265 = vmatprep.subr.bf16.mxu0 %v8940_v43 }
 0x2c8   :  { %v7263_v45 = vpop.f32.mrb[0].mxu0 }
 0x2c9   :  { %v523_v46 = vpop.f32.mrb[1].mxu0  ;;  %v532_v48 = vadd.f32 %v7263_v45, %v6176_v44 }
 0x2ca   :  { %v7264_v47 = vpop.f32.mrb[2].mxu0  ;;  %v524_v51 = vadd.f32 %v6176_v44, %v523_v46 }
 0x2cb   :  { %v535_v49 = vadd.f32 %v7264_v47, %v6176_v44  ;;  %v526_v50 = vpop.f32.mrb[3].mxu0  ;;  %v7641_v47 = vld [vmem:[%s9472_s13 + $0x150] sm:$0xff]  }
 0x2cc   :  { %v527_v52 = vadd.f32 %v6176_v44, %v526_v50 }
 0x2cd   :  { %v8944_v53 = vpack.c.bf16 %v535_v49, %v532_v48  ;;  %v7642_v48 = vld [vmem:[%s9472_s13 + $0x190] sm:$0xff]  }
 0x2ce   :  { %v8946_v54 = vpack.c.bf16 %v527_v52, %v524_v51 }
 0x2cf   :  { %v549_v55 = vshrl.u32 %v8944_v53, 16  ;;  %v552_v56 = vshll.u32 %v8944_v53, 16 }
 0x2d0   :  { %v541_v57 = vshrl.u32 %v8946_v54, 16  ;;  %v544_v58 = vshll.u32 %v8946_v54, 16 }
 0x2d1   :  { %v551_v59 = vrot.slane %v549_v55, 6  ;;  %v554_v60 = vrot.slane %v552_v56, 7  ;;  %v7643_v56 = vld [vmem:[%s9472_s13 + $0x110] sm:$0xff]  }
 0x2d2   :  { %v543_v62 = vrot.slane %v541_v57, 6  ;;  %v546_v63 = vrot.slane %v544_v58, 7 }
 0x2d3   :  { %v555_v0 = vor.u32 %v554_v60, %v551_v59 }
 0x2d4   :  { %v547_v1 = vor.u32 %v546_v63, %v543_v62  ;;  %v7644_v63 = vld [vmem:[%s9472_s13 + $0x158] sm:$0xff]  }
 0x2d5   :  { %v8959_v2 = vsel %vm8953_vm2, 0, %v555_v0  ;;  %v8963_v3 = vsel %vm8953_vm2, %v555_v0, 0 }
 0x2d6   :  { %v8967_v4 = vsel %vm8953_vm2, 0, %v547_v1  ;;  %v8971_v5 = vsel %vm8953_vm2, %v547_v1, 0  ;;  %v8974_v6 = vshrl.u32 %v8959_v2, 16  ;;  %v8977_v7 = vshll.u32 %v8959_v2, 16 }
 0x2d7   :  { %v567_v8 = vshrl.u32 %v8967_v4, 16  ;;  %v569_v9 = vshll.u32 %v8967_v4, 16  ;;  %v574_v10 = vshll.u32 %v8971_v5, 16  ;;  %v609_v11 = vshrl.u32 %v8971_v5, 16 }
 0x2d8   :  { %v597_v12 = vrot.slane %v8967_v4, 1  ;;  %v598_v13 = vrot.slane %v8971_v5, 1  ;;  %v583_v14 = vrot.slane %v8977_v7, 1  ;;  %v8987_v15 = vshll.u32 %v8963_v3, 16 }
 0x2d9   :  { %v571_v16 = vrot.slane %v569_v9, 1  ;;  %v576_v17 = vrot.slane %v574_v10, 1  ;;  %v606_v18 = vrot.slane %v567_v8, 1  ;;  %v607_v19 = vrot.slane %v569_v9, 2 }
 0x2da   :  { %v611_v20 = vrot.slane %v609_v11, 1  ;;  %v612_v21 = vrot.slane %v574_v10, 2  ;;  %v584_v25 = vor.u32 %v583_v14, %v8974_v6  ;;  %v615_v26 = vrot.slane %v8974_v6, 1  ;;  %v7649_v14 = vld [vmem:[%s9472_s13 + $0x120] sm:$0xff]  }
 0x2db   :  { %v572_v22 = vor.u32 %v571_v16, %v567_v8  ;;  %v608_v23 = vor.u32 %v607_v19, %v606_v18  ;;  %v616_v28 = vrot.slane %v8977_v7, 2  ;;  %v618_v29 = vshrl.u32 %v8963_v3, 16  ;;  %v7651_v16 = vld [vmem:[%s9472_s13 + $0x1a8] sm:$0xff]   ;;  %v7653_v18 = vld [vmem:[%s9472_s13 + $0x170] sm:$0xff]  }
 0x2dc   :  { %v613_v27 = vor.u32 %v612_v21, %v611_v20  ;;  %v621_v30 = vrot.slane %v8987_v15, 2  ;;  %v599_v33 = vsel %vm596_vm4, %v597_v12, %v598_v13  ;;  %v588_v36 = vrot.slane %v8987_v15, 1  ;;  %v7647_v12 = vld [vmem:[%s9472_s13 + $0x160] sm:$0xff]   ;;  %v7654_v19 = vld [vmem:[%s9472_s13 + $0x1b0] sm:$0xff]   ;;  %v7656_v21 = vld [vmem:[%s9472_s13 + $0x178] sm:$0xff]  }
 0x2dd   :  { %v577_v32 = vsel %vm565_vm3, %v572_v22, %v576_v17  ;;  %v617_v37 = vor.u32 %v616_v28, %v615_v26  ;;  %v620_v38 = vrot.slane %v618_v29, 1  ;;  %v636_v40 = vrot.slane %v567_v8, 2  ;;  %v7652_v17 = vld [vmem:[%s9472_s13 + $0x128] sm:$0xff]   ;;  %v7655_v20 = vld [vmem:[%s9472_s13 + $0x130] sm:$0xff]   ;;  %v7657_v22 = vld [vmem:[%s9472_s13 + $0x1b8] sm:$0xff]  }
 0x2de   :  { %1148 = vmatprep.mubr.bf16.mxu1 %v577_v32  ;;  %v614_v35 = vsel %vm605_vm5, %v608_v23, %v613_v27  ;;  %v637_v41 = vrot.slane %v569_v9, 3  ;;  %v639_v42 = vrot.slane %v609_v11, 2  ;;  %v640_v44 = vrot.slane %v574_v10, 3  ;;  %v7646_v10 = vld [vmem:[%s9472_s13 + $0x118] sm:$0xff]   ;;  %v7659_v32 = vld [vmem:[#allocation7 + $0x40] sm:$0xff]  }
 0x2df   :  { %1197 = vmatprep.mubr.bf16.mxu0 %v614_v35  ;;  %1149 = vmatmul.mubr.bf16.vlgmr.msra.gmra.mrb[0].mxu1 %v8967_v4  ;;  %v589_v45 = vsel %vm565_vm3, %v584_v25, %v588_v36  ;;  %v622_v46 = vor.u32 %v621_v30, %v620_v38  ;;  %v600_v49 = vrot.slane %v8959_v2, 1  ;;  %v601_v50 = vrot.slane %v8963_v3, 1  ;;  %v7658_v23 = vld [vmem:[%s9472_s13 + $0x138] sm:$0xff]   ;;  %v7663_v35 = vld [vmem:[#allocation7 + $0x48] sm:$0xff]  }
 0x2e0   :  { %1198 = vmatmul.mubr.bf16.vlgmr.msra.gmra.mrb[4].mxu0 %v599_v33  ;;  %6671 = vmatpush3.bf16.msra.mxu1 %v7637_v24  ;;  %v653_v51 = vrot.slane %v8967_v4, 3  ;;  %v654_v52 = vrot.slane %v8971_v5, 3  ;;  %v627_v57 = vrot.slane %v8967_v4, 2  ;;  %v628_v58 = vrot.slane %v8971_v5, 2  ;;  %v7645_v5 = vld [vmem:[%s9472_s13 + $0x198] sm:$0xff]   ;;  %v7660_v33 = vld [vmem:[#allocation7] sm:$0xff]  }
 0x2e1   :  { %7266 = vmatpush3.bf16.msra.mxu0 %v8940_v43  ;;  %1156 = vmatprep.mubr.bf16.mxu1 %v589_v45  ;;  %v623_v55 = vsel %vm605_vm5, %v617_v37, %v622_v46  ;;  %v638_v59 = vor.u32 %v637_v41, %v636_v40  ;;  %v641_v43 = vor.u32 %v640_v44, %v639_v42  ;;  %v656_v60 = vrot.slane %v8959_v2, 3  ;;  %v7662_v4 = vld [vmem:[#allocation7 + $0x80] sm:$0xff]   ;;  %v7665_v36 = vld [vmem:[#allocation7 + $0xc8] sm:$0xff]   ;;  %v7670_v40 = vld [vmem:[#allocation7 + $0x90] sm:$0xff]  }
 0x2e2   :  { %6672 = vmatprep.subr.bf16.mxu1 %v7638_v31  ;;  %7267 = vmatprep.subr.bf16.mxu0 %v7639_v34  ;;  %v657_v62 = vrot.slane %v8963_v3, 3  ;;  %v643_v0 = vrot.slane %v8974_v6, 2  ;;  %v644_v1 = vrot.slane %v8977_v7, 3  ;;  %v646_v8 = vrot.slane %v618_v29, 2  ;;  %v7648_v7 = vld [vmem:[%s9472_s13 + $0x1a0] sm:$0xff]   ;;  %v7664_v37 = vld [vmem:[#allocation7 + $0x8] sm:$0xff]  }
 0x2e3   :  { %1205 = vmatprep.mubr.bf16.mxu0 %v623_v55  ;;  %v647_v9 = vrot.slane %v8987_v15, 3  ;;  %v602_v11 = vsel %vm596_vm4, %v600_v49, %v601_v50  ;;  %v642_v6 = vsel %vm635_vm6, %v638_v59, %v641_v43  ;;  %v655_v13 = vsel %vm652_vm7, %v653_v51, %v654_v52  ;;  %v7650_v15 = vld [vmem:[%s9472_s13 + $0x168] sm:$0xff]   ;;  %v7671_v41 = vld [vmem:[#allocation7 + $0x58] sm:$0xff]   ;;  %v7686_v59 = vld [vmem:[#allocation7 + $0xb0] sm:$0xff]  }
 0x2e4   :  { %6673 = vmatpush3.bf16.msra.mxu1 %v7640_v39  ;;  %v645_v24 = vor.u32 %v644_v1, %v643_v0  ;;  %v629_v26 = vsel %vm626_vm8, %v627_v57, %v628_v58  ;;  %v658_v27 = vsel %vm652_vm7, %v656_v60, %v657_v62  ;;  %v630_v29 = vrot.slane %v8959_v2, 2  ;;  %v7666_v38 = vld [vmem:[#allocation7 + $0x88] sm:$0xff]   ;;  %v7669_v39 = vld [vmem:[#allocation7 + $0xd0] sm:$0xff]   ;;  %v7672_v42 = vld [vmem:[#allocation7 + $0x18] sm:$0xff]  }
 0x2e5   :  { %7268 = vmatpush3.bf16.msra.mxu0 %v7639_v34  ;;  %6674 = vmatprep.subr.bf16.mxu1 %v7641_v47  ;;  %v648_v25 = vor.u32 %v647_v9, %v646_v8  ;;  %v631_v30 = vrot.slane %v8963_v3, 2  ;;  %v7661_v34 = vld [vmem:[#allocation7 + $0xc0] sm:$0xff]   ;;  %v7668_v3 = vld [vmem:[#allocation7 + $0x10] sm:$0xff]   ;;  %v7673_v44 = vld [vmem:[#allocation7 + $0xd8] sm:$0xff]  }
 0x2e6   :  { %7269 = vmatprep.subr.bf16.mxu0 %v7642_v48  ;;  %v7674_v45 = vld [vmem:[#allocation7 + $0x98] sm:$0xff]   ;;  %v7675_v46 = vld [vmem:[#allocation7 + $0x60] sm:$0xff]   ;;  %v7679_v50 = vld [vmem:[#allocation7 + $0x68] sm:$0xff]  }
 0x2e7   :  { %1157 = vmatmul.mubr.bf16.gmra.mrb[4].mxu1 %v8959_v2  ;;  %v649_v28 = vsel %vm635_vm6, %v645_v24, %v648_v25  ;;  %v632_v31 = vsel %vm626_vm8, %v630_v29, %v631_v30  ;;  %v7667_v2 = vld [vmem:[#allocation7 + $0x50] sm:$0xff]   ;;  %v7677_v47 = vld [vmem:[#allocation7 + $0xe0] sm:$0xff]   ;;  %v7680_v51 = vld [vmem:[#allocation7 + $0x28] sm:$0xff]  }
 0x2e8   :  { %1206 = vmatmul.mubr.bf16.gmra.mrb[8].mxu0 %v602_v11  ;;  %6675 = vmatpush3.bf16.msra.mxu1 %v7643_v56  ;;  %v7678_v49 = vld [vmem:[#allocation7 + $0xa0] sm:$0xff]   ;;  %v7681_v52 = vld [vmem:[#allocation7 + $0xe8] sm:$0xff]   ;;  %v7683_v56 = vld [vmem:[#allocation7 + $0x70] sm:$0xff]  }
 0x2e9   :  { %7270 = vmatpush3.bf16.msra.mxu0 %v7642_v48  ;;  %1246 = vmatprep.mubr.bf16.mxu1 %v642_v6  ;;  %v7676_v48 = vld [vmem:[#allocation7 + $0x20] sm:$0xff]   ;;  %v7682_v55 = vld [vmem:[#allocation7 + $0xa8] sm:$0xff]   ;;  %v7685_v57 = vld [vmem:[#allocation7 + $0xf0] sm:$0xff]  }
 0x2ea   :  { %7281 = vmatprep.mubr.bf16.mxu0 %v655_v13  ;;  %6676 = vmatprep.subr.bf16.mxu1 %v7644_v63  ;;  %v7684_v58 = vld [vmem:[#allocation7 + $0x30] sm:$0xff]   ;;  %v7687_v43 = vld [vmem:[#allocation7 + $0x78] sm:$0xff]   ;;  %v9047_v0 = vld [vmem:[#allocation7 + $0x100] sm:$0xff]  }
 0x2eb   :  { %7271 = vmatprep.subr.bf16.mxu0 %v7645_v5  ;;  %v7689_v60 = vld [vmem:[#allocation7 + $0xf8] sm:$0xff]  }
 0x2ec   :  { %6677 = vmatpush3.bf16.msra.mxu1 %v7646_v10  ;;  %v7688_v62 = vld [vmem:[#allocation7 + $0x38] sm:$0xff]  }
 0x2ed   :  { %7272 = vmatpush3.bf16.msra.mxu0 %v7645_v5  ;;  %6678 = vmatprep.subr.bf16.mxu1 %v7647_v12  ;;  %v7690_v63 = vld [vmem:[#allocation7 + $0xb8] sm:$0xff]  }
 0x2ee   :  { %7273 = vmatprep.subr.bf16.mxu0 %v7648_v7  ;;  %v6187_v9 = vld [vmem:[#allocation5] ss:$0 sm:$0xff] }
 0x2f0   :  { %6679 = vmatpush3.bf16.msra.mxu1 %v7649_v14 }
 0x2f1   :  { %7274 = vmatpush3.bf16.msra.mxu0 %v7648_v7  ;;  %6680 = vmatprep.subr.bf16.mxu1 %v7650_v15 }
 0x2f2   :  { %7275 = vmatprep.subr.bf16.mxu0 %v7651_v16 }
 0x2f4   :  { %6681 = vmatpush3.bf16.msra.mxu1 %v7652_v17 }
 0x2f5   :  { %7276 = vmatpush3.bf16.msra.mxu0 %v7651_v16  ;;  %6682 = vmatprep.subr.bf16.mxu1 %v7653_v18 }
 0x2f6   :  { %7277 = vmatprep.subr.bf16.mxu0 %v7654_v19 }
 0x2f8   :  { %6683 = vmatpush3.bf16.msra.mxu1 %v7655_v20 }
 0x2f9   :  { %7278 = vmatpush3.bf16.msra.mxu0 %v7654_v19  ;;  %6684 = vmatprep.subr.bf16.mxu1 %v7656_v21 }
 0x2fa   :  { %7279 = vmatprep.subr.bf16.mxu0 %v7657_v22 }
 0x2fc   :  { %6685 = vmatpush3.bf16.msra.mxu1 %v7658_v23 }
 0x2fd   :  { %7280 = vmatpush3.bf16.msra.mxu0 %v7657_v22  ;;  %6708 = vmatprep.subr.bf16.mxu1 %v7659_v32 }
 0x2fe   :  { %6736 = vmatprep.subr.bf16.mxu0 %v7661_v34 }
 0x2ff   :  { %1247 = vmatmul.mubr.bf16.vlgmr.msra.gmra.mrb[8].mxu1 %v629_v26 }
 0x300   :  { %7282 = vmatmul.mubr.bf16.vlgmr.msra.gmra.mrb[12].mxu0 %v658_v27  ;;  %1254 = vmatprep.mubr.bf16.mxu1 %v649_v28 }
 0x301   :  { %6709 = vmatpush3.bf16.msra.mxu1 %v7660_v33  ;;  %6737 = vmatpush3.bf16.msra.mxu0 %v7662_v4 }
 0x302   :  { %6710 = vmatprep.subr.bf16.mxu1 %v7663_v35  ;;  %6738 = vmatprep.subr.bf16.mxu0 %v7665_v36 }
 0x305   :  { %6711 = vmatpush3.bf16.msra.mxu1 %v7664_v37  ;;  %6739 = vmatpush3.bf16.msra.mxu0 %v7666_v38 }
 0x306   :  { %6712 = vmatprep.subr.bf16.mxu1 %v7667_v2  ;;  %6740 = vmatprep.subr.bf16.mxu0 %v7669_v39 }
 0x307   :  { %1255 = vmatmul.mubr.bf16.gmra.mrb[12].mxu1 %v632_v31 }
 0x309   :  { %6713 = vmatpush3.bf16.msra.mxu1 %v7668_v3  ;;  %6741 = vmatpush3.bf16.msra.mxu0 %v7670_v40 }
 0x30a   :  { %6714 = vmatprep.subr.bf16.mxu1 %v7671_v41  ;;  %6742 = vmatprep.subr.bf16.mxu0 %v7673_v44 }
 0x30d   :  { %6715 = vmatpush3.bf16.msra.mxu1 %v7672_v42  ;;  %6743 = vmatpush3.bf16.msra.mxu0 %v7674_v45 }
 0x30e   :  { %6716 = vmatprep.subr.bf16.mxu1 %v7675_v46  ;;  %6744 = vmatprep.subr.bf16.mxu0 %v7677_v47 }
 0x311   :  { %6717 = vmatpush3.bf16.msra.mxu1 %v7676_v48  ;;  %6745 = vmatpush3.bf16.msra.mxu0 %v7678_v49 }
 0x312   :  { %6718 = vmatprep.subr.bf16.mxu1 %v7679_v50  ;;  %6746 = vmatprep.subr.bf16.mxu0 %v7681_v52 }
 0x315   :  { %6719 = vmatpush3.bf16.msra.mxu1 %v7680_v51  ;;  %6747 = vmatpush3.bf16.msra.mxu0 %v7682_v55 }
 0x316   :  { %6720 = vmatprep.subr.bf16.mxu1 %v7683_v56  ;;  %6748 = vmatprep.subr.bf16.mxu0 %v7685_v57 }
 0x319   :  { %6721 = vmatpush3.bf16.msra.mxu1 %v7684_v58  ;;  %6749 = vmatpush3.bf16.msra.mxu0 %v7686_v59 }
 0x31a   :  { %6722 = vmatprep.subr.bf16.mxu1 %v7687_v43  ;;  %6750 = vmatprep.subr.bf16.mxu0 %v7689_v60 }
 0x31d   :  { %6723 = vmatpush3.bf16.msra.mxu1 %v7688_v62  ;;  %6751 = vmatpush3.bf16.msra.mxu0 %v7690_v63 }
 0x31e   :  { %7285 = vmatprep.subr.bf16.mxu1 %v9047_v0 }
 0x3b2   :  { %v6630_v1 = vpop.f32.mrb[0].mxu1 }
 0x3b3   :  { %v6658_v8 = vpop.f32.mrb[4].mxu0  ;;  %v6631_v5 = vpop.f32.mrb[1].mxu1 }
 0x3b4   :  { %v6632_v10 = vadd.f32 %v6631_v5, %v6630_v1  ;;  %v6659_v11 = vpop.f32.mrb[5].mxu0  ;;  %v6633_v12 = vpop.f32.mrb[2].mxu1 }
 0x3b5   :  { %v6660_v6 = vadd.f32 %v6659_v11, %v6658_v8  ;;  %v6661_v7 = vpop.f32.mrb[6].mxu0  ;;  %v6634_v13 = vpop.f32.mrb[3].mxu1 }
 0x3b6   :  { %v1151_v14 = vadd.f32 %v6632_v10, %v6187_v9  ;;  %v6635_v15 = vadd.f32 %v6634_v13, %v6633_v12  ;;  %v6662_v16 = vpop.f32.mrb[7].mxu0 }
 0x3b7   :  { %v6663_v17 = vadd.f32 %v6662_v16, %v6661_v7 }
 0x3b8   :  { %v1200_v18 = vadd.f32 %v6660_v6, %v1151_v14  ;;  %v1154_v19 = vadd.f32 %v6635_v15, %v6187_v9 }
 0x3ba   :  { %v1203_v20 = vadd.f32 %v6663_v17, %v1154_v19  ;;  %v6636_v21 = vpop.f32.mrb[4].mxu1 }
 0x3bb   :  { %v6664_v22 = vpop.f32.mrb[8].mxu0  ;;  %v6637_v23 = vpop.f32.mrb[5].mxu1 }
 0x3bc   :  { %v6638_v24 = vadd.f32 %v6637_v23, %v6636_v21  ;;  %v6665_v25 = vpop.f32.mrb[9].mxu0  ;;  %v6639_v26 = vpop.f32.mrb[6].mxu1 }
 0x3bd   :  { %v6666_v27 = vadd.f32 %v6665_v25, %v6664_v22  ;;  %v6667_v28 = vpop.f32.mrb[10].mxu0  ;;  %v6640_v29 = vpop.f32.mrb[7].mxu1 }
 0x3be   :  { %v1159_v30 = vadd.f32 %v6638_v24, %v6187_v9  ;;  %v6641_v31 = vadd.f32 %v6640_v29, %v6639_v26  ;;  %v6668_v32 = vpop.f32.mrb[11].mxu0  ;;  %v7946_v26 = vld [vmem:[%s9480_s0 + $0x138] sm:$0xff]  }
 0x3bf   :  { %v6669_v33 = vadd.f32 %v6668_v32, %v6667_v28  ;;  %v7692_v28 = vld [vmem:[#allocation7 + $0x108] sm:$0xff]  }
 0x3c0   :  { %v1208_v34 = vadd.f32 %v6666_v27, %v1159_v30  ;;  %v1162_v4 = vadd.f32 %v6641_v31, %v6187_v9 }
 0x3c2   :  { %v1211_v35 = vadd.f32 %v6669_v33, %v1162_v4 }
 0x3d2   :  { %v6686_v36 = vpop.f32.mrb[8].mxu1 }
 0x3d3   :  { %v7283_v37 = vpop.f32.mrb[12].mxu0  ;;  %v6687_v38 = vpop.f32.mrb[9].mxu1 }
 0x3d4   :  { %v6688_v2 = vadd.f32 %v6687_v38, %v6686_v36  ;;  %v1297_v3 = vpop.f32.mrb[13].mxu0  ;;  %v6689_v39 = vpop.f32.mrb[10].mxu1 }
 0x3d5   :  { %v7284_v40 = vpop.f32.mrb[14].mxu0  ;;  %v6690_v41 = vpop.f32.mrb[11].mxu1 }
 0x3d6   :  { %v1249_v42 = vadd.f32 %v6688_v2, %v1200_v18  ;;  %v6691_v44 = vadd.f32 %v6690_v41, %v6689_v39  ;;  %v1300_v45 = vpop.f32.mrb[15].mxu0  ;;  %v7693_v2 = vld [vmem:[#allocation7 + $0x110] sm:$0xff]  }
 0x3d8   :  { %v1298_v46 = vadd.f32 %v1297_v3, %v1249_v42  ;;  %v1252_v47 = vadd.f32 %v6691_v44, %v1203_v20 }
 0x3da   :  { %v1301_v48 = vadd.f32 %v1300_v45, %v1252_v47  ;;  %v6692_v49 = vpop.f32.mrb[12].mxu1  ;;  %v1312_v51 = vmax.f32 %v1298_v46, 0.0 }
 0x3db   :  { %v6693_v50 = vpop.f32.mrb[13].mxu1 }
 0x3dc   :  { %v1313_v52 = vmax.f32 %v1301_v48, 0.0  ;;  %v6694_v55 = vadd.f32 %v6693_v50, %v6692_v49  ;;  %v6695_v56 = vpop.f32.mrb[14].mxu1  ;;  %v7694_v49 = vld [vmem:[#allocation7 + $0x118] sm:$0xff]  }
 0x3dd   :  { %v6696_v57 = vpop.f32.mrb[15].mxu1 }
 0x3de   :  { %v1316_v58 = vpack.c.bf16 %v1313_v52, %v1312_v51  ;;  %v1257_v59 = vadd.f32 %v6694_v55, %v1208_v34  ;;  %v6697_v43 = vadd.f32 %v6696_v57, %v6695_v56  ;;  %v7695_v55 = vld [vmem:[#allocation7 + $0x120] sm:$0xff]   ;;  %v7696_v56 = vld [vmem:[#allocation7 + $0x128] sm:$0xff]   ;;  %v7697_v57 = vld [vmem:[#allocation7 + $0x130] sm:$0xff]  }
 0x3e0   :  { %v1320_v60 = vrot.slane %v1316_v58, 7  ;;  %v1306_v62 = vadd.f32 %v7283_v37, %v1257_v59  ;;  %v1260_v63 = vadd.f32 %v6697_v43, %v1211_v35  ;;  %v7698_v58 = vld [vmem:[#allocation7 + $0x138] sm:$0xff]  }
 0x3e2   :  { %v9051_v1 = vsel %vm1322_vm9, 0, %v1320_v60  ;;  %v9054_v8 = vsel %vm1322_vm9, %v1320_v60, 0  ;;  %v1309_v9 = vadd.f32 %v7284_v40, %v1260_v63  ;;  %v1314_v6 = vmax.f32 %v1306_v62, 0.0  ;;  %v7699_v62 = vld [vmem:[#allocation10 + $0x80] sm:$0xff]  }
 0x3e3   :  { %v1332_v5 = vshrl.u32 %v9051_v1, 16  ;;  %v1334_v10 = vshll.u32 %v9051_v1, 16  ;;  %v1338_v11 = vshll.u32 %v9054_v8, 16  ;;  %v1369_v12 = vshrl.u32 %v9054_v8, 16  ;;  %v7700_v63 = vld [vmem:[#allocation10 + $0x40] sm:$0xff]  }
 0x3e4   :  { %v1315_v7 = vmax.f32 %v1309_v9, 0.0  ;;  %v1358_v16 = vrot.slane %v9051_v1, 1  ;;  %v1359_v20 = vrot.slane %v9054_v8, 1  ;;  %v1386_v47 = vrot.slane %v9051_v1, 2  ;;  %v7701_v1 = vld [vmem:[#allocation10 + $0x88] sm:$0xff]   ;;  %6774 = vmatprep.subr.bf16.mxu0 %v7700_v63 }
 0x3e5   :  { %v1336_v13 = vrot.slane %v1334_v10, 1  ;;  %v1366_v14 = vrot.slane %v1332_v5, 1  ;;  %v1367_v15 = vrot.slane %v1334_v10, 2  ;;  %v1371_v18 = vrot.slane %v1369_v12, 1  ;;  %v7703_v9 = vld [vmem:[#allocation10 + $0x48] sm:$0xff]   ;;  %v7704_v10 = vld [vmem:[#allocation10 + $0x90] sm:$0xff]  }
 0x3e6   :  { %v1317_v17 = vpack.c.bf16 %v1315_v7, %v1314_v6  ;;  %v1372_v19 = vrot.slane %v1338_v11, 2  ;;  %v1340_v22 = vrot.slane %v1338_v11, 1  ;;  %v1360_v32 = vsel %vm596_vm4, %v1358_v16, %v1359_v20  ;;  %v7706_v11 = vld [vmem:[#allocation10 + $0x50] sm:$0xff]   ;;  %v7707_v12 = vld [vmem:[#allocation10 + $0x98] sm:$0xff]   ;;  %v7713_v16 = vld [vmem:[#allocation10 + $0xa8] sm:$0xff]  }
 0x3e7   :  { %v1337_v21 = vor.u32 %v1336_v13, %v1332_v5  ;;  %v1368_v23 = vor.u32 %v1367_v15, %v1366_v14  ;;  %v1387_v48 = vrot.slane %v9054_v8, 2  ;;  %v7702_v8 = vld [vmem:[#allocation10] sm:$0xff]   ;;  %v7705_v5 = vld [vmem:[#allocation10 + $0x8] sm:$0xff]   ;;  %v7708_v6 = vld [vmem:[#allocation10 + $0x10] sm:$0xff]  }
 0x3e8   :  { %v1321_v24 = vrot.slane %v1317_v17, 7  ;;  %v1373_v25 = vor.u32 %v1372_v19, %v1371_v18  ;;  %v7709_v7 = vld [vmem:[#allocation10 + $0x58] sm:$0xff]   ;;  %v7710_v13 = vld [vmem:[#allocation10 + $0xa0] sm:$0xff]   ;;  %v7715_v18 = vld [vmem:[#allocation10 + $0x68] sm:$0xff]  }
 0x3e9   :  { %v1341_v27 = vsel %vm565_vm3, %v1337_v21, %v1340_v22  ;;  %v1388_v52 = vsel %vm626_vm8, %v1386_v47, %v1387_v48  ;;  %v7711_v14 = vld [vmem:[#allocation10 + $0x18] sm:$0xff]   ;;  %v7712_v15 = vld [vmem:[#allocation10 + $0x60] sm:$0xff]   ;;  %v7716_v19 = vld [vmem:[#allocation10 + $0xb0] sm:$0xff]  }
 0x3ea   :  { %v1328_v29 = vsel %vm1322_vm9, 0, %v1321_v24  ;;  %v1331_v30 = vsel %vm1322_vm9, %v1321_v24, 0  ;;  %1753 = vmatprep.mubr.bf16.mxu1 %v1341_v27  ;;  %v1374_v31 = vsel %vm605_vm5, %v1368_v23, %v1373_v25  ;;  %v7714_v17 = vld [vmem:[#allocation10 + $0x20] sm:$0xff]   ;;  %v7717_v20 = vld [vmem:[#allocation10 + $0x28] sm:$0xff]   ;;  %v7718_v21 = vld [vmem:[#allocation10 + $0x70] sm:$0xff]  }
 0x3eb   :  { %1802 = vmatprep.mubr.bf16.mxu0 %v1374_v31  ;;  %6286 = vmatmul.mubr.msk.bf16.vlgmr.msra.gmra.mrb[16].mxu1 %vm9063_vm10, %v1320_v60  ;;  %v1342_v33 = vshrl.u32 %v1328_v29, 16  ;;  %v1344_v34 = vshll.u32 %v1328_v29, 16  ;;  %v1348_v4 = vshll.u32 %v1331_v30, 16  ;;  %v1378_v35 = vshrl.u32 %v1331_v30, 16  ;;  %v7719_v22 = vld [vmem:[#allocation10 + $0xb8] sm:$0xff]   ;;  %v7720_v23 = vld [vmem:[#allocation10 + $0x30] sm:$0xff]  }
 0x3ec   :  { %1803 = vmatmul.mubr.bf16.vlgmr.msra.gmra.mrb[16].mxu0 %v1360_v32  ;;  %7286 = vmatpush3.bf16.msra.mxu1 %v9047_v0  ;;  %v1361_v40 = vrot.slane %v1328_v29, 1  ;;  %v1362_v45 = vrot.slane %v1331_v30, 1  ;;  %v1389_v59 = vrot.slane %v1328_v29, 2  ;;  %v1390_v43 = vrot.slane %v1331_v30, 2  ;;  %v7722_v25 = vld [vmem:[#allocation10 + $0x38] sm:$0xff]  }
 0x3ed   :  { %7287 = vmatprep.subr.bf16.mxu1 %v7692_v28  ;;  %v1346_v36 = vrot.slane %v1344_v34, 1  ;;  %v1375_v37 = vrot.slane %v1342_v33, 1  ;;  %v1376_v38 = vrot.slane %v1344_v34, 2  ;;  %v1380_v3 = vrot.slane %v1378_v35, 1  ;;  %6775 = vmatpush3.bf16.msra.mxu0 %v7702_v8  ;;  %v6244_v29 = vld [vmem:[#allocation8] ss:$0 sm:$0xff] }
 0x3ee   :  { %v1381_v39 = vrot.slane %v1348_v4, 2  ;;  %v1350_v42 = vrot.slane %v1348_v4, 1  ;;  %v1363_v51 = vsel %vm596_vm4, %v1361_v40, %v1362_v45  ;;  %v1391_v60 = vsel %vm626_vm8, %v1389_v59, %v1390_v43  ;;  %6776 = vmatprep.subr.bf16.mxu0 %v7703_v9 }
 0x3ef   :  { %v1347_v41 = vor.u32 %v1346_v36, %v1342_v33  ;;  %v1377_v44 = vor.u32 %v1376_v38, %v1375_v37 }
 0x3f0   :  { %7288 = vmatpush3.bf16.msra.mxu1 %v7692_v28  ;;  %v1382_v46 = vor.u32 %v1381_v39, %v1380_v3 }
 0x3f1   :  { %v1351_v0 = vsel %vm565_vm3, %v1347_v41, %v1350_v42  ;;  %7289 = vmatprep.subr.bf16.mxu1 %v7693_v2  ;;  %6777 = vmatpush3.bf16.msra.mxu0 %v7705_v5 }
 0x3f2   :  { %1761 = vmatprep.mubr.bf16.mxu1 %v1351_v0  ;;  %v1383_v50 = vsel %vm605_vm5, %v1377_v44, %v1382_v46  ;;  %6778 = vmatprep.subr.bf16.mxu0 %v7706_v11 }
 0x3f3   :  { %1810 = vmatprep.mubr.bf16.mxu0 %v1383_v50  ;;  %6288 = vmatmul.mubr.msk.bf16.gmra.mrb[20].mxu1 %vm9063_vm10, %v1321_v24  ;;  %v7721_v24 = vld [vmem:[#allocation10 + $0x78] sm:$0xff]  }
 0x3f4   :  { %1811 = vmatmul.mubr.bf16.gmra.mrb[20].mxu0 %v1363_v51  ;;  %7290 = vmatpush3.bf16.msra.mxu1 %v7693_v2 }
 0x3f5   :  { %7301 = vmatprep.mubr.bf16.mxu1 %v1388_v52  ;;  %7291 = vmatprep.subr.bf16.mxu1 %v7694_v49 }
 0x3f6   :  { %6779 = vmatpush3.bf16.msra.mxu0 %v7708_v6 }
 0x3f7   :  { %6780 = vmatprep.subr.bf16.mxu0 %v7709_v7 }
 0x3f8   :  { %7292 = vmatpush3.bf16.msra.mxu1 %v7694_v49 }
 0x3f9   :  { %7293 = vmatprep.subr.bf16.mxu1 %v7695_v55 }
 0x3fa   :  { %6781 = vmatpush3.bf16.msra.mxu0 %v7711_v14 }
 0x3fb   :  { %6782 = vmatprep.subr.bf16.mxu0 %v7712_v15 }
 0x3fc   :  { %7294 = vmatpush3.bf16.msra.mxu1 %v7695_v55 }
 0x3fd   :  { %7295 = vmatprep.subr.bf16.mxu1 %v7696_v56 }
 0x3fe   :  { %6783 = vmatpush3.bf16.msra.mxu0 %v7714_v17 }
 0x3ff   :  { %6784 = vmatprep.subr.bf16.mxu0 %v7715_v18 }
 0x400   :  { %7296 = vmatpush3.bf16.msra.mxu1 %v7696_v56 }
 0x401   :  { %7297 = vmatprep.subr.bf16.mxu1 %v7697_v57 }
 0x402   :  { %6785 = vmatpush3.bf16.msra.mxu0 %v7717_v20 }
 0x403   :  { %6786 = vmatprep.subr.bf16.mxu0 %v7718_v21 }
 0x404   :  { %7298 = vmatpush3.bf16.msra.mxu1 %v7697_v57 }
 0x405   :  { %7299 = vmatprep.subr.bf16.mxu1 %v7698_v58 }
 0x406   :  { %6787 = vmatpush3.bf16.msra.mxu0 %v7720_v23 }
 0x407   :  { %6788 = vmatprep.subr.bf16.mxu0 %v7721_v24 }
 0x408   :  { %7300 = vmatpush3.bf16.msra.mxu1 %v7698_v58 }
 0x409   :  { %7305 = vmatprep.subr.bf16.mxu1 %v7699_v62 }
 0x40a   :  { %6789 = vmatpush3.bf16.msra.mxu0 %v7722_v25 }
 0x40b   :  { %7302 = vmatmul.mubr.bf16.vlgmr.msra.gmra.mrb[24].mxu1 %v1391_v60 }
 0x40c   :  { %7306 = vmatpush3.bf16.msra.mxu1 %v7699_v62 }
 0x40d   :  { %7307 = vmatprep.subr.bf16.mxu1 %v7701_v1 }
 0x410   :  { %7308 = vmatpush3.bf16.msra.mxu1 %v7701_v1 }
 0x411   :  { %7309 = vmatprep.subr.bf16.mxu1 %v7704_v10 }
 0x414   :  { %7310 = vmatpush3.bf16.msra.mxu1 %v7704_v10 }
 0x415   :  { %7311 = vmatprep.subr.bf16.mxu1 %v7707_v12 }
 0x418   :  { %7312 = vmatpush3.bf16.msra.mxu1 %v7707_v12 }
 0x419   :  { %7313 = vmatprep.subr.bf16.mxu1 %v7710_v13 }
 0x41c   :  { %7314 = vmatpush3.bf16.msra.mxu1 %v7710_v13 }
 0x41d   :  { %7315 = vmatprep.subr.bf16.mxu1 %v7713_v16 }
 0x420   :  { %7316 = vmatpush3.bf16.msra.mxu1 %v7713_v16 }
 0x421   :  { %7317 = vmatprep.subr.bf16.mxu1 %v7716_v19 }
 0x424   :  { %7318 = vmatpush3.bf16.msra.mxu1 %v7716_v19 }
 0x425   :  { %7319 = vmatprep.subr.bf16.mxu1 %v7719_v22 }
 0x428   :  { %7320 = vmatpush3.bf16.msra.mxu1 %v7719_v22 }
 0x4be   :  { %v6724_v27 = vpop.f32.mrb[16].mxu1 }
 0x4bf   :  { %v6752_v28 = vpop.f32.mrb[16].mxu0  ;;  %v6725_v30 = vpop.f32.mrb[17].mxu1 }
 0x4c0   :  { %v6726_v31 = vadd.f32 %v6725_v30, %v6724_v27  ;;  %v6753_v32 = vpop.f32.mrb[17].mxu0  ;;  %v6727_v33 = vpop.f32.mrb[18].mxu1 }
 0x4c1   :  { %v6754_v34 = vadd.f32 %v6753_v32, %v6752_v28  ;;  %v6755_v4 = vpop.f32.mrb[18].mxu0  ;;  %v6728_v35 = vpop.f32.mrb[19].mxu1 }
 0x4c2   :  { %v1756_v36 = vadd.f32 %v6726_v31, %v6244_v29  ;;  %v6729_v37 = vadd.f32 %v6728_v35, %v6727_v33  ;;  %v6756_v38 = vpop.f32.mrb[19].mxu0 }
 0x4c3   :  { %v6757_v2 = vadd.f32 %v6756_v38, %v6755_v4 }
 0x4c4   :  { %v1759_v3 = vadd.f32 %v6729_v37, %v6244_v29  ;;  %v1805_v39 = vadd.f32 %v6754_v34, %v1756_v36 }
 0x4c6   :  { %v6730_v40 = vpop.f32.mrb[20].mxu1  ;;  %v1808_v41 = vadd.f32 %v6757_v2, %v1759_v3 }
 0x4c7   :  { %v6758_v42 = vpop.f32.mrb[20].mxu0  ;;  %v6731_v44 = vpop.f32.mrb[21].mxu1 }
 0x4c8   :  { %v6732_v45 = vadd.f32 %v6731_v44, %v6730_v40  ;;  %v6759_v46 = vpop.f32.mrb[21].mxu0  ;;  %v6733_v47 = vpop.f32.mrb[22].mxu1 }
 0x4c9   :  { %v6760_v48 = vadd.f32 %v6759_v46, %v6758_v42  ;;  %v6761_v0 = vpop.f32.mrb[22].mxu0  ;;  %v6734_v49 = vpop.f32.mrb[23].mxu1  ;;  %v7724_v46 = vld [vmem:[#allocation13 + $0xc0] sm:$0xff]  }
 0x4ca   :  { %v1764_v50 = vadd.f32 %v6732_v45, %v6244_v29  ;;  %v6735_v51 = vadd.f32 %v6734_v49, %v6733_v47  ;;  %v6762_v52 = vpop.f32.mrb[23].mxu0  ;;  %v7723_v45 = vld [vmem:[#allocation13 + $0x40] sm:$0xff]   ;;  %6840 = vmatprep.subr.bf16.mxu1 %v7724_v46  ;;  %v7728_v49 = vld [vmem:[#allocation13 + $0xc8] sm:$0xff]  }
 0x4cb   :  { %v6763_v55 = vadd.f32 %v6762_v52, %v6761_v0  ;;  %v7725_v47 = vld [vmem:[#allocation13] sm:$0xff]   ;;  %6812 = vmatprep.subr.bf16.mxu0 %v7723_v45  ;;  %v7727_v0 = vld [vmem:[#allocation13 + $0x48] sm:$0xff]   ;;  %v7731_v52 = vld [vmem:[#allocation13 + $0x50] sm:$0xff]  }
 0x4cc   :  { %v1767_v56 = vadd.f32 %v6735_v51, %v6244_v29  ;;  %v1813_v57 = vadd.f32 %v6760_v48, %v1764_v50  ;;  %v7726_v48 = vld [vmem:[#allocation13 + $0x80] sm:$0xff]   ;;  %v7729_v50 = vld [vmem:[#allocation13 + $0x8] sm:$0xff]  }
 0x4cd   :  { %v7730_v51 = vld [vmem:[#allocation13 + $0x88] sm:$0xff]  }
 0x4ce   :  { %v1816_v58 = vadd.f32 %v6763_v55, %v1767_v56  ;;  %v7732_v55 = vld [vmem:[#allocation13 + $0xd0] sm:$0xff]  }
 0x4cf   :  { %v7733_v56 = vld [vmem:[#allocation13 + $0x10] sm:$0xff]  }
 0x4de   :  { %v7303_v59 = vpop.f32.mrb[24].mxu1 }
 0x4df   :  { %v1862_v43 = vadd.f32 %v7303_v59, %v1813_v57  ;;  %v1853_v60 = vpop.f32.mrb[25].mxu1  ;;  %v7734_v57 = vld [vmem:[#allocation13 + $0x90] sm:$0xff]   ;;  %v7736_v59 = vld [vmem:[#allocation13 + $0xd8] sm:$0xff]  }
 0x4e0   :  { %v1854_v62 = vadd.f32 %v1853_v60, %v1805_v39  ;;  %v7304_v63 = vpop.f32.mrb[26].mxu1  ;;  %v7738_v60 = vld [vmem:[#allocation13 + $0x98] sm:$0xff]  }
 0x4e1   :  { %v1865_v1 = vadd.f32 %v7304_v63, %v1816_v58  ;;  %v1856_v8 = vpop.f32.mrb[27].mxu1  ;;  %v1870_v5 = vmax.f32 %v1862_v43, 0.0  ;;  %v7735_v58 = vld [vmem:[#allocation13 + $0x58] sm:$0xff]   ;;  %v7740_v63 = vld [vmem:[#allocation13 + $0xe0] sm:$0xff]  }
 0x4e2   :  { %v1857_v9 = vadd.f32 %v1856_v8, %v1808_v41  ;;  %v1868_v11 = vmax.f32 %v1854_v62, 0.0  ;;  %v7737_v43 = vld [vmem:[#allocation13 + $0x18] sm:$0xff]   ;;  %v7739_v62 = vld [vmem:[#allocation13 + $0x60] sm:$0xff]  }
 0x4e3   :  { %v1871_v10 = vmax.f32 %v1865_v1, 0.0  ;;  %v7741_v1 = vld [vmem:[#allocation13 + $0x20] sm:$0xff]  }
 0x4e4   :  { %v1869_v12 = vmax.f32 %v1857_v9, 0.0  ;;  %v7742_v8 = vld [vmem:[#allocation13 + $0xa0] sm:$0xff]   ;;  %v7743_v9 = vld [vmem:[#allocation13 + $0x68] sm:$0xff]  }
 0x4e5   :  { %v1873_v6 = vpack.c.bf16 %v1871_v10, %v1870_v5  ;;  %v7744_v5 = vld [vmem:[#allocation13 + $0xe8] sm:$0xff]  }
 0x4e6   :  { %v1872_v7 = vpack.c.bf16 %v1869_v12, %v1868_v11  ;;  %v7745_v10 = vld [vmem:[#allocation13 + $0x28] sm:$0xff]   ;;  %v7747_v12 = vld [vmem:[#allocation13 + $0x70] sm:$0xff]  }
 0x4e7   :  { %v1882_v13 = vshrl.u32 %v1873_v6, 16  ;;  %v1885_v16 = vshll.u32 %v1873_v6, 16  ;;  %v7746_v11 = vld [vmem:[#allocation13 + $0xa8] sm:$0xff]   ;;  %v7748_v6 = vld [vmem:[#allocation13 + $0xf0] sm:$0xff]  }
 0x4e8   :  { %v1875_v14 = vshrl.u32 %v1872_v7, 16  ;;  %v1878_v19 = vshll.u32 %v1872_v7, 16  ;;  %v7749_v7 = vld [vmem:[#allocation13 + $0x30] sm:$0xff]  }
 0x4e9   :  { %v1884_v15 = vrot.slane %v1882_v13, 7  ;;  %v7750_v13 = vld [vmem:[#allocation13 + $0xb0] sm:$0xff]  }
 0x4ea   :  { %v1877_v18 = vrot.slane %v1875_v14, 7  ;;  %v7751_v14 = vld [vmem:[#allocation13 + $0x78] sm:$0xff]  }
 0x4eb   :  { %v1887_v20 = vor.u32 %v1885_v16, %v1884_v15  ;;  %v1898_v24 = vsel %vm9085_vm12, %v1884_v15, 0  ;;  %v7752_v15 = vld [vmem:[#allocation13 + $0xf8] sm:$0xff]  }
 0x4ec   :  { %v1880_v21 = vor.u32 %v1878_v19, %v1877_v18  ;;  %v1897_v22 = vsel %vm9085_vm12, %v1877_v18, 0  ;;  %v1933_v33 = vrot.slane %v1898_v24, 1  ;;  %v1919_v4 = vshll.u32 %v1898_v24, 16  ;;  %v7753_v16 = vld [vmem:[#allocation13 + $0x38] sm:$0xff]   ;;  %v7755_v19 = vld [vmem:[#allocation13 + $0x140] sm:$0xff]  }
 0x4ed   :  { %v1896_v23 = vsel %vm9085_vm12, 0, %v1887_v20  ;;  %v1930_v30 = vrot.slane %v1897_v22, 1  ;;  %v1907_v32 = vshll.u32 %v1897_v22, 16  ;;  %v7754_v18 = vld [vmem:[#allocation13 + $0xb8] sm:$0xff]   ;;  %v9101_v20 = vld [vmem:[#allocation13 + $0x180] sm:$0xff]  }
 0x4ee   :  { %v1895_v25 = vsel %vm9085_vm12, 0, %v1880_v21  ;;  %v1932_v27 = vrot.slane %v1896_v23, 1  ;;  %v1914_v28 = vshll.u32 %v1896_v23, 16  ;;  %v1912_v38 = vshrl.u32 %v1896_v23, 16 }
 0x4ef   :  { %v1929_v29 = vrot.slane %v1895_v25, 1  ;;  %v1902_v31 = vshll.u32 %v1895_v25, 16  ;;  %v1900_v36 = vshrl.u32 %v1895_v25, 16  ;;  %v1909_v39 = vrot.slane %v1907_v32, 1 }
 0x4f0   :  { %v1916_v34 = vrot.slane %v1914_v28, 1  ;;  %v1934_v2 = vsel %vm596_vm4, %v1932_v27, %v1933_v33  ;;  %v1921_v42 = vrot.slane %v1919_v4, 1  ;;  %v6289_v27 = vld [vmem:[#allocation11] ss:$0 sm:$0xff]  ;;  %v2234_v4 = vunpack.c.l.bf16 %v8946_v54 }
 0x4f1   :  { %v1931_v35 = vsel %vm596_vm4, %v1929_v29, %v1930_v30  ;;  %v1904_v37 = vrot.slane %v1902_v31, 1 }
 0x4f2   :  { %7321 = vmatprep.mubr.bf16.mxu1 %v1931_v35  ;;  %v1917_v40 = vor.u32 %v1916_v34, %v1912_v38  ;;  %v2235_v38 = vunpack.c.h.bf16 %v8946_v54 }
 0x4f3   :  { %7322 = vmatmul.mubr.bf16.vlgmr.msra.gmra.mrb[28].mxu1 %v1934_v2  ;;  %v1905_v3 = vor.u32 %v1904_v37, %v1900_v36 }
 0x4f4   :  { %v1922_v44 = vsel %vm565_vm3, %v1917_v40, %v1921_v42  ;;  %6841 = vmatpush3.bf16.msra.mxu1 %v7726_v48 }
 0x4f5   :  { %v1910_v41 = vsel %vm565_vm3, %v1905_v3, %v1909_v39  ;;  %6842 = vmatprep.subr.bf16.mxu1 %v7728_v49  ;;  %v2236_v49 = vunpack.c.l.bf16 %v8944_v53 }
 0x4f6   :  { %2168 = vmatprep.mubr.bf16.mxu0 %v1910_v41 }
 0x4f7   :  { %2169 = vmatmul.mubr.bf16.vlgmr.msra.gmra.mrb[24].mxu0 %v1895_v25 }
 0x4f8   :  { %2176 = vmatprep.mubr.bf16.mxu0 %v1922_v44  ;;  %6813 = vmatpush3.bf16.msra.mxu0 %v7725_v47 }
 0x4f9   :  { %6814 = vmatprep.subr.bf16.mxu0 %v7727_v0  ;;  %6843 = vmatpush3.bf16.msra.mxu1 %v7730_v51  ;;  %v2237_v51 = vunpack.c.h.bf16 %v8944_v53 }
 0x4fa   :  { %6844 = vmatprep.subr.bf16.mxu1 %v7732_v55 }
 0x4fc   :  { %6815 = vmatpush3.bf16.msra.mxu0 %v7729_v50 }
 0x4fd   :  { %6816 = vmatprep.subr.bf16.mxu0 %v7731_v52  ;;  %6845 = vmatpush3.bf16.msra.mxu1 %v7734_v57 }
 0x4fe   :  { %6846 = vmatprep.subr.bf16.mxu1 %v7736_v59 }
 0x4ff   :  { %2177 = vmatmul.mubr.bf16.gmra.mrb[28].mxu0 %v1896_v23 }
 0x500   :  { %6817 = vmatpush3.bf16.msra.mxu0 %v7733_v56 }
 0x501   :  { %6818 = vmatprep.subr.bf16.mxu0 %v7735_v58  ;;  %6847 = vmatpush3.bf16.msra.mxu1 %v7738_v60 }
 0x502   :  { %6848 = vmatprep.subr.bf16.mxu1 %v7740_v63 }
 0x504   :  { %6819 = vmatpush3.bf16.msra.mxu0 %v7737_v43 }
 0x505   :  { %6820 = vmatprep.subr.bf16.mxu0 %v7739_v62  ;;  %6849 = vmatpush3.bf16.msra.mxu1 %v7742_v8 }
 0x506   :  { %6850 = vmatprep.subr.bf16.mxu1 %v7744_v5 }
 0x508   :  { %6821 = vmatpush3.bf16.msra.mxu0 %v7741_v1 }
 0x509   :  { %6822 = vmatprep.subr.bf16.mxu0 %v7743_v9  ;;  %6851 = vmatpush3.bf16.msra.mxu1 %v7746_v11 }
 0x50a   :  { %6852 = vmatprep.subr.bf16.mxu1 %v7748_v6 }
 0x50c   :  { %6823 = vmatpush3.bf16.msra.mxu0 %v7745_v10 }
 0x50d   :  { %6824 = vmatprep.subr.bf16.mxu0 %v7747_v12  ;;  %6853 = vmatpush3.bf16.msra.mxu1 %v7750_v13 }
 0x50e   :  { %6854 = vmatprep.subr.bf16.mxu1 %v7752_v15 }
 0x510   :  { %6825 = vmatpush3.bf16.msra.mxu0 %v7749_v7 }
 0x511   :  { %6826 = vmatprep.subr.bf16.mxu0 %v7751_v14  ;;  %6855 = vmatpush3.bf16.msra.mxu1 %v7754_v18 }
 0x512   :  { %7325 = vmatprep.subr.bf16.mxu1 %v9101_v20 }
 0x514   :  { %6827 = vmatpush3.bf16.msra.mxu0 %v7753_v16 }
 0x515   :  { %6868 = vmatprep.subr.bf16.mxu0 %v7755_v19 }
 0x5c6   :  { %v7323_v21 = vpop.f32.mrb[28].mxu1 }
 0x5c7   :  { %v2219_v22 = vpop.f32.mrb[29].mxu1 }
 0x5c8   :  { %v7324_v23 = vpop.f32.mrb[30].mxu1 }
 0x5c9   :  { %v2222_v24 = vpop.f32.mrb[31].mxu1 }
 0x5ca   :  { %v6790_v25 = vpop.f32.mrb[24].mxu0 }
 0x5cb   :  { %v6791_v28 = vpop.f32.mrb[25].mxu0 }
 0x5cc   :  { %v6792_v29 = vadd.f32 %v6791_v28, %v6790_v25  ;;  %v6793_v30 = vpop.f32.mrb[26].mxu0  ;;  %v7757_v28 = vld [vmem:[#allocation13 + $0x100] sm:$0xff]  }
 0x5cd   :  { %v6794_v31 = vpop.f32.mrb[27].mxu0 }
 0x5ce   :  { %v2171_v32 = vadd.f32 %v6792_v29, %v6289_v27  ;;  %v6795_v33 = vadd.f32 %v6794_v31, %v6793_v30  ;;  %v7758_v30 = vld [vmem:[#allocation13 + $0x148] sm:$0xff]  }
 0x5d0   :  { %v2220_v34 = vadd.f32 %v2219_v22, %v2171_v32  ;;  %v2174_v35 = vadd.f32 %v6795_v33, %v6289_v27 }
 0x5d2   :  { %v2238_v36 = vadd.f32 %v2234_v4, %v2220_v34  ;;  %v2223_v37 = vadd.f32 %v2222_v24, %v2174_v35  ;;  %v6796_v2 = vpop.f32.mrb[28].mxu0  ;;  %v7759_v34 = vld [vmem:[#allocation13 + $0x188] sm:$0xff]  }
 0x5d3   :  { %v6797_v3 = vpop.f32.mrb[29].mxu0 }
 0x5d4   :  { %v2239_v39 = vadd.f32 %v2235_v38, %v2223_v37  ;;  %v6798_v40 = vadd.f32 %v6797_v3, %v6796_v2  ;;  %v6799_v41 = vpop.f32.mrb[30].mxu0  ;;  %v2242_v44 = vmax.f32 %v2238_v36, 0.0  ;;  %v7760_v2 = vld [vmem:[#allocation13 + $0x108] sm:$0xff]  }
 0x5d5   :  { %v6800_v42 = vpop.f32.mrb[31].mxu0 }
 0x5d6   :  { %v2243_v45 = vmax.f32 %v2239_v39, 0.0  ;;  %v2179_v46 = vadd.f32 %v6798_v40, %v6289_v27  ;;  %v6801_v47 = vadd.f32 %v6800_v42, %v6799_v41 }
 0x5d8   :  { %v9106_v48 = vpack.c.bf16 %v2243_v45, %v2242_v44  ;;  %v2228_v0 = vadd.f32 %v7323_v21, %v2179_v46  ;;  %v2182_v50 = vadd.f32 %v6801_v47, %v6289_v27  ;;  %v7761_v46 = vld [vmem:[#allocation13 + $0x150] sm:$0xff]  }
 0x5da   :  { %v2249_v54 = vshrl.u32 %v9106_v48, 16  ;;  %v2252_v52 = vshll.u32 %v9106_v48, 16  ;;  %v2240_v55 = vadd.f32 %v2236_v49, %v2228_v0  ;;  %v2231_v56 = vadd.f32 %v7324_v23, %v2182_v50  ;;  %v7762_v49 = vld [vmem:[#allocation13 + $0x190] sm:$0xff]  }
 0x5dc   :  { %v2251_v57 = vrot.slane %v2249_v54, 6  ;;  %v2254_v58 = vrot.slane %v2252_v52, 7  ;;  %v2241_v59 = vadd.f32 %v2237_v51, %v2231_v56  ;;  %v2244_v60 = vmax.f32 %v2240_v55, 0.0  ;;  %v7763_v56 = vld [vmem:[#allocation13 + $0x110] sm:$0xff]  }
 0x5de   :  { %v2255_v43 = vor.u32 %v2254_v58, %v2251_v57  ;;  %v2245_v62 = vmax.f32 %v2241_v59, 0.0 }
 0x5e0   :  { %v9114_v63 = vsel %vm8953_vm2, 0, %v2255_v43  ;;  %v9116_v1 = vpack.c.bf16 %v2245_v62, %v2244_v60  ;;  %v9120_v53 = vsel %vm8953_vm2, %v2255_v43, 0 }
 0x5e1   :  { %v2271_v8 = vshrl.u32 %v9114_v63, 16  ;;  %v2273_v9 = vshll.u32 %v9114_v63, 16  ;;  %v2278_v5 = vshll.u32 %v9120_v53, 16  ;;  %v2311_v10 = vshrl.u32 %v9120_v53, 16 }
 0x5e2   :  { %v2257_v11 = vshrl.u32 %v9116_v1, 16  ;;  %v2260_v12 = vshll.u32 %v9116_v1, 16  ;;  %v2300_v6 = vrot.slane %v9114_v63, 1  ;;  %v2301_v15 = vrot.slane %v9120_v53, 1 }
 0x5e3   :  { %v2275_v7 = vrot.slane %v2273_v9, 1  ;;  %v2308_v13 = vrot.slane %v2271_v8, 1  ;;  %v2309_v14 = vrot.slane %v2273_v9, 2  ;;  %v2313_v19 = vrot.slane %v2311_v10, 1 }
 0x5e4   :  { %v2259_v16 = vrot.slane %v2257_v11, 6  ;;  %v2262_v18 = vrot.slane %v2260_v12, 7  ;;  %v2314_v21 = vrot.slane %v2278_v5, 2  ;;  %v2280_v23 = vrot.slane %v2278_v5, 1  ;;  %v7766_v11 = vld [vmem:[#allocation13 + $0x118] sm:$0xff]  }
 0x5e5   :  { %v2276_v22 = vor.u32 %v2275_v7, %v2271_v8  ;;  %v2310_v24 = vor.u32 %v2309_v14, %v2308_v13  ;;  %v2302_v33 = vsel %vm596_vm4, %v2300_v6, %v2301_v15  ;;  %v2336_v3 = vrot.slane %v2271_v8, 2  ;;  %v7764_v8 = vld [vmem:[#allocation13 + $0x158] sm:$0xff]   ;;  %v7767_v6 = vld [vmem:[#allocation13 + $0x160] sm:$0xff]   ;;  %v7770_v14 = vld [vmem:[#allocation13 + $0x168] sm:$0xff]  }
 0x5e6   :  { %v2263_v25 = vor.u32 %v2262_v18, %v2259_v16  ;;  %v2315_v27 = vor.u32 %v2314_v21, %v2313_v19  ;;  %v2337_v39 = vrot.slane %v2273_v9, 3  ;;  %v2339_v40 = vrot.slane %v2311_v10, 2  ;;  %v7768_v7 = vld [vmem:[#allocation13 + $0x1a0] sm:$0xff]   ;;  %v7771_v15 = vld [vmem:[#allocation13 + $0x1a8] sm:$0xff]   ;;  %v7773_v18 = vld [vmem:[#allocation13 + $0x170] sm:$0xff]  }
 0x5e7   :  { %v2281_v29 = vsel %vm565_vm3, %v2276_v22, %v2280_v23  ;;  %v2340_v41 = vrot.slane %v2278_v5, 3  ;;  %v2352_v43 = vrot.slane %v9114_v63, 3  ;;  %v2353_v60 = vrot.slane %v9120_v53, 3  ;;  %v7765_v5 = vld [vmem:[#allocation13 + $0x198] sm:$0xff]   ;;  %v7769_v13 = vld [vmem:[#allocation13 + $0x120] sm:$0xff]   ;;  %v7772_v16 = vld [vmem:[#allocation13 + $0x128] sm:$0xff]  }
 0x5e8   :  { %v9133_v31 = vsel %vm8953_vm2, 0, %v2263_v25  ;;  %2847 = vmatprep.mubr.bf16.mxu0 %v2281_v29  ;;  %v2316_v32 = vsel %vm605_vm5, %v2310_v24, %v2315_v27  ;;  %v9139_v4 = vsel %vm8953_vm2, %v2263_v25, 0  ;;  %v2338_v57 = vor.u32 %v2337_v39, %v2336_v3  ;;  %v7774_v19 = vld [vmem:[#allocation13 + $0x1b0] sm:$0xff]   ;;  %v7776_v22 = vld [vmem:[#allocation13 + $0x178] sm:$0xff]   ;;  %v7779_v39 = vld [vmem:[#allocation16 + $0x40] sm:$0xff]  }
 0x5e9   :  { %2896 = vmatprep.mubr.bf16.mxu1 %v2316_v32  ;;  %2848 = vmatmul.mubr.bf16.vlgmr.msra.gmra.mrb[32].mxu0 %v9114_v63  ;;  %v9143_v35 = vshrl.u32 %v9133_v31, 16  ;;  %v9146_v36 = vshll.u32 %v9133_v31, 16  ;;  %v9149_v37 = vshll.u32 %v9139_v4, 16  ;;  %v2320_v38 = vshrl.u32 %v9139_v4, 16  ;;  %v7775_v21 = vld [vmem:[#allocation13 + $0x130] sm:$0xff]   ;;  %v7777_v23 = vld [vmem:[#allocation13 + $0x1b8] sm:$0xff]  }
 0x5ea   :  { %2897 = vmatmul.mubr.bf16.vlgmr.msra.gmra.mrb[32].mxu1 %v2302_v33  ;;  %6869 = vmatpush3.bf16.msra.mxu0 %v7757_v28  ;;  %v2303_v50 = vrot.slane %v9133_v31, 1  ;;  %v2304_v52 = vrot.slane %v9139_v4, 1  ;;  %v2341_v58 = vor.u32 %v2340_v41, %v2339_v40  ;;  %v2354_v12 = vsel %vm652_vm7, %v2352_v43, %v2353_v60  ;;  %v7778_v29 = vld [vmem:[#allocation13 + $0x138] sm:$0xff]   ;;  %v7780_v40 = vld [vmem:[#allocation16] sm:$0xff]   ;;  %v7801_v43 = vld [vmem:[#allocation16 + $0xe8] sm:$0xff]  }
 0x5eb   :  { %7326 = vmatpush3.bf16.msra.mxu1 %v9101_v20  ;;  %6870 = vmatprep.subr.bf16.mxu0 %v7758_v30  ;;  %v2287_v42 = vrot.slane %v9146_v36, 1  ;;  %v2317_v44 = vrot.slane %v9143_v35, 1  ;;  %v2318_v45 = vrot.slane %v9146_v36, 2  ;;  %v2322_v47 = vrot.slane %v2320_v38, 1  ;;  %v7781_v41 = vld [vmem:[#allocation16 + $0xc0] sm:$0xff]   ;;  %v7802_v60 = vld [vmem:[#allocation16 + $0xa8] sm:$0xff]  }
 0x5ec   :  { %7327 = vmatprep.subr.bf16.mxu1 %v7759_v34  ;;  %v2323_v0 = vrot.slane %v9149_v37, 2  ;;  %v2292_v20 = vrot.slane %v9149_v37, 1  ;;  %v2305_v9 = vsel %vm596_vm4, %v2303_v50, %v2304_v52  ;;  %v2342_v10 = vsel %vm635_vm6, %v2338_v57, %v2341_v58  ;;  %v7791_v50 = vld [vmem:[#allocation16 + $0x58] sm:$0xff]   ;;  %v7795_v52 = vld [vmem:[#allocation16 + $0x60] sm:$0xff]   ;;  %v7799_v58 = vld [vmem:[#allocation16 + $0x68] sm:$0xff]  }
 0x5ed   :  { %v2288_v51 = vor.u32 %v2287_v42, %v9143_v35  ;;  %v2319_v54 = vor.u32 %v2318_v45, %v2317_v44  ;;  %v2343_v24 = vrot.slane %v9143_v35, 2  ;;  %v2344_v25 = vrot.slane %v9146_v36, 3  ;;  %v7782_v42 = vld [vmem:[#allocation16 + $0x80] sm:$0xff]   ;;  %v7783_v44 = vld [vmem:[#allocation16 + $0x48] sm:$0xff]  }
 0x5ee   :  { %6871 = vmatpush3.bf16.msra.mxu0 %v7760_v2  ;;  %v2324_v55 = vor.u32 %v2323_v0, %v2322_v47  ;;  %v2346_v27 = vrot.slane %v2320_v38, 2  ;;  %v2347_v28 = vrot.slane %v9149_v37, 3  ;;  %v2328_v30 = vrot.slane %v9114_v63, 2  ;;  %v7785_v45 = vld [vmem:[#allocation16 + $0xc8] sm:$0xff]   ;;  %v7789_v0 = vld [vmem:[#allocation16 + $0xd0] sm:$0xff]   ;;  %v7798_v57 = vld [vmem:[#allocation16 + $0xa0] sm:$0xff]  }
 0x5ef   :  { %7328 = vmatpush3.bf16.msra.mxu1 %v7759_v34  ;;  %v2293_v59 = vsel %vm565_vm3, %v2288_v51, %v2292_v20  ;;  %6872 = vmatprep.subr.bf16.mxu0 %v7761_v46  ;;  %v2329_v32 = vrot.slane %v9120_v53, 2  ;;  %v2355_v33 = vrot.slane %v9133_v31, 3  ;;  %v2356_v34 = vrot.slane %v9139_v4, 3  ;;  %v7784_v46 = vld [vmem:[#allocation16 + $0x8] sm:$0xff]   ;;  %v7792_v51 = vld [vmem:[#allocation16 + $0x18] sm:$0xff]  }
 0x5f0   :  { %2855 = vmatprep.mubr.bf16.mxu0 %v2293_v59  ;;  %v2325_v62 = vsel %vm605_vm5, %v2319_v54, %v2324_v55  ;;  %7329 = vmatprep.subr.bf16.mxu1 %v7762_v49  ;;  %v2345_v35 = vor.u32 %v2344_v25, %v2343_v24  ;;  %v2348_v36 = vor.u32 %v2347_v28, %v2346_v27  ;;  %v2331_v63 = vrot.slane %v9133_v31, 2  ;;  %v7786_v47 = vld [vmem:[#allocation16 + $0x88] sm:$0xff]   ;;  %v7793_v20 = vld [vmem:[#allocation16 + $0xd8] sm:$0xff]   ;;  %v7796_v55 = vld [vmem:[#allocation16 + $0x20] sm:$0xff]  }
 0x5f1   :  { %2904 = vmatprep.mubr.bf16.mxu1 %v2325_v62  ;;  %2856 = vmatmul.mubr.bf16.gmra.mrb[36].mxu0 %v9133_v31  ;;  %v2330_v38 = vsel %vm626_vm8, %v2328_v30, %v2329_v32  ;;  %v2357_v37 = vsel %vm652_vm7, %v2355_v33, %v2356_v34  ;;  %v2332_v53 = vrot.slane %v9139_v4, 2  ;;  %v7787_v31 = vld [vmem:[#allocation16 + $0x50] sm:$0xff]   ;;  %v7794_v54 = vld [vmem:[#allocation16 + $0x98] sm:$0xff]   ;;  %v7800_v59 = vld [vmem:[#allocation16 + $0x28] sm:$0xff]  }
 0x5f2   :  { %2905 = vmatmul.mubr.bf16.gmra.mrb[36].mxu1 %v2305_v9  ;;  %6873 = vmatpush3.bf16.msra.mxu0 %v7763_v56  ;;  %v2349_v2 = vsel %vm635_vm6, %v2345_v35, %v2348_v36  ;;  %v7788_v4 = vld [vmem:[#allocation16 + $0x10] sm:$0xff]   ;;  %v7797_v56 = vld [vmem:[#allocation16 + $0xe0] sm:$0xff]  }
 0x5f3   :  { %7330 = vmatpush3.bf16.msra.mxu1 %v7762_v49  ;;  %2945 = vmatprep.mubr.bf16.mxu0 %v2342_v10  ;;  %v2333_v3 = vsel %vm626_vm8, %v2331_v63, %v2332_v53  ;;  %v7790_v49 = vld [vmem:[#allocation16 + $0x90] sm:$0xff]   ;;  %v7807_v10 = vld [vmem:[#allocation16 + $0x78] sm:$0xff]  }
 0x5f4   :  { %7341 = vmatprep.mubr.bf16.mxu1 %v2354_v12  ;;  %6874 = vmatprep.subr.bf16.mxu0 %v7764_v8  ;;  %v7803_v62 = vld [vmem:[#allocation16 + $0x70] sm:$0xff]   ;;  %v7808_v12 = vld [vmem:[#allocation16 + $0x38] sm:$0xff]  }
 0x5f5   :  { %7331 = vmatprep.subr.bf16.mxu1 %v7765_v5  ;;  %v7804_v8 = vld [vmem:[#allocation16 + $0x30] sm:$0xff]  }
 0x5f6   :  { %6875 = vmatpush3.bf16.msra.mxu0 %v7766_v11  ;;  %v7805_v9 = vld [vmem:[#allocation16 + $0xf0] sm:$0xff]   ;;  %v7809_v11 = vld [vmem:[#allocation16 + $0xf8] sm:$0xff]  }
 0x5f7   :  { %7332 = vmatpush3.bf16.msra.mxu1 %v7765_v5  ;;  %6876 = vmatprep.subr.bf16.mxu0 %v7767_v6  ;;  %v7806_v5 = vld [vmem:[#allocation16 + $0xb0] sm:$0xff]   ;;  %v7810_v6 = vld [vmem:[#allocation16 + $0xb8] sm:$0xff]  }
 0x5f8   :  { %7333 = vmatprep.subr.bf16.mxu1 %v7768_v7 }
 0x5fa   :  { %6877 = vmatpush3.bf16.msra.mxu0 %v7769_v13 }
 0x5fb   :  { %7334 = vmatpush3.bf16.msra.mxu1 %v7768_v7  ;;  %6878 = vmatprep.subr.bf16.mxu0 %v7770_v14  ;;  %v9186_v7 = vld [vmem:[#allocation16 + $0x100] sm:$0xff]  }
 0x5fc   :  { %7335 = vmatprep.subr.bf16.mxu1 %v7771_v15 }
 0x5fe   :  { %6879 = vmatpush3.bf16.msra.mxu0 %v7772_v16 }
 0x5ff   :  { %7336 = vmatpush3.bf16.msra.mxu1 %v7771_v15  ;;  %6880 = vmatprep.subr.bf16.mxu0 %v7773_v18  ;;  %v6314_v15 = vld [vmem:[#allocation14] ss:$0 sm:$0xff] }
 0x600   :  { %7337 = vmatprep.subr.bf16.mxu1 %v7774_v19 }
 0x602   :  { %6881 = vmatpush3.bf16.msra.mxu0 %v7775_v21 }
 0x603   :  { %7338 = vmatpush3.bf16.msra.mxu1 %v7774_v19  ;;  %6882 = vmatprep.subr.bf16.mxu0 %v7776_v22 }
 0x604   :  { %7339 = vmatprep.subr.bf16.mxu1 %v7777_v23 }
 0x606   :  { %6883 = vmatpush3.bf16.msra.mxu0 %v7778_v29 }
 0x607   :  { %7340 = vmatpush3.bf16.msra.mxu1 %v7777_v23  ;;  %6906 = vmatprep.subr.bf16.mxu0 %v7779_v39 }
 0x608   :  { %6934 = vmatprep.subr.bf16.mxu1 %v7781_v41 }
 0x609   :  { %2946 = vmatmul.mubr.bf16.vlgmr.msra.gmra.mrb[40].mxu0 %v2330_v38 }
 0x60a   :  { %7342 = vmatmul.mubr.bf16.vlgmr.msra.gmra.mrb[40].mxu1 %v2357_v37  ;;  %2953 = vmatprep.mubr.bf16.mxu0 %v2349_v2 }
 0x60b   :  { %6907 = vmatpush3.bf16.msra.mxu0 %v7780_v40  ;;  %6935 = vmatpush3.bf16.msra.mxu1 %v7782_v42 }
 0x60c   :  { %6908 = vmatprep.subr.bf16.mxu0 %v7783_v44  ;;  %6936 = vmatprep.subr.bf16.mxu1 %v7785_v45 }
 0x60f   :  { %6909 = vmatpush3.bf16.msra.mxu0 %v7784_v46  ;;  %6937 = vmatpush3.bf16.msra.mxu1 %v7786_v47 }
 0x610   :  { %6910 = vmatprep.subr.bf16.mxu0 %v7787_v31  ;;  %6938 = vmatprep.subr.bf16.mxu1 %v7789_v0 }
 0x611   :  { %2954 = vmatmul.mubr.bf16.gmra.mrb[44].mxu0 %v2333_v3 }
 0x613   :  { %6911 = vmatpush3.bf16.msra.mxu0 %v7788_v4  ;;  %6939 = vmatpush3.bf16.msra.mxu1 %v7790_v49 }
 0x614   :  { %6912 = vmatprep.subr.bf16.mxu0 %v7791_v50  ;;  %6940 = vmatprep.subr.bf16.mxu1 %v7793_v20 }
 0x617   :  { %6913 = vmatpush3.bf16.msra.mxu0 %v7792_v51  ;;  %6941 = vmatpush3.bf16.msra.mxu1 %v7794_v54 }
 0x618   :  { %6914 = vmatprep.subr.bf16.mxu0 %v7795_v52  ;;  %6942 = vmatprep.subr.bf16.mxu1 %v7797_v56 }
 0x61b   :  { %6915 = vmatpush3.bf16.msra.mxu0 %v7796_v55  ;;  %6943 = vmatpush3.bf16.msra.mxu1 %v7798_v57 }
 0x61c   :  { %6916 = vmatprep.subr.bf16.mxu0 %v7799_v58  ;;  %6944 = vmatprep.subr.bf16.mxu1 %v7801_v43 }
 0x61f   :  { %6917 = vmatpush3.bf16.msra.mxu0 %v7800_v59  ;;  %6945 = vmatpush3.bf16.msra.mxu1 %v7802_v60 }
 0x620   :  { %6918 = vmatprep.subr.bf16.mxu0 %v7803_v62  ;;  %6946 = vmatprep.subr.bf16.mxu1 %v7805_v9 }
 0x623   :  { %6919 = vmatpush3.bf16.msra.mxu0 %v7804_v8  ;;  %6947 = vmatpush3.bf16.msra.mxu1 %v7806_v5 }
 0x624   :  { %6920 = vmatprep.subr.bf16.mxu0 %v7807_v10  ;;  %6948 = vmatprep.subr.bf16.mxu1 %v7809_v11 }
 0x627   :  { %6921 = vmatpush3.bf16.msra.mxu0 %v7808_v12  ;;  %6949 = vmatpush3.bf16.msra.mxu1 %v7810_v6 }
 0x628   :  { %7345 = vmatprep.subr.bf16.mxu0 %v9186_v7 }
 0x6bc   :  { %v6828_v13 = vpop.f32.mrb[32].mxu0 }
 0x6bd   :  { %v6856_v14 = vpop.f32.mrb[32].mxu1  ;;  %v6829_v16 = vpop.f32.mrb[33].mxu0 }
 0x6be   :  { %v6830_v18 = vadd.f32 %v6829_v16, %v6828_v13  ;;  %v6857_v19 = vpop.f32.mrb[33].mxu1  ;;  %v6831_v21 = vpop.f32.mrb[34].mxu0 }
 0x6bf   :  { %v6858_v22 = vadd.f32 %v6857_v19, %v6856_v14  ;;  %v6859_v23 = vpop.f32.mrb[34].mxu1  ;;  %v6832_v24 = vpop.f32.mrb[35].mxu0 }
 0x6c0   :  { %v2850_v25 = vadd.f32 %v6830_v18, %v6314_v15  ;;  %v6833_v27 = vadd.f32 %v6832_v24, %v6831_v21  ;;  %v6860_v28 = vpop.f32.mrb[35].mxu1 }
 0x6c1   :  { %v6861_v29 = vadd.f32 %v6860_v28, %v6859_v23 }
 0x6c2   :  { %v2899_v30 = vadd.f32 %v6858_v22, %v2850_v25  ;;  %v2853_v32 = vadd.f32 %v6833_v27, %v6314_v15 }
 0x6c4   :  { %v2902_v33 = vadd.f32 %v6861_v29, %v2853_v32  ;;  %v6834_v34 = vpop.f32.mrb[36].mxu0 }
 0x6c5   :  { %v6862_v35 = vpop.f32.mrb[36].mxu1  ;;  %v6835_v36 = vpop.f32.mrb[37].mxu0 }
 0x6c6   :  { %v6836_v38 = vadd.f32 %v6835_v36, %v6834_v34  ;;  %v6863_v37 = vpop.f32.mrb[37].mxu1  ;;  %v6837_v2 = vpop.f32.mrb[38].mxu0 }
 0x6c7   :  { %v6864_v63 = vadd.f32 %v6863_v37, %v6862_v35  ;;  %v6865_v53 = vpop.f32.mrb[38].mxu1  ;;  %v6838_v3 = vpop.f32.mrb[39].mxu0 }
 0x6c8   :  { %v2858_v39 = vadd.f32 %v6836_v38, %v6314_v15  ;;  %v6839_v40 = vadd.f32 %v6838_v3, %v6837_v2  ;;  %v6866_v41 = vpop.f32.mrb[39].mxu1  ;;  %v7812_v3 = vld [vmem:[#allocation16 + $0x108] sm:$0xff]  }
 0x6c9   :  { %v6867_v42 = vadd.f32 %v6866_v41, %v6865_v53 }
 0x6ca   :  { %v2907_v44 = vadd.f32 %v6864_v63, %v2858_v39  ;;  %v2861_v45 = vadd.f32 %v6839_v40, %v6314_v15 }
 0x6cc   :  { %v2910_v46 = vadd.f32 %v6867_v42, %v2861_v45 }
 0x6dc   :  { %v6884_v47 = vpop.f32.mrb[40].mxu0 }
 0x6dd   :  { %v7343_v31 = vpop.f32.mrb[40].mxu1  ;;  %v6885_v4 = vpop.f32.mrb[41].mxu0 }
 0x6de   :  { %v6886_v0 = vadd.f32 %v6885_v4, %v6884_v47  ;;  %v2996_v49 = vpop.f32.mrb[41].mxu1  ;;  %v6887_v50 = vpop.f32.mrb[42].mxu0 }
 0x6df   :  { %v7344_v51 = vpop.f32.mrb[42].mxu1  ;;  %v6888_v20 = vpop.f32.mrb[43].mxu0 }
 0x6e0   :  { %v2948_v54 = vadd.f32 %v6886_v0, %v2899_v30  ;;  %v6889_v52 = vadd.f32 %v6888_v20, %v6887_v50  ;;  %v2999_v55 = vpop.f32.mrb[43].mxu1 }
 0x6e2   :  { %v2997_v56 = vadd.f32 %v2996_v49, %v2948_v54  ;;  %v2951_v57 = vadd.f32 %v6889_v52, %v2902_v33  ;;  %v7813_v49 = vld [vmem:[#allocation16 + $0x110] sm:$0xff]  }
 0x6e4   :  { %v3000_v58 = vadd.f32 %v2999_v55, %v2951_v57  ;;  %v6890_v59 = vpop.f32.mrb[44].mxu0  ;;  %v3011_v60 = vmax.f32 %v2997_v56, 0.0 }
 0x6e5   :  { %v6891_v43 = vpop.f32.mrb[45].mxu0 }
 0x6e6   :  { %v3012_v62 = vmax.f32 %v3000_v58, 0.0  ;;  %v6892_v8 = vadd.f32 %v6891_v43, %v6890_v59  ;;  %v6893_v9 = vpop.f32.mrb[46].mxu0  ;;  %v7814_v43 = vld [vmem:[#allocation16 + $0x118] sm:$0xff]  }
 0x6e7   :  { %v6894_v5 = vpop.f32.mrb[47].mxu0 }
 0x6e8   :  { %v3015_v10 = vpack.c.bf16 %v3012_v62, %v3011_v60  ;;  %v2956_v11 = vadd.f32 %v6892_v8, %v2907_v44  ;;  %v6895_v12 = vadd.f32 %v6894_v5, %v6893_v9  ;;  %v7815_v9 = vld [vmem:[#allocation16 + $0x120] sm:$0xff]   ;;  %v7816_v5 = vld [vmem:[#allocation16 + $0x128] sm:$0xff]  }
 0x6ea   :  { %v3019_v6 = vrot.slane %v3015_v10, 7  ;;  %v3005_v13 = vadd.f32 %v7343_v31, %v2956_v11  ;;  %v2959_v14 = vadd.f32 %v6895_v12, %v2910_v46  ;;  %v7817_v10 = vld [vmem:[#allocation16 + $0x130] sm:$0xff]   ;;  %v7818_v11 = vld [vmem:[#allocation16 + $0x138] sm:$0xff]  }
 0x6ec   :  { %v9190_v15 = vsel %vm1322_vm9, 0, %v3019_v6  ;;  %v9193_v16 = vsel %vm1322_vm9, %v3019_v6, 0  ;;  %v3008_v18 = vadd.f32 %v7344_v51, %v2959_v14  ;;  %v3013_v24 = vmax.f32 %v3005_v13, 0.0  ;;  %v7819_v14 = vld [vmem:[#allocation19 + $0x80] sm:$0xff]  }
 0x6ed   :  { %v3029_v19 = vshrl.u32 %v9190_v15, 16  ;;  %v3031_v21 = vshll.u32 %v9190_v15, 16  ;;  %v3035_v22 = vshll.u32 %v9193_v16, 16  ;;  %v3066_v23 = vshrl.u32 %v9193_v16, 16 }
 0x6ee   :  { %v3014_v25 = vmax.f32 %v3008_v18, 0.0  ;;  %v3055_v30 = vrot.slane %v9190_v15, 1  ;;  %v3056_v35 = vrot.slane %v9193_v16, 1  ;;  %v3083_v58 = vrot.slane %v9190_v15, 2  ;;  %v7820_v15 = vld [vmem:[#allocation19 + $0x88] sm:$0xff]   ;;  %v7822_v18 = vld [vmem:[#allocation19] sm:$0xff]  }
 0x6ef   :  { %v3033_v27 = vrot.slane %v3031_v21, 1  ;;  %v3063_v28 = vrot.slane %v3029_v19, 1  ;;  %v3064_v29 = vrot.slane %v3031_v21, 2  ;;  %v3068_v33 = vrot.slane %v3066_v23, 1  ;;  %v7825_v21 = vld [vmem:[#allocation19 + $0x8] sm:$0xff]   ;;  %v7826_v23 = vld [vmem:[#allocation19 + $0x98] sm:$0xff]  }
 0x6f0   :  { %v3016_v32 = vpack.c.bf16 %v3014_v25, %v3013_v24  ;;  %v3069_v34 = vrot.slane %v3035_v22, 2  ;;  %v3037_v38 = vrot.slane %v3035_v22, 1  ;;  %v3057_v42 = vsel %vm596_vm4, %v3055_v30, %v3056_v35  ;;  %v7823_v22 = vld [vmem:[#allocation19 + $0x90] sm:$0xff]   ;;  %v7832_v30 = vld [vmem:[#allocation19 + $0xa8] sm:$0xff]  }
 0x6f1   :  { %v3034_v36 = vor.u32 %v3033_v27, %v3029_v19  ;;  %v3065_v37 = vor.u32 %v3064_v29, %v3063_v28  ;;  %v3084_v59 = vrot.slane %v9193_v16, 2  ;;  %v7821_v16 = vld [vmem:[#allocation19 + $0x40] sm:$0xff]   ;;  %v7824_v19 = vld [vmem:[#allocation19 + $0x48] sm:$0xff]   ;;  %v7827_v24 = vld [vmem:[#allocation19 + $0x50] sm:$0xff]  }
 0x6f2   :  { %v3020_v2 = vrot.slane %v3016_v32, 7  ;;  %v3070_v63 = vor.u32 %v3069_v34, %v3068_v33  ;;  %6972 = vmatprep.subr.bf16.mxu1 %v7821_v16  ;;  %v7828_v25 = vld [vmem:[#allocation19 + $0x10] sm:$0xff]   ;;  %v7829_v27 = vld [vmem:[#allocation19 + $0xa0] sm:$0xff]   ;;  %v7830_v28 = vld [vmem:[#allocation19 + $0x58] sm:$0xff]  }
 0x6f3   :  { %v3038_v53 = vsel %vm565_vm3, %v3034_v36, %v3037_v38  ;;  %v3085_v8 = vsel %vm626_vm8, %v3083_v58, %v3084_v59  ;;  %v7831_v29 = vld [vmem:[#allocation19 + $0x18] sm:$0xff]   ;;  %v7833_v32 = vld [vmem:[#allocation19 + $0x60] sm:$0xff]   ;;  %v7835_v34 = vld [vmem:[#allocation19 + $0xb0] sm:$0xff]  }
 0x6f4   :  { %v3025_v39 = vsel %vm1322_vm9, 0, %v3020_v2  ;;  %v3028_v40 = vsel %vm1322_vm9, %v3020_v2, 0  ;;  %3450 = vmatprep.mubr.bf16.mxu0 %v3038_v53  ;;  %v3071_v41 = vsel %vm605_vm5, %v3065_v37, %v3070_v63  ;;  %v7834_v33 = vld [vmem:[#allocation19 + $0x20] sm:$0xff]   ;;  %v7836_v35 = vld [vmem:[#allocation19 + $0x68] sm:$0xff]   ;;  %v7838_v38 = vld [vmem:[#allocation19 + $0xb8] sm:$0xff]  }
 0x6f5   :  { %3499 = vmatprep.mubr.bf16.mxu1 %v3071_v41  ;;  %6413 = vmatmul.mubr.msk.bf16.vlgmr.msra.gmra.mrb[48].mxu0 %vm9063_vm10, %v3019_v6  ;;  %v3039_v44 = vshrl.u32 %v3025_v39, 16  ;;  %v3041_v45 = vshll.u32 %v3025_v39, 16  ;;  %v3045_v46 = vshll.u32 %v3028_v40, 16  ;;  %v3075_v47 = vshrl.u32 %v3028_v40, 16  ;;  %v7837_v36 = vld [vmem:[#allocation19 + $0x28] sm:$0xff]   ;;  %v7839_v37 = vld [vmem:[#allocation19 + $0x70] sm:$0xff]  }
 0x6f6   :  { %3500 = vmatmul.mubr.bf16.vlgmr.msra.gmra.mrb[44].mxu1 %v3057_v42  ;;  %7346 = vmatpush3.bf16.msra.mxu0 %v9186_v7  ;;  %v3058_v20 = vrot.slane %v3025_v39, 1  ;;  %v3059_v56 = vrot.slane %v3028_v40, 1  ;;  %v3086_v12 = vrot.slane %v3025_v39, 2  ;;  %v3087_v6 = vrot.slane %v3028_v40, 2  ;;  %v9218_v63 = vld [vmem:[#allocation22] sm:$0xff]   ;;  %v7842_v53 = vld [vmem:[#allocation19 + $0x78] sm:$0xff]  }
 0x6f7   :  { %7347 = vmatprep.subr.bf16.mxu0 %v7812_v3  ;;  %v3043_v31 = vrot.slane %v3041_v45, 1  ;;  %v3072_v4 = vrot.slane %v3039_v44, 1  ;;  %v3073_v0 = vrot.slane %v3041_v45, 2  ;;  %v3077_v50 = vrot.slane %v3075_v47, 1  ;;  %6973 = vmatpush3.bf16.msra.mxu1 %v7822_v18  ;;  %v6371_v41 = vld [vmem:[#allocation17] ss:$0 sm:$0xff] }
 0x6f8   :  { %v3078_v51 = vrot.slane %v3045_v46, 2  ;;  %v3047_v52 = vrot.slane %v3045_v46, 1  ;;  %v3060_v62 = vsel %vm596_vm4, %v3058_v20, %v3059_v56  ;;  %v3088_v13 = vsel %vm626_vm8, %v3086_v12, %v3087_v6  ;;  %6974 = vmatprep.subr.bf16.mxu1 %v7824_v19 }
 0x6f9   :  { %v3044_v54 = vor.u32 %v3043_v31, %v3039_v44  ;;  %v3074_v55 = vor.u32 %v3073_v0, %v3072_v4 }
 0x6fa   :  { %7348 = vmatpush3.bf16.msra.mxu0 %v7812_v3  ;;  %v3079_v57 = vor.u32 %v3078_v51, %v3077_v50  ;;  %v7843_v3 = vld [vmem:[#allocation19 + $0x38] sm:$0xff]  }
 0x6fb   :  { %v3048_v7 = vsel %vm565_vm3, %v3044_v54, %v3047_v52  ;;  %7349 = vmatprep.subr.bf16.mxu0 %v7813_v49  ;;  %6975 = vmatpush3.bf16.msra.mxu1 %v7825_v21 }
 0x6fc   :  { %3458 = vmatprep.mubr.bf16.mxu0 %v3048_v7  ;;  %v3080_v60 = vsel %vm605_vm5, %v3074_v55, %v3079_v57  ;;  %6976 = vmatprep.subr.bf16.mxu1 %v7827_v24 }
 0x6fd   :  { %3507 = vmatprep.mubr.bf16.mxu1 %v3080_v60  ;;  %6415 = vmatmul.mubr.msk.bf16.gmra.mrb[52].mxu0 %vm9063_vm10, %v3020_v2  ;;  %v7840_v2 = vld [vmem:[#allocation19 + $0x30] sm:$0xff]  }
 0x6fe   :  { %3508 = vmatmul.mubr.bf16.gmra.mrb[48].mxu1 %v3060_v62  ;;  %7350 = vmatpush3.bf16.msra.mxu0 %v7813_v49 }
 0x6ff   :  { %7361 = vmatprep.mubr.bf16.mxu0 %v3085_v8  ;;  %7351 = vmatprep.subr.bf16.mxu0 %v7814_v43 }
 0x700   :  { %6977 = vmatpush3.bf16.msra.mxu1 %v7828_v25 }
 0x701   :  { %6978 = vmatprep.subr.bf16.mxu1 %v7830_v28 }
 0x702   :  { %7352 = vmatpush3.bf16.msra.mxu0 %v7814_v43 }
 0x703   :  { %7353 = vmatprep.subr.bf16.mxu0 %v7815_v9 }
 0x704   :  { %6979 = vmatpush3.bf16.msra.mxu1 %v7831_v29 }
 0x705   :  { %6980 = vmatprep.subr.bf16.mxu1 %v7833_v32 }
 0x706   :  { %7354 = vmatpush3.bf16.msra.mxu0 %v7815_v9 }
 0x707   :  { %7355 = vmatprep.subr.bf16.mxu0 %v7816_v5 }
 0x708   :  { %6981 = vmatpush3.bf16.msra.mxu1 %v7834_v33 }
 0x709   :  { %6982 = vmatprep.subr.bf16.mxu1 %v7836_v35 }
 0x70a   :  { %7356 = vmatpush3.bf16.msra.mxu0 %v7816_v5 }
 0x70b   :  { %7357 = vmatprep.subr.bf16.mxu0 %v7817_v10 }
 0x70c   :  { %6983 = vmatpush3.bf16.msra.mxu1 %v7837_v36 }
 0x70d   :  { %6984 = vmatprep.subr.bf16.mxu1 %v7839_v37 }
 0x70e   :  { %7358 = vmatpush3.bf16.msra.mxu0 %v7817_v10 }
 0x70f   :  { %7359 = vmatprep.subr.bf16.mxu0 %v7818_v11 }
 0x710   :  { %6985 = vmatpush3.bf16.msra.mxu1 %v7840_v2 }
 0x711   :  { %6986 = vmatprep.subr.bf16.mxu1 %v7842_v53 }
 0x712   :  { %7360 = vmatpush3.bf16.msra.mxu0 %v7818_v11 }
 0x713   :  { %7365 = vmatprep.subr.bf16.mxu0 %v7819_v14 }
 0x714   :  { %6987 = vmatpush3.bf16.msra.mxu1 %v7843_v3 }
 0x715   :  { %7362 = vmatmul.mubr.bf16.vlgmr.msra.gmra.mrb[56].mxu0 %v3088_v13 }
 0x716   :  { %7366 = vmatpush3.bf16.msra.mxu0 %v7819_v14 }
 0x717   :  { %7367 = vmatprep.subr.bf16.mxu0 %v7820_v15 }
 0x71a   :  { %7368 = vmatpush3.bf16.msra.mxu0 %v7820_v15 }
 0x71b   :  { %7369 = vmatprep.subr.bf16.mxu0 %v7823_v22 }
 0x71e   :  { %7370 = vmatpush3.bf16.msra.mxu0 %v7823_v22 }
 0x71f   :  { %7371 = vmatprep.subr.bf16.mxu0 %v7826_v23 }
 0x722   :  { %7372 = vmatpush3.bf16.msra.mxu0 %v7826_v23 }
 0x723   :  { %7373 = vmatprep.subr.bf16.mxu0 %v7829_v27 }
 0x726   :  { %7374 = vmatpush3.bf16.msra.mxu0 %v7829_v27 }
 0x727   :  { %7375 = vmatprep.subr.bf16.mxu0 %v7832_v30 }
 0x72a   :  { %7376 = vmatpush3.bf16.msra.mxu0 %v7832_v30 }
 0x72b   :  { %7377 = vmatprep.subr.bf16.mxu0 %v7835_v34 }
 0x72e   :  { %7378 = vmatpush3.bf16.msra.mxu0 %v7835_v34 }
 0x72f   :  { %7379 = vmatprep.subr.bf16.mxu0 %v7838_v38 }
 0x732   :  { %7380 = vmatpush3.bf16.msra.mxu0 %v7838_v38 }
 0x733   :  { %7385 = vmatprep.subr.bf16.mxu0 %v9218_v63 }
 0x7c8   :  { %v6922_v39 = vpop.f32.mrb[48].mxu0 }
 0x7c9   :  { %v6950_v40 = vpop.f32.mrb[44].mxu1  ;;  %v6923_v42 = vpop.f32.mrb[49].mxu0 }
 0x7ca   :  { %v6924_v44 = vadd.f32 %v6923_v42, %v6922_v39  ;;  %v6951_v45 = vpop.f32.mrb[45].mxu1  ;;  %v6925_v46 = vpop.f32.mrb[50].mxu0 }
 0x7cb   :  { %v6952_v47 = vadd.f32 %v6951_v45, %v6950_v40  ;;  %v6953_v31 = vpop.f32.mrb[46].mxu1  ;;  %v6926_v4 = vpop.f32.mrb[51].mxu0 }
 0x7cc   :  { %v3453_v0 = vadd.f32 %v6924_v44, %v6371_v41  ;;  %v6927_v49 = vadd.f32 %v6926_v4, %v6925_v46  ;;  %v6954_v50 = vpop.f32.mrb[47].mxu1 }
 0x7cd   :  { %v6955_v51 = vadd.f32 %v6954_v50, %v6953_v31 }
 0x7ce   :  { %v3456_v20 = vadd.f32 %v6927_v49, %v6371_v41  ;;  %v3502_v54 = vadd.f32 %v6952_v47, %v3453_v0 }
 0x7d0   :  { %v6928_v52 = vpop.f32.mrb[52].mxu0  ;;  %v3505_v55 = vadd.f32 %v6955_v51, %v3456_v20  ;;  %v7844_v51 = vld [vmem:[#allocation22 + $0x8] sm:$0xff]  }
 0x7d1   :  { %v6956_v56 = vpop.f32.mrb[48].mxu1  ;;  %v6929_v57 = vpop.f32.mrb[53].mxu0 }
 0x7d2   :  { %v6930_v58 = vadd.f32 %v6929_v57, %v6928_v52  ;;  %v6957_v59 = vpop.f32.mrb[49].mxu1  ;;  %v6931_v7 = vpop.f32.mrb[54].mxu0 }
 0x7d3   :  { %v6958_v43 = vadd.f32 %v6957_v59, %v6956_v56  ;;  %v6959_v60 = vpop.f32.mrb[50].mxu1  ;;  %v6932_v62 = vpop.f32.mrb[55].mxu0  ;;  %v7845_v59 = vld [vmem:[#allocation22 + $0x10] sm:$0xff]  }
 0x7d4   :  { %v3461_v8 = vadd.f32 %v6930_v58, %v6371_v41  ;;  %v6933_v9 = vadd.f32 %v6932_v62, %v6931_v7  ;;  %v6960_v5 = vpop.f32.mrb[51].mxu1  ;;  %v7850_v62 = vld [vmem:[#allocation22 + $0x38] sm:$0xff]  }
 0x7d5   :  { %v6961_v10 = vadd.f32 %v6960_v5, %v6959_v60  ;;  %v7847_v60 = vld [vmem:[#allocation22 + $0x20] sm:$0xff]  }
 0x7d6   :  { %v3464_v11 = vadd.f32 %v6933_v9, %v6371_v41  ;;  %v3510_v12 = vadd.f32 %v6958_v43, %v3461_v8  ;;  %v7846_v43 = vld [vmem:[#allocation22 + $0x18] sm:$0xff]   ;;  %v7851_v8 = vld [vmem:[#allocation25 + $0x40] sm:$0xff]  }
 0x7d7   :  { %v7852_v9 = vld [vmem:[#allocation25] sm:$0xff]   ;;  %7020 = vmatprep.subr.bf16.mxu1 %v7851_v8 }
 0x7d8   :  { %v3513_v6 = vadd.f32 %v6961_v10, %v3464_v11  ;;  %v7853_v5 = vld [vmem:[#allocation25 + $0x140] sm:$0xff]   ;;  %v7855_v11 = vld [vmem:[#allocation25 + $0x48] sm:$0xff]  }
 0x7d9   :  { %v7854_v10 = vld [vmem:[#allocation25 + $0x100] sm:$0xff]  }
 0x7e8   :  { %v7363_v13 = vpop.f32.mrb[56].mxu0 }
 0x7e9   :  { %v3559_v14 = vadd.f32 %v7363_v13, %v3510_v12  ;;  %v3550_v15 = vpop.f32.mrb[57].mxu0  ;;  %v7857_v12 = vld [vmem:[#allocation25 + $0x148] sm:$0xff]  }
 0x7ea   :  { %v3551_v16 = vadd.f32 %v3550_v15, %v3502_v54  ;;  %v7364_v18 = vpop.f32.mrb[58].mxu0  ;;  %v7858_v13 = vld [vmem:[#allocation25 + $0x108] sm:$0xff]   ;;  %v7860_v15 = vld [vmem:[#allocation25 + $0x10] sm:$0xff]  }
 0x7eb   :  { %v3562_v19 = vadd.f32 %v7364_v18, %v3513_v6  ;;  %v3553_v21 = vpop.f32.mrb[59].mxu0  ;;  %v3567_v23 = vmax.f32 %v3559_v14, 0.0  ;;  %v7856_v6 = vld [vmem:[#allocation25 + $0x8] sm:$0xff]   ;;  %v7859_v14 = vld [vmem:[#allocation25 + $0x50] sm:$0xff]   ;;  %v7863_v18 = vld [vmem:[#allocation25 + $0x58] sm:$0xff]  }
 0x7ec   :  { %v3554_v22 = vadd.f32 %v3553_v21, %v3505_v55  ;;  %v3565_v25 = vmax.f32 %v3551_v16, 0.0  ;;  %v7861_v16 = vld [vmem:[#allocation25 + $0x150] sm:$0xff]   ;;  %v7865_v21 = vld [vmem:[#allocation25 + $0x158] sm:$0xff]  }
 0x7ed   :  { %v3568_v24 = vmax.f32 %v3562_v19, 0.0  ;;  %v7864_v19 = vld [vmem:[#allocation25 + $0x18] sm:$0xff]  }
 0x7ee   :  { %v3566_v27 = vmax.f32 %v3554_v22, 0.0  ;;  %v7866_v22 = vld [vmem:[#allocation25 + $0x118] sm:$0xff]  }
 0x7ef   :  { %v3570_v28 = vpack.c.bf16 %v3568_v24, %v3567_v23  ;;  %v7867_v23 = vld [vmem:[#allocation25 + $0x60] sm:$0xff]  }
 0x7f0   :  { %v3569_v29 = vpack.c.bf16 %v3566_v27, %v3565_v25  ;;  %v7868_v24 = vld [vmem:[#allocation25 + $0x20] sm:$0xff]  }
 0x7f1   :  { %v3579_v30 = vshrl.u32 %v3570_v28, 16  ;;  %v3582_v34 = vshll.u32 %v3570_v28, 16  ;;  %v7869_v25 = vld [vmem:[#allocation25 + $0x160] sm:$0xff]   ;;  %v7871_v28 = vld [vmem:[#allocation25 + $0x68] sm:$0xff]  }
 0x7f2   :  { %v3572_v32 = vshrl.u32 %v3569_v29, 16  ;;  %v3575_v36 = vshll.u32 %v3569_v29, 16  ;;  %v7870_v27 = vld [vmem:[#allocation25 + $0x120] sm:$0xff]   ;;  %v7873_v29 = vld [vmem:[#allocation25 + $0x168] sm:$0xff]  }
 0x7f3   :  { %v3581_v33 = vrot.slane %v3579_v30, 7  ;;  %v7872_v30 = vld [vmem:[#allocation25 + $0x28] sm:$0xff]  }
 0x7f4   :  { %v3574_v35 = vrot.slane %v3572_v32, 7  ;;  %v7874_v32 = vld [vmem:[#allocation25 + $0x128] sm:$0xff]  }
 0x7f5   :  { %v3584_v38 = vor.u32 %v3582_v34, %v3581_v33  ;;  %v3592_v3 = vsel %vm9085_vm12, %v3581_v33, 0  ;;  %v7875_v33 = vld [vmem:[#allocation25 + $0x70] sm:$0xff]  }
 0x7f6   :  { %v3577_v37 = vor.u32 %v3575_v36, %v3574_v35  ;;  %v3591_v2 = vsel %vm9085_vm12, %v3574_v35, 0  ;;  %v3627_v47 = vrot.slane %v3592_v3, 1  ;;  %v3613_v4 = vshll.u32 %v3592_v3, 16  ;;  %v7877_v34 = vld [vmem:[#allocation25 + $0x170] sm:$0xff]   ;;  %v7883_v3 = vld [vmem:[#allocation25 + $0xc0] sm:$0xff]  }
 0x7f7   :  { %v3590_v53 = vsel %vm9085_vm12, 0, %v3584_v38  ;;  %v3624_v44 = vrot.slane %v3591_v2, 1  ;;  %v3601_v46 = vshll.u32 %v3591_v2, 16  ;;  %v7876_v35 = vld [vmem:[#allocation25 + $0x30] sm:$0xff]   ;;  %v7879_v38 = vld [vmem:[#allocation25 + $0x78] sm:$0xff]  }
 0x7f8   :  { %v3589_v39 = vsel %vm9085_vm12, 0, %v3577_v37  ;;  %v3626_v40 = vrot.slane %v3590_v53, 1  ;;  %v3608_v41 = vshll.u32 %v3590_v53, 16  ;;  %v3606_v20 = vshrl.u32 %v3590_v53, 16  ;;  %v7878_v36 = vld [vmem:[#allocation25 + $0x130] sm:$0xff]   ;;  %v7881_v37 = vld [vmem:[#allocation25 + $0x178] sm:$0xff]  }
 0x7f9   :  { %v3623_v42 = vrot.slane %v3589_v39, 1  ;;  %v3596_v45 = vshll.u32 %v3589_v39, 16  ;;  %v3594_v49 = vshrl.u32 %v3589_v39, 16  ;;  %v3603_v55 = vrot.slane %v3601_v46, 1  ;;  %v7880_v2 = vld [vmem:[#allocation25 + $0x38] sm:$0xff]  }
 0x7fa   :  { %v3610_v31 = vrot.slane %v3608_v41, 1  ;;  %v3628_v54 = vsel %vm596_vm4, %v3626_v40, %v3627_v47  ;;  %v3615_v58 = vrot.slane %v3613_v4, 1 }
 0x7fb   :  { %v3625_v0 = vsel %vm596_vm4, %v3623_v42, %v3624_v44  ;;  %v3598_v50 = vrot.slane %v3596_v45, 1 }
 0x7fc   :  { %7381 = vmatprep.mubr.bf16.mxu0 %v3625_v0  ;;  %v3611_v56 = vor.u32 %v3610_v31, %v3606_v20 }
 0x7fd   :  { %7382 = vmatmul.mubr.bf16.vlgmr.msra.gmra.mrb[60].mxu0 %v3628_v54  ;;  %v3599_v52 = vor.u32 %v3598_v50, %v3594_v49  ;;  %v6416_v50 = vld [vmem:[#allocation20] ss:$0 sm:$0xff] }
 0x7fe   :  { %7386 = vmatpush3.bf16.msra.mxu0 %v9218_v63  ;;  %7401 = vmatprep.mubr.bf16.mxu0 %v9106_v48  ;;  %v3616_v7 = vsel %vm565_vm3, %v3611_v56, %v3615_v58  ;;  %v7848_v48 = vld [vmem:[#allocation22 + $0x28] sm:$0xff]   ;;  %v7849_v63 = vld [vmem:[#allocation22 + $0x30] sm:$0xff]  }
 0x7ff   :  { %v3604_v57 = vsel %vm565_vm3, %v3599_v52, %v3603_v55  ;;  %7387 = vmatprep.subr.bf16.mxu0 %v7844_v51  ;;  %v6441_v52 = vld [vmem:[#allocation23] ss:$0 sm:$0xff] }
 0x800   :  { %3862 = vmatprep.mubr.bf16.mxu1 %v3604_v57 }
 0x801   :  { %3863 = vmatmul.mubr.bf16.vlgmr.msra.gmra.mrb[52].mxu1 %v3589_v39 }
 0x802   :  { %7388 = vmatpush3.bf16.msra.mxu0 %v7844_v51  ;;  %3870 = vmatprep.mubr.bf16.mxu1 %v3616_v7 }
 0x803   :  { %7389 = vmatprep.subr.bf16.mxu0 %v7845_v59  ;;  %7021 = vmatpush3.bf16.msra.mxu1 %v7852_v9 }
 0x804   :  { %7022 = vmatprep.subr.bf16.mxu1 %v7855_v11 }
 0x806   :  { %7390 = vmatpush3.bf16.msra.mxu0 %v7845_v59 }
 0x807   :  { %7391 = vmatprep.subr.bf16.mxu0 %v7846_v43  ;;  %7023 = vmatpush3.bf16.msra.mxu1 %v7856_v6 }
 0x808   :  { %7024 = vmatprep.subr.bf16.mxu1 %v7859_v14 }
 0x809   :  { %3871 = vmatmul.mubr.bf16.gmra.mrb[56].mxu1 %v3590_v53  ;;  %v7882_v53 = vld [vmem:[#allocation25 + $0x138] sm:$0xff]  }
 0x80a   :  { %7392 = vmatpush3.bf16.msra.mxu0 %v7846_v43 }
 0x80b   :  { %7393 = vmatprep.subr.bf16.mxu0 %v7847_v60  ;;  %7025 = vmatpush3.bf16.msra.mxu1 %v7860_v15 }
 0x80c   :  { %7026 = vmatprep.subr.bf16.mxu1 %v7863_v18 }
 0x80e   :  { %7394 = vmatpush3.bf16.msra.mxu0 %v7847_v60 }
 0x80f   :  { %7395 = vmatprep.subr.bf16.mxu0 %v7848_v48  ;;  %7027 = vmatpush3.bf16.msra.mxu1 %v7864_v19 }
 0x810   :  { %7028 = vmatprep.subr.bf16.mxu1 %v7867_v23 }
 0x812   :  { %7396 = vmatpush3.bf16.msra.mxu0 %v7848_v48 }
 0x813   :  { %7397 = vmatprep.subr.bf16.mxu0 %v7849_v63  ;;  %7029 = vmatpush3.bf16.msra.mxu1 %v7868_v24 }
 0x814   :  { %7030 = vmatprep.subr.bf16.mxu1 %v7871_v28 }
 0x816   :  { %7398 = vmatpush3.bf16.msra.mxu0 %v7849_v63 }
 0x817   :  { %7399 = vmatprep.subr.bf16.mxu0 %v7850_v62  ;;  %7031 = vmatpush3.bf16.msra.mxu1 %v7872_v30 }
 0x818   :  { %7032 = vmatprep.subr.bf16.mxu1 %v7875_v33 }
 0x81a   :  { %7400 = vmatpush3.bf16.msra.mxu0 %v7850_v62 }
 0x81b   :  { %7076 = vmatprep.subr.bf16.mxu0 %v7853_v5  ;;  %7033 = vmatpush3.bf16.msra.mxu1 %v7876_v35 }
 0x81c   :  { %7034 = vmatprep.subr.bf16.mxu1 %v7879_v38 }
 0x81d   :  { %7402 = vmatmul.mubr.bf16.vlgmr.msra.gmra.mrb[60].mxu0 %v9116_v1  ;;  %v7862_v1 = vld [vmem:[#allocation25 + $0x110] sm:$0xff]  }
 0x81e   :  { %7077 = vmatpush3.bf16.msra.mxu0 %v7854_v10 }
 0x81f   :  { %7078 = vmatprep.subr.bf16.mxu0 %v7857_v12  ;;  %7035 = vmatpush3.bf16.msra.mxu1 %v7880_v2 }
 0x820   :  { %7048 = vmatprep.subr.bf16.mxu1 %v7883_v3 }
 0x822   :  { %7079 = vmatpush3.bf16.msra.mxu0 %v7858_v13 }
 0x823   :  { %7080 = vmatprep.subr.bf16.mxu0 %v7861_v16 }
 0x826   :  { %7081 = vmatpush3.bf16.msra.mxu0 %v7862_v1 }
 0x827   :  { %7082 = vmatprep.subr.bf16.mxu0 %v7865_v21 }
 0x82a   :  { %7083 = vmatpush3.bf16.msra.mxu0 %v7866_v22 }
 0x82b   :  { %7084 = vmatprep.subr.bf16.mxu0 %v7869_v25 }
 0x82e   :  { %7085 = vmatpush3.bf16.msra.mxu0 %v7870_v27 }
 0x82f   :  { %7086 = vmatprep.subr.bf16.mxu0 %v7873_v29 }
 0x832   :  { %7087 = vmatpush3.bf16.msra.mxu0 %v7874_v32 }
 0x833   :  { %7088 = vmatprep.subr.bf16.mxu0 %v7877_v34 }
 0x836   :  { %7089 = vmatpush3.bf16.msra.mxu0 %v7878_v36 }
 0x837   :  { %7090 = vmatprep.subr.bf16.mxu0 %v7881_v37 }
 0x83a   :  { %7091 = vmatpush3.bf16.msra.mxu0 %v7882_v53 }
 0x8d4   :  { %v6988_v39 = vpop.f32.mrb[52].mxu1 }
 0x8d5   :  { %v6989_v40 = vpop.f32.mrb[53].mxu1 }
 0x8d6   :  { %v6990_v41 = vadd.f32 %v6989_v40, %v6988_v39  ;;  %v6991_v42 = vpop.f32.mrb[54].mxu1 }
 0x8d7   :  { %v6992_v44 = vpop.f32.mrb[55].mxu1 }
 0x8d8   :  { %v6993_v45 = vadd.f32 %v6992_v44, %v6991_v42  ;;  %v3865_v56 = vadd.f32 %v6990_v41, %v6416_v50 }
 0x8da   :  { %v3868_v20 = vadd.f32 %v6993_v45, %v6416_v50 }
 0x8dc   :  { %v6994_v46 = vpop.f32.mrb[56].mxu1  ;;  %v7531_v60 = vadd.f32 %v6441_v52, %v3868_v20 }
 0x8dd   :  { %v6995_v47 = vpop.f32.mrb[57].mxu1 }
 0x8de   :  { %v6996_v31 = vadd.f32 %v6995_v47, %v6994_v46  ;;  %v6997_v4 = vpop.f32.mrb[58].mxu1 }
 0x8df   :  { %v6998_v0 = vpop.f32.mrb[59].mxu1 }
 0x8e0   :  { %v6999_v49 = vadd.f32 %v6998_v0, %v6997_v4  ;;  %v3873_v54 = vadd.f32 %v6996_v31, %v6416_v50  ;;  %v7884_v4 = vld [vmem:[#allocation25 + $0x80] sm:$0xff]  }
 0x8e2   :  { %v3876_v51 = vadd.f32 %v6999_v49, %v6416_v50 }
 0x8e4   :  { %v7529_v59 = vadd.f32 %v6441_v52, %v3876_v51 }
 0x8f0   :  { %v7403_v55 = vpop.f32.mrb[60].mxu0 }
 0x8f1   :  { %v7525_v57 = vadd.f32 %v7403_v55, %v3873_v54  ;;  %v4033_v58 = vpop.f32.mrb[61].mxu0 }
 0x8f2   :  { %v7527_v7 = vadd.f32 %v4033_v58, %v3865_v56  ;;  %v7404_v43 = vpop.f32.mrb[62].mxu0 }
 0x8f3   :  { %v7526_v48 = vadd.f32 %v7525_v57, %v6441_v52  ;;  %v7530_v63 = vadd.f32 %v7529_v59, %v7404_v43  ;;  %v4036_v62 = vpop.f32.mrb[63].mxu0 }
 0x8f4   :  { %v7528_v8 = vadd.f32 %v7527_v7, %v6441_v52  ;;  %v7532_v9 = vadd.f32 %v7531_v60, %v4036_v62  ;;  %v7885_v52 = vld [vmem:[#allocation25 + $0xc8] sm:$0xff]  }
 0x8f5   :  { %v4054_v5 = vmax.f32 %v7526_v48, 0.0  ;;  %v4055_v10 = vmax.f32 %v7530_v63, 0.0  ;;  %v7886_v7 = vld [vmem:[#allocation25 + $0x88] sm:$0xff]  }
 0x8f6   :  { %v4052_v11 = vmax.f32 %v7528_v8, 0.0  ;;  %v4053_v12 = vmax.f32 %v7532_v9, 0.0  ;;  %v7887_v8 = vld [vmem:[#allocation25 + $0xd0] sm:$0xff]  }
 0x8f7   :  { %v9236_v6 = vpack.c.bf16 %v4055_v10, %v4054_v5  ;;  %v7888_v10 = vld [vmem:[#allocation25 + $0x90] sm:$0xff]  }
 0x8f8   :  { %v9238_v13 = vpack.c.bf16 %v4053_v12, %v4052_v11 }
 0x8f9   :  { %v4067_v14 = vshrl.u32 %v9236_v6, 16  ;;  %v4070_v15 = vshll.u32 %v9236_v6, 16 }
 0x8fa   :  { %v4059_v16 = vshrl.u32 %v9238_v13, 16  ;;  %v4062_v1 = vshll.u32 %v9238_v13, 16 }
 0x8fb   :  { %v4069_v18 = vrot.slane %v4067_v14, 6  ;;  %v4072_v19 = vrot.slane %v4070_v15, 7 }
 0x8fc   :  { %v4061_v21 = vrot.slane %v4059_v16, 6  ;;  %v4064_v22 = vrot.slane %v4062_v1, 7  ;;  %v7889_v16 = vld [vmem:[#allocation25 + $0xd8] sm:$0xff]  }
 0x8fd   :  { %v4073_v23 = vor.u32 %v4072_v19, %v4069_v18 }
 0x8fe   :  { %v4065_v24 = vor.u32 %v4064_v22, %v4061_v21  ;;  %v7890_v21 = vld [vmem:[#allocation25 + $0x98] sm:$0xff]   ;;  %v7891_v22 = vld [vmem:[#allocation25 + $0xe0] sm:$0xff]  }
 0x8ff   :  { %v9246_v25 = vsel %vm8953_vm2, 0, %v4073_v23  ;;  %v9250_v27 = vsel %vm8953_vm2, %v4073_v23, 0  ;;  %v7892_v23 = vld [vmem:[#allocation25 + $0xa0] sm:$0xff]  }
 0x900   :  { %v9254_v28 = vsel %vm8953_vm2, 0, %v4065_v24  ;;  %v9258_v29 = vsel %vm8953_vm2, %v4065_v24, 0  ;;  %v9261_v30 = vshll.u32 %v9246_v25, 16  ;;  %v9268_v36 = vshrl.u32 %v9246_v25, 16  ;;  %v7893_v24 = vld [vmem:[#allocation25 + $0xe8] sm:$0xff]  }
 0x901   :  { %v4081_v32 = vshrl.u32 %v9254_v28, 16  ;;  %v4083_v33 = vshll.u32 %v9254_v28, 16  ;;  %v4088_v34 = vshll.u32 %v9258_v29, 16  ;;  %v4121_v35 = vshrl.u32 %v9258_v29, 16 }
 0x902   :  { %v4097_v38 = vrot.slane %v9261_v30, 1  ;;  %v9272_v61 = vshll.u32 %v9250_v27, 16  ;;  %v4138_v3 = vrot.slane %v9254_v28, 2  ;;  %v4139_v42 = vrot.slane %v9258_v29, 2 }
 0x903   :  { %v4085_v37 = vrot.slane %v4083_v33, 1  ;;  %v4146_v2 = vrot.slane %v4081_v32, 2  ;;  %v4147_v53 = vrot.slane %v4083_v33, 3  ;;  %v4090_v39 = vrot.slane %v4088_v34, 1 }
 0x904   :  { %v4149_v40 = vrot.slane %v4121_v35, 2  ;;  %v4150_v41 = vrot.slane %v4088_v34, 3  ;;  %v4098_v46 = vor.u32 %v4097_v38, %v9268_v36  ;;  %v4130_v47 = vshrl.u32 %v9250_v27, 16 }
 0x905   :  { %v4086_v44 = vor.u32 %v4085_v37, %v4081_v32  ;;  %v4148_v45 = vor.u32 %v4147_v53, %v4146_v2  ;;  %v4153_v0 = vrot.slane %v9268_v36, 2  ;;  %v4154_v49 = vrot.slane %v9261_v30, 3 }
 0x906   :  { %v4151_v31 = vor.u32 %v4150_v41, %v4149_v40  ;;  %v4157_v50 = vrot.slane %v9272_v61, 3  ;;  %v4102_v20 = vrot.slane %v9272_v61, 1  ;;  %v4156_v54 = vrot.slane %v4130_v47, 2 }
 0x907   :  { %v4091_v51 = vsel %vm565_vm3, %v4086_v44, %v4090_v39  ;;  %v4155_v56 = vor.u32 %v4154_v49, %v4153_v0  ;;  %v4140_v57 = vsel %vm626_vm8, %v4138_v3, %v4139_v42  ;;  %v4118_v43 = vrot.slane %v4081_v32, 1  ;;  %v7894_v32 = vld [vmem:[#allocation25 + $0xa8] sm:$0xff]   ;;  %v7898_v3 = vld [vmem:[#allocation25 + $0xb8] sm:$0xff]   ;;  %v7899_v39 = vld [vmem:[#allocation25 + $0x180] sm:$0xff]  }
 0x908   :  { %4657 = vmatprep.mubr.bf16.mxu1 %v4091_v51  ;;  %v4152_v55 = vsel %vm635_vm6, %v4148_v45, %v4151_v31  ;;  %v4103_v58 = vsel %vm565_vm3, %v4098_v46, %v4102_v20  ;;  %v4158_v59 = vor.u32 %v4157_v50, %v4156_v54  ;;  %v4119_v60 = vrot.slane %v4083_v33, 2  ;;  %v7895_v33 = vld [vmem:[#allocation25 + $0xf0] sm:$0xff]   ;;  %v7902_v0 = vld [vmem:[#allocation25 + $0x198] sm:$0xff]  }
 0x909   :  { %4755 = vmatprep.mubr.bf16.mxu0 %v4152_v55  ;;  %4658 = vmatmul.mubr.bf16.vlgmr.msra.gmra.mrb[60].mxu1 %v9254_v28  ;;  %v4123_v48 = vrot.slane %v4121_v35, 1  ;;  %v4124_v63 = vrot.slane %v4088_v34, 2  ;;  %v4141_v9 = vrot.slane %v9246_v25, 2  ;;  %v4142_v5 = vrot.slane %v9250_v27, 2  ;;  %v7896_v34 = vld [vmem:[#allocation25 + $0xb0] sm:$0xff]   ;;  %v7897_v35 = vld [vmem:[#allocation25 + $0xf8] sm:$0xff]  }
 0x90a   :  { %7049 = vmatpush3.bf16.msra.mxu1 %v7884_v4  ;;  %4756 = vmatmul.mubr.bf16.vlgmr.msra.gmra.mrb[64].mxu0 %v4140_v57  ;;  %v4159_v62 = vsel %vm635_vm6, %v4155_v56, %v4158_v59  ;;  %v4120_v11 = vor.u32 %v4119_v60, %v4118_v43  ;;  %v4165_v14 = vrot.slane %v9246_v25, 3  ;;  %v4166_v15 = vrot.slane %v9250_v27, 3  ;;  %v7907_v51 = vld [vmem:[%s9480_s0 + $0x40] sm:$0xff]   ;;  %v7911_v55 = vld [vmem:[%s9480_s0 + $0x48] sm:$0xff]   ;;  %v7915_v59 = vld [vmem:[%s9480_s0 + $0x50] sm:$0xff]  }
 0x90b   :  { %4665 = vmatprep.mubr.bf16.mxu1 %v4103_v58  ;;  %7050 = vmatprep.subr.bf16.mxu1 %v7885_v52  ;;  %v4125_v12 = vor.u32 %v4124_v63, %v4123_v48  ;;  %v4143_v18 = vsel %vm626_vm8, %v4141_v9, %v4142_v5  ;;  %v4127_v38 = vrot.slane %v9268_v36, 1  ;;  %v4128_v37 = vrot.slane %v9261_v30, 2  ;;  %v7900_v36 = vld [vmem:[#allocation25 + $0x188] sm:$0xff]   ;;  %v7908_v20 = vld [vmem:[%s9480_s0] sm:$0xff]   ;;  %v7913_v56 = vld [vmem:[%s9480_s0 + $0xc8] sm:$0xff]  }
 0x90c   :  { %4763 = vmatprep.mubr.bf16.mxu0 %v4159_v62  ;;  %v9295_v1 = vsel %vm652_vm7, %v4165_v14, %v4166_v15  ;;  %v4132_v2 = vrot.slane %v4130_v47, 1  ;;  %v4133_v53 = vrot.slane %v9272_v61, 2  ;;  %v4110_v40 = vrot.slane %v9254_v28, 1  ;;  %v7901_v61 = vld [vmem:[#allocation25 + $0x190] sm:$0xff]   ;;  %7114 = vmatprep.subr.bf16.mxu0 %v7907_v51  ;;  %v7912_v57 = vld [vmem:[%s9480_s0 + $0x8] sm:$0xff]   ;;  %v7916_v43 = vld [vmem:[%s9480_s0 + $0x10] sm:$0xff]  }
 0x90d   :  { %v4126_v19 = vsel %vm605_vm5, %v4120_v11, %v4125_v12  ;;  %v4111_v41 = vrot.slane %v9258_v29, 1  ;;  %v4129_v42 = vor.u32 %v4128_v37, %v4127_v38  ;;  %v4113_v46 = vrot.slane %v9246_v25, 1  ;;  %v7909_v54 = vld [vmem:[%s9480_s0 + $0xc0] sm:$0xff]   ;;  %7115 = vmatpush3.bf16.msra.mxu0 %v7908_v20  ;;  %v7914_v58 = vld [vmem:[%s9480_s0 + $0x88] sm:$0xff]   ;;  %v7918_v60 = vld [vmem:[%s9480_s0 + $0x90] sm:$0xff]  }
 0x90e   :  { %7051 = vmatpush3.bf16.msra.mxu1 %v7886_v7  ;;  %v4134_v44 = vor.u32 %v4133_v53, %v4132_v2  ;;  %v4114_v47 = vrot.slane %v9250_v27, 1  ;;  %v4162_v31 = vrot.slane %v9254_v28, 3  ;;  %v4163_v4 = vrot.slane %v9258_v29, 3  ;;  %v7904_v27 = vld [vmem:[#allocation25 + $0x1a8] sm:$0xff]   ;;  %v7905_v28 = vld [vmem:[#allocation25 + $0x1b0] sm:$0xff]   ;;  %v7906_v29 = vld [vmem:[#allocation25 + $0x1b8] sm:$0xff]   ;;  %7116 = vmatprep.subr.bf16.mxu0 %v7911_v55 }
 0x90f   :  { %7052 = vmatprep.subr.bf16.mxu1 %v7887_v8  ;;  %v4112_v30 = vsel %vm596_vm4, %v4110_v40, %v4111_v41  ;;  %v7910_v52 = vld [vmem:[%s9480_s0 + $0x80] sm:$0xff]   ;;  %v7917_v7 = vld [vmem:[%s9480_s0 + $0xd0] sm:$0xff]   ;;  %v7919_v48 = vld [vmem:[%s9480_s0 + $0x58] sm:$0xff]  }
 0x910   :  { %v4135_v45 = vsel %vm605_vm5, %v4129_v42, %v4134_v44  ;;  %v4115_v49 = vsel %vm596_vm4, %v4113_v46, %v4114_v47  ;;  %v4164_v50 = vsel %vm652_vm7, %v4162_v31, %v4163_v4  ;;  %v7920_v63 = vld [vmem:[%s9480_s0 + $0x18] sm:$0xff]   ;;  %v7923_v9 = vld [vmem:[%s9480_s0 + $0x60] sm:$0xff]   ;;  %v7927_v12 = vld [vmem:[%s9480_s0 + $0x68] sm:$0xff]  }
 0x911   :  { %4666 = vmatmul.mubr.bf16.gmra.mrb[64].mxu1 %v9246_v25  ;;  %v7903_v25 = vld [vmem:[#allocation25 + $0x1a0] sm:$0xff]   ;;  %7117 = vmatpush3.bf16.msra.mxu0 %v7912_v57  ;;  %v7921_v62 = vld [vmem:[%s9480_s0 + $0xd8] sm:$0xff]   ;;  %v7924_v5 = vld [vmem:[%s9480_s0 + $0x20] sm:$0xff]  }
 0x912   :  { %7053 = vmatpush3.bf16.msra.mxu1 %v7888_v10  ;;  %4764 = vmatmul.mubr.bf16.gmra.mrb[68].mxu0 %v4143_v18  ;;  %v7922_v8 = vld [vmem:[%s9480_s0 + $0x98] sm:$0xff]   ;;  %v7925_v10 = vld [vmem:[%s9480_s0 + $0xe0] sm:$0xff]   ;;  %v7929_v14 = vld [vmem:[%s9480_s0 + $0xe8] sm:$0xff]  }
 0x913   :  { %4706 = vmatprep.mubr.bf16.mxu1 %v4126_v19  ;;  %7054 = vmatprep.subr.bf16.mxu1 %v7889_v16  ;;  %v7926_v11 = vld [vmem:[%s9480_s0 + $0xa0] sm:$0xff]   ;;  %v7928_v15 = vld [vmem:[%s9480_s0 + $0x28] sm:$0xff]   ;;  %v7931_v16 = vld [vmem:[%s9480_s0 + $0x70] sm:$0xff]  }
 0x914   :  { %7118 = vmatprep.subr.bf16.mxu0 %v7915_v59  ;;  %v7933_v18 = vld [vmem:[%s9480_s0 + $0xf0] sm:$0xff]  }
 0x915   :  { %7119 = vmatpush3.bf16.msra.mxu0 %v7916_v43  ;;  %v7932_v19 = vld [vmem:[%s9480_s0 + $0x30] sm:$0xff]  }
 0x916   :  { %7055 = vmatpush3.bf16.msra.mxu1 %v7890_v21  ;;  %7120 = vmatprep.subr.bf16.mxu0 %v7919_v48  ;;  %v7935_v21 = vld [vmem:[%s9480_s0 + $0x78] sm:$0xff]  }
 0x917   :  { %7056 = vmatprep.subr.bf16.mxu1 %v7891_v22  ;;  %v7934_v22 = vld [vmem:[%s9480_s0 + $0xb0] sm:$0xff]  }
 0x919   :  { %7121 = vmatpush3.bf16.msra.mxu0 %v7920_v63 }
 0x91a   :  { %7057 = vmatpush3.bf16.msra.mxu1 %v7892_v23  ;;  %7122 = vmatprep.subr.bf16.mxu0 %v7923_v9  ;;  %v7937_v23 = vld [vmem:[%s9480_s0 + $0xf8] sm:$0xff]  }
 0x91b   :  { %7058 = vmatprep.subr.bf16.mxu1 %v7893_v24  ;;  %v7936_v24 = vld [vmem:[%s9480_s0 + $0x38] sm:$0xff]  }
 0x91d   :  { %7123 = vmatpush3.bf16.msra.mxu0 %v7924_v5 }
 0x91e   :  { %7059 = vmatpush3.bf16.msra.mxu1 %v7894_v32  ;;  %7124 = vmatprep.subr.bf16.mxu0 %v7927_v12  ;;  %v9348_v32 = vld [vmem:[%s9480_s0 + $0x100] sm:$0xff]  }
 0x91f   :  { %7060 = vmatprep.subr.bf16.mxu1 %v7895_v33  ;;  %v7938_v33 = vld [vmem:[%s9480_s0 + $0xb8] sm:$0xff]  }
 0x921   :  { %7125 = vmatpush3.bf16.msra.mxu0 %v7928_v15 }
 0x922   :  { %7061 = vmatpush3.bf16.msra.mxu1 %v7896_v34  ;;  %7126 = vmatprep.subr.bf16.mxu0 %v7931_v16 }
 0x923   :  { %7062 = vmatprep.subr.bf16.mxu1 %v7897_v35 }
 0x925   :  { %7127 = vmatpush3.bf16.msra.mxu0 %v7932_v19 }
 0x926   :  { %7063 = vmatpush3.bf16.msra.mxu1 %v7898_v3  ;;  %7128 = vmatprep.subr.bf16.mxu0 %v7935_v21 }
 0x927   :  { %7405 = vmatprep.subr.bf16.mxu1 %v7899_v39 }
 0x929   :  { %4707 = vmatmul.mubr.bf16.vlgmr.msra.gmra.mrb[68].mxu1 %v4112_v30  ;;  %7129 = vmatpush3.bf16.msra.mxu0 %v7936_v24 }
 0x92a   :  { %4714 = vmatprep.mubr.bf16.mxu1 %v4135_v45  ;;  %7406 = vmatpush3.bf16.msra.mxu1 %v7899_v39 }
 0x92b   :  { %7407 = vmatprep.subr.bf16.mxu1 %v7900_v36  ;;  %7425 = vmatprep.subr.bf16.mxu0 %v9348_v32 }
 0x92e   :  { %7408 = vmatpush3.bf16.msra.mxu1 %v7900_v36 }
 0x92f   :  { %7409 = vmatprep.subr.bf16.mxu1 %v7901_v61 }
 0x931   :  { %4715 = vmatmul.mubr.bf16.gmra.mrb[72].mxu1 %v4115_v49 }
 0x932   :  { %7410 = vmatpush3.bf16.msra.mxu1 %v7901_v61  ;;  %7421 = vmatprep.mubr.bf16.mxu1 %v4164_v50 }
 0x933   :  { %7411 = vmatprep.subr.bf16.mxu1 %v7902_v0 }
 0x936   :  { %7412 = vmatpush3.bf16.msra.mxu1 %v7902_v0 }
 0x937   :  { %7413 = vmatprep.subr.bf16.mxu1 %v7903_v25 }
 0x93a   :  { %7414 = vmatpush3.bf16.msra.mxu1 %v7903_v25 }
 0x93b   :  { %7415 = vmatprep.subr.bf16.mxu1 %v7904_v27 }
 0x93e   :  { %7416 = vmatpush3.bf16.msra.mxu1 %v7904_v27  ;;  %v6450_v27 = vld [vmem:[#allocation26] ss:$0 sm:$0xff] }
 0x93f   :  { %7417 = vmatprep.subr.bf16.mxu1 %v7905_v28 }
 0x942   :  { %7418 = vmatpush3.bf16.msra.mxu1 %v7905_v28 }
 0x943   :  { %7419 = vmatprep.subr.bf16.mxu1 %v7906_v29 }
 0x946   :  { %7420 = vmatpush3.bf16.msra.mxu1 %v7906_v29 }
 0x947   :  { %7142 = vmatprep.subr.bf16.mxu1 %v7909_v54 }
 0x949   :  { %7422 = vmatmul.mubr.bf16.vlgmr.msra.gmra.mrb[76].mxu1 %v9295_v1  ;;  %v7930_v1 = vld [vmem:[%s9480_s0 + $0xa8] sm:$0xff]  }
 0x94a   :  { %7143 = vmatpush3.bf16.msra.mxu1 %v7910_v52 }
 0x94b   :  { %7144 = vmatprep.subr.bf16.mxu1 %v7913_v56 }
 0x94e   :  { %7145 = vmatpush3.bf16.msra.mxu1 %v7914_v58 }
 0x94f   :  { %7146 = vmatprep.subr.bf16.mxu1 %v7917_v7 }
 0x952   :  { %7147 = vmatpush3.bf16.msra.mxu1 %v7918_v60 }
 0x953   :  { %7148 = vmatprep.subr.bf16.mxu1 %v7921_v62 }
 0x956   :  { %7149 = vmatpush3.bf16.msra.mxu1 %v7922_v8 }
 0x957   :  { %7150 = vmatprep.subr.bf16.mxu1 %v7925_v10 }
 0x95a   :  { %7151 = vmatpush3.bf16.msra.mxu1 %v7926_v11 }
 0x95b   :  { %7152 = vmatprep.subr.bf16.mxu1 %v7929_v14 }
 0x95e   :  { %7153 = vmatpush3.bf16.msra.mxu1 %v7930_v1 }
 0x95f   :  { %7154 = vmatprep.subr.bf16.mxu1 %v7933_v18 }
 0x962   :  { %7155 = vmatpush3.bf16.msra.mxu1 %v7934_v22 }
 0x963   :  { %7156 = vmatprep.subr.bf16.mxu1 %v7937_v23 }
 0x966   :  { %7157 = vmatpush3.bf16.msra.mxu1 %v7938_v33 }
 0x9dc   :  { %v7036_v34 = vpop.f32.mrb[60].mxu1 }
 0x9dd   :  { %v7092_v35 = vpop.f32.mrb[64].mxu0  ;;  %v7037_v38 = vpop.f32.mrb[61].mxu1 }
 0x9de   :  { %v7038_v37 = vadd.f32 %v7037_v38, %v7036_v34  ;;  %v7093_v2 = vpop.f32.mrb[65].mxu0  ;;  %v7039_v53 = vpop.f32.mrb[62].mxu1 }
 0x9df   :  { %v7094_v3 = vadd.f32 %v7093_v2, %v7092_v35  ;;  %v7095_v39 = vpop.f32.mrb[66].mxu0  ;;  %v7040_v40 = vpop.f32.mrb[63].mxu1 }
 0x9e0   :  { %v7041_v41 = vadd.f32 %v7040_v40, %v7039_v53  ;;  %v7096_v42 = vpop.f32.mrb[67].mxu0  ;;  %v4660_v51 = vadd.f32 %v7038_v37, %v6450_v27 }
 0x9e1   :  { %v7097_v44 = vadd.f32 %v7096_v42, %v7095_v39 }
 0x9e2   :  { %v4663_v55 = vadd.f32 %v7041_v41, %v6450_v27 }
 0x9e4   :  { %v7042_v36 = vpop.f32.mrb[64].mxu1 }
 0x9e5   :  { %v7098_v30 = vpop.f32.mrb[68].mxu0  ;;  %v7043_v45 = vpop.f32.mrb[65].mxu1 }
 0x9e6   :  { %v7044_v61 = vadd.f32 %v7043_v45, %v7042_v36  ;;  %v7099_v46 = vpop.f32.mrb[69].mxu0  ;;  %v7045_v47 = vpop.f32.mrb[66].mxu1 }
 0x9e7   :  { %v7100_v31 = vadd.f32 %v7099_v46, %v7098_v30  ;;  %v7101_v4 = vpop.f32.mrb[70].mxu0  ;;  %v7046_v0 = vpop.f32.mrb[67].mxu1 }
 0x9e8   :  { %v7047_v49 = vadd.f32 %v7046_v0, %v7045_v47  ;;  %v7102_v50 = vpop.f32.mrb[71].mxu0  ;;  %v4668_v48 = vadd.f32 %v7044_v61, %v6450_v27 }
 0x9e9   :  { %v7103_v25 = vadd.f32 %v7102_v50, %v7101_v4 }
 0x9ea   :  { %v4671_v9 = vadd.f32 %v7047_v49, %v6450_v27 }
 0x9fc   :  { %v7064_v28 = vpop.f32.mrb[68].mxu1 }
 0x9fd   :  { %v7065_v29 = vpop.f32.mrb[69].mxu1 }
 0x9fe   :  { %v7066_v20 = vadd.f32 %v7065_v29, %v7064_v28  ;;  %v7067_v54 = vpop.f32.mrb[70].mxu1 }
 0x9ff   :  { %v7068_v52 = vpop.f32.mrb[71].mxu1 }
 0xa00   :  { %v4709_v56 = vadd.f32 %v7066_v20, %v4660_v51  ;;  %v7069_v57 = vadd.f32 %v7068_v52, %v7067_v54 }
 0xa02   :  { %v4712_v58 = vadd.f32 %v7069_v57, %v4663_v55  ;;  %v4758_v59 = vadd.f32 %v7094_v3, %v4709_v56 }
 0xa04   :  { %v7070_v7 = vpop.f32.mrb[72].mxu1  ;;  %v4761_v43 = vadd.f32 %v7097_v44, %v4712_v58 }
 0xa05   :  { %v7071_v60 = vpop.f32.mrb[73].mxu1 }
 0xa06   :  { %v7072_v63 = vadd.f32 %v7071_v60, %v7070_v7  ;;  %v7073_v62 = vpop.f32.mrb[74].mxu1 }
 0xa07   :  { %v7074_v8 = vpop.f32.mrb[75].mxu1 }
 0xa08   :  { %v4717_v5 = vadd.f32 %v7072_v63, %v4668_v48  ;;  %v7075_v10 = vadd.f32 %v7074_v8, %v7073_v62 }
 0xa0a   :  { %v4720_v11 = vadd.f32 %v7075_v10, %v4671_v9  ;;  %v4766_v12 = vadd.f32 %v7100_v31, %v4717_v5  ;;  %v7941_v9 = vld [vmem:[%s9480_s0 + $0x110] sm:$0xff]  }
 0xa0c   :  { %v4769_v14 = vadd.f32 %v7103_v25, %v4720_v11 }
 0xa1c   :  { %v7423_v15 = vpop.f32.mrb[76].mxu1 }
 0xa1d   :  { %v4815_v16 = vadd.f32 %v7423_v15, %v4766_v12  ;;  %v4806_v1 = vpop.f32.mrb[77].mxu1 }
 0xa1e   :  { %v4807_v18 = vadd.f32 %v4806_v1, %v4758_v59  ;;  %v7424_v19 = vpop.f32.mrb[78].mxu1  ;;  %v7940_v59 = vld [vmem:[%s9480_s0 + $0x108] sm:$0xff]   ;;  %v7943_v1 = vld [vmem:[%s9480_s0 + $0x120] sm:$0xff]  }
 0xa1f   :  { %v4818_v21 = vadd.f32 %v7424_v19, %v4769_v14  ;;  %v4809_v22 = vpop.f32.mrb[79].mxu1  ;;  %v4823_v24 = vmax.f32 %v4815_v16, 0.0  ;;  %v7945_v19 = vld [vmem:[%s9480_s0 + $0x130] sm:$0xff]  }
 0xa20   :  { %v4810_v23 = vadd.f32 %v4809_v22, %v4761_v43  ;;  %v4821_v34 = vmax.f32 %v4807_v18, 0.0  ;;  %v7944_v18 = vld [vmem:[%s9480_s0 + $0x128] sm:$0xff]  }
 0xa21   :  { %v4824_v33 = vmax.f32 %v4818_v21, 0.0 }
 0xa22   :  { %v4822_v35 = vmax.f32 %v4810_v23, 0.0 }
 0xa23   :  { %v4826_v38 = vpack.c.bf16 %v4824_v33, %v4823_v24  ;;  %v7947_v24 = vld [vmem:[#allocation29 + $0x80] sm:$0xff]  }
 0xa24   :  { %v4825_v37 = vpack.c.bf16 %v4822_v35, %v4821_v34  ;;  %v7948_v33 = vld [vmem:[#allocation29 + $0x40] sm:$0xff]   ;;  %v7949_v34 = vld [vmem:[#allocation29 + $0x88] sm:$0xff]  }
 0xa25   :  { %v4830_v2 = vrot.slane %v4826_v38, 7  ;;  %v7950_v35 = vld [vmem:[#allocation29] sm:$0xff]   ;;  %v7951_v38 = vld [vmem:[#allocation29 + $0x48] sm:$0xff]   ;;  %7180 = vmatprep.subr.bf16.mxu1 %v7948_v33 }
 0xa26   :  { %v4829_v53 = vrot.slane %v4825_v37, 7  ;;  %v7953_v37 = vld [vmem:[#allocation29 + $0x8] sm:$0xff]  }
 0xa27   :  { %v9353_v3 = vsel %vm1322_vm9, 0, %v4830_v2  ;;  %v9356_v39 = vsel %vm1322_vm9, %v4830_v2, 0 }
 0xa28   :  { %v4832_v40 = vsel %vm1322_vm9, 0, %v4829_v53  ;;  %v4837_v41 = vsel %vm1322_vm9, %v4829_v53, 0  ;;  %v4849_v42 = vshrl.u32 %v9353_v3, 16  ;;  %v4851_v44 = vshll.u32 %v9353_v3, 16 }
 0xa29   :  { %v4839_v36 = vshrl.u32 %v4832_v40, 16  ;;  %v4841_v30 = vshll.u32 %v4832_v40, 16  ;;  %v4845_v45 = vshll.u32 %v4837_v41, 16  ;;  %v4876_v61 = vshrl.u32 %v4837_v41, 16 }
 0xa2a   :  { %v4853_v46 = vrot.slane %v4851_v44, 1  ;;  %v4855_v47 = vshll.u32 %v9356_v39, 16  ;;  %v4865_v49 = vrot.slane %v4832_v40, 1  ;;  %v4866_v28 = vrot.slane %v4837_v41, 1 }
 0xa2b   :  { %v4843_v31 = vrot.slane %v4841_v30, 1  ;;  %v4873_v4 = vrot.slane %v4839_v36, 1  ;;  %v4874_v0 = vrot.slane %v4841_v30, 2  ;;  %v4847_v50 = vrot.slane %v4845_v45, 1  ;;  %v7962_v30 = vld [vmem:[#allocation29 + $0x20] sm:$0xff]  }
 0xa2c   :  { %v4878_v25 = vrot.slane %v4876_v61, 1  ;;  %v4879_v27 = vrot.slane %v4845_v45, 2  ;;  %v4854_v20 = vor.u32 %v4853_v46, %v4849_v42  ;;  %v4882_v54 = vrot.slane %v4849_v42, 1  ;;  %v7959_v42 = vld [vmem:[#allocation29 + $0x18] sm:$0xff]   ;;  %v7963_v45 = vld [vmem:[#allocation29 + $0x68] sm:$0xff]   ;;  %v7964_v61 = vld [vmem:[#allocation29 + $0xb0] sm:$0xff]  }
 0xa2d   :  { %v4844_v29 = vor.u32 %v4843_v31, %v4839_v36  ;;  %v4875_v51 = vor.u32 %v4874_v0, %v4873_v4  ;;  %v4883_v55 = vrot.slane %v4851_v44, 2  ;;  %v4885_v56 = vshrl.u32 %v9356_v39, 16  ;;  %v7960_v44 = vld [vmem:[#allocation29 + $0x60] sm:$0xff]   ;;  %v7961_v36 = vld [vmem:[#allocation29 + $0xa8] sm:$0xff]   ;;  %v7967_v31 = vld [vmem:[#allocation29 + $0xb8] sm:$0xff]  }
 0xa2e   :  { %v4880_v52 = vor.u32 %v4879_v27, %v4878_v25  ;;  %v4888_v57 = vrot.slane %v4855_v47, 2  ;;  %v4857_v43 = vrot.slane %v4855_v47, 1  ;;  %v4867_v63 = vsel %vm596_vm4, %v4865_v49, %v4866_v28  ;;  %v7965_v46 = vld [vmem:[#allocation29 + $0x28] sm:$0xff]   ;;  %v7966_v47 = vld [vmem:[#allocation29 + $0x70] sm:$0xff]   ;;  %v7969_v0 = vld [vmem:[#allocation29 + $0x78] sm:$0xff]  }
 0xa2f   :  { %v4848_v58 = vsel %vm565_vm3, %v4844_v29, %v4847_v50  ;;  %v4884_v60 = vor.u32 %v4883_v55, %v4882_v54  ;;  %v4887_v48 = vrot.slane %v4885_v56, 1  ;;  %v4868_v10 = vrot.slane %v9353_v3, 1  ;;  %v7968_v4 = vld [vmem:[#allocation29 + $0x30] sm:$0xff]   ;;  %v7970_v49 = vld [vmem:[#allocation29 + $0x38] sm:$0xff]  }
 0xa30   :  { %5260 = vmatprep.mubr.bf16.mxu0 %v4848_v58  ;;  %v4881_v7 = vsel %vm605_vm5, %v4875_v51, %v4880_v52  ;;  %v4858_v62 = vsel %vm565_vm3, %v4854_v20, %v4857_v43  ;;  %v4869_v11 = vrot.slane %v9356_v39, 1  ;;  %v4893_v12 = vrot.slane %v4832_v40, 2  ;;  %v7957_v40 = vld [vmem:[#allocation29 + $0x58] sm:$0xff]  }
 0xa31   :  { %5309 = vmatprep.mubr.bf16.mxu1 %v4881_v7  ;;  %6549 = vmatmul.mubr.msk.bf16.vlgmr.msra.gmra.mrb[72].mxu0 %vm9063_vm10, %v4829_v53  ;;  %v4889_v8 = vor.u32 %v4888_v57, %v4887_v48  ;;  %v4894_v14 = vrot.slane %v4837_v41, 2  ;;  %v4896_v21 = vrot.slane %v9353_v3, 2  ;;  %v4897_v22 = vrot.slane %v9356_v39, 2  ;;  %v7954_v53 = vld [vmem:[#allocation29 + $0x50] sm:$0xff]   ;;  %v7955_v3 = vld [vmem:[#allocation29 + $0x98] sm:$0xff]   ;;  %v7958_v41 = vld [vmem:[#allocation29 + $0xa0] sm:$0xff]  }
 0xa32   :  { %5310 = vmatmul.mubr.bf16.vlgmr.msra.gmra.mrb[80].mxu1 %v4867_v63  ;;  %7426 = vmatpush3.bf16.msra.mxu0 %v9348_v32  ;;  %v7942_v32 = vld [vmem:[%s9480_s0 + $0x118] sm:$0xff]   ;;  %v4870_v15 = vsel %vm596_vm4, %v4868_v10, %v4869_v11  ;;  %v7956_v39 = vld [vmem:[#allocation29 + $0x10] sm:$0xff]   ;;  %v6507_v27 = vld [vmem:[#allocation28] ss:$0 sm:$0xff] }
 0xa33   :  { %5268 = vmatprep.mubr.bf16.mxu0 %v4858_v62  ;;  %7427 = vmatprep.subr.bf16.mxu0 %v7940_v59  ;;  %v4890_v5 = vsel %vm605_vm5, %v4884_v60, %v4889_v8  ;;  %v4895_v16 = vsel %vm626_vm8, %v4893_v12, %v4894_v14  ;;  %v4898_v23 = vsel %vm626_vm8, %v4896_v21, %v4897_v22 }
 0xa34   :  { %5317 = vmatprep.mubr.bf16.mxu1 %v4890_v5  ;;  %7181 = vmatpush3.bf16.msra.mxu1 %v7950_v35 }
 0xa35   :  { %7182 = vmatprep.subr.bf16.mxu1 %v7951_v38 }
 0xa36   :  { %7428 = vmatpush3.bf16.msra.mxu0 %v7940_v59 }
 0xa37   :  { %7429 = vmatprep.subr.bf16.mxu0 %v7941_v9 }
 0xa38   :  { %7183 = vmatpush3.bf16.msra.mxu1 %v7953_v37 }
 0xa39   :  { %6551 = vmatmul.mubr.msk.bf16.gmra.mrb[76].mxu0 %vm9063_vm10, %v4830_v2  ;;  %v7952_v2 = vld [vmem:[#allocation29 + $0x90] sm:$0xff]   ;;  %7184 = vmatprep.subr.bf16.mxu1 %v7954_v53 }
 0xa3a   :  { %5318 = vmatmul.mubr.bf16.gmra.mrb[84].mxu1 %v4870_v15  ;;  %7430 = vmatpush3.bf16.msra.mxu0 %v7941_v9 }
 0xa3b   :  { %7441 = vmatprep.mubr.bf16.mxu0 %v4895_v16  ;;  %7431 = vmatprep.subr.bf16.mxu0 %v7942_v32 }
 0xa3c   :  { %7185 = vmatpush3.bf16.msra.mxu1 %v7956_v39 }
 0xa3d   :  { %7186 = vmatprep.subr.bf16.mxu1 %v7957_v40 }
 0xa3e   :  { %7432 = vmatpush3.bf16.msra.mxu0 %v7942_v32 }
 0xa3f   :  { %7433 = vmatprep.subr.bf16.mxu0 %v7943_v1 }
 0xa40   :  { %7187 = vmatpush3.bf16.msra.mxu1 %v7959_v42 }
 0xa41   :  { %7188 = vmatprep.subr.bf16.mxu1 %v7960_v44 }
 0xa42   :  { %7434 = vmatpush3.bf16.msra.mxu0 %v7943_v1 }
 0xa43   :  { %7435 = vmatprep.subr.bf16.mxu0 %v7944_v18 }
 0xa44   :  { %7189 = vmatpush3.bf16.msra.mxu1 %v7962_v30 }
 0xa45   :  { %7190 = vmatprep.subr.bf16.mxu1 %v7963_v45 }
 0xa46   :  { %7436 = vmatpush3.bf16.msra.mxu0 %v7944_v18 }
 0xa47   :  { %7437 = vmatprep.subr.bf16.mxu0 %v7945_v19 }
 0xa48   :  { %7191 = vmatpush3.bf16.msra.mxu1 %v7965_v46 }
 0xa49   :  { %7192 = vmatprep.subr.bf16.mxu1 %v7966_v47 }
 0xa4a   :  { %7438 = vmatpush3.bf16.msra.mxu0 %v7945_v19 }
 0xa4b   :  { %7439 = vmatprep.subr.bf16.mxu0 %v7946_v26 }
 0xa4c   :  { %7193 = vmatpush3.bf16.msra.mxu1 %v7968_v4 }
 0xa4d   :  { %7194 = vmatprep.subr.bf16.mxu1 %v7969_v0 }
 0xa4e   :  { %7440 = vmatpush3.bf16.msra.mxu0 %v7946_v26 }
 0xa4f   :  { %7445 = vmatprep.subr.bf16.mxu0 %v7947_v24 }
 0xa50   :  { %7195 = vmatpush3.bf16.msra.mxu1 %v7970_v49 }
 0xa51   :  { %7442 = vmatmul.mubr.bf16.vlgmr.msra.gmra.mrb[80].mxu0 %v4898_v23 }
 0xa52   :  { %7446 = vmatpush3.bf16.msra.mxu0 %v7947_v24 }
 0xa53   :  { %7447 = vmatprep.subr.bf16.mxu0 %v7949_v34 }
 0xa56   :  { %7448 = vmatpush3.bf16.msra.mxu0 %v7949_v34 }
 0xa57   :  { %7449 = vmatprep.subr.bf16.mxu0 %v7952_v2 }
 0xa5a   :  { %7450 = vmatpush3.bf16.msra.mxu0 %v7952_v2 }
 0xa5b   :  { %7451 = vmatprep.subr.bf16.mxu0 %v7955_v3 }
 0xa5e   :  { %7452 = vmatpush3.bf16.msra.mxu0 %v7955_v3 }
 0xa5f   :  { %7453 = vmatprep.subr.bf16.mxu0 %v7958_v41 }
 0xa62   :  { %7454 = vmatpush3.bf16.msra.mxu0 %v7958_v41 }
 0xa63   :  { %7455 = vmatprep.subr.bf16.mxu0 %v7961_v36 }
 0xa66   :  { %7456 = vmatpush3.bf16.msra.mxu0 %v7961_v36 }
 0xa67   :  { %7457 = vmatprep.subr.bf16.mxu0 %v7964_v61 }
 0xa6a   :  { %7458 = vmatpush3.bf16.msra.mxu0 %v7964_v61 }
 0xa6b   :  { %7459 = vmatprep.subr.bf16.mxu0 %v7967_v31 }
 0xa6e   :  { %7460 = vmatpush3.bf16.msra.mxu0 %v7967_v31 }
 0xb04   :  { %v7130_v50 = vpop.f32.mrb[72].mxu0 }
 0xb05   :  { %v7158_v25 = vpop.f32.mrb[80].mxu1  ;;  %v7131_v28 = vpop.f32.mrb[73].mxu0 }
 0xb06   :  { %v7132_v29 = vadd.f32 %v7131_v28, %v7130_v50  ;;  %v7159_v51 = vpop.f32.mrb[81].mxu1  ;;  %v7133_v20 = vpop.f32.mrb[74].mxu0 }
 0xb07   :  { %v7160_v54 = vadd.f32 %v7159_v51, %v7158_v25  ;;  %v7161_v52 = vpop.f32.mrb[82].mxu1  ;;  %v7134_v55 = vpop.f32.mrb[75].mxu0 }
 0xb08   :  { %v5263_v56 = vadd.f32 %v7132_v29, %v6507_v27  ;;  %v7135_v57 = vadd.f32 %v7134_v55, %v7133_v20  ;;  %v7162_v58 = vpop.f32.mrb[83].mxu1 }
 0xb09   :  { %v7163_v59 = vadd.f32 %v7162_v58, %v7161_v52 }
 0xb0a   :  { %v5266_v7 = vadd.f32 %v7135_v57, %v6507_v27  ;;  %v5312_v43 = vadd.f32 %v7160_v54, %v5263_v56 }
 0xb0c   :  { %v7136_v60 = vpop.f32.mrb[76].mxu0  ;;  %v5315_v48 = vadd.f32 %v7163_v59, %v5266_v7 }
 0xb0d   :  { %v7164_v63 = vpop.f32.mrb[84].mxu1  ;;  %v7137_v62 = vpop.f32.mrb[77].mxu0 }
 0xb0e   :  { %v7138_v8 = vadd.f32 %v7137_v62, %v7136_v60  ;;  %v7165_v9 = vpop.f32.mrb[85].mxu1  ;;  %v7139_v5 = vpop.f32.mrb[78].mxu0  ;;  %v7972_v62 = vld [vmem:[#allocation32 + $0x8] sm:$0xff]  }
 0xb0f   :  { %v7166_v10 = vadd.f32 %v7165_v9, %v7164_v63  ;;  %v7167_v11 = vpop.f32.mrb[86].mxu1  ;;  %v7140_v12 = vpop.f32.mrb[79].mxu0  ;;  %v8580_v63 = vmov 0.0   ;;  %v7974_v9 = vld [vmem:[#allocation32 + $0x18] sm:$0xff]  }
 0xb10   :  { %v5271_v14 = vadd.f32 %v7138_v8, %v6507_v27  ;;  %v7141_v32 = vadd.f32 %v7140_v12, %v7139_v5  ;;  %v7168_v15 = vpop.f32.mrb[87].mxu1  ;;  %7465 = vmatprep.subr.bf16.mxu1 %v8580_v63  ;;  %7485 = vmatprep.subr.bf16.mxu0 %v8580_v63  ;;  %v7973_v8 = vld [vmem:[#allocation32 + $0x10] sm:$0xff]   ;;  %v7975_v5 = vld [vmem:[#allocation32 + $0x20] sm:$0xff]  }
 0xb11   :  { %v7169_v16 = vadd.f32 %v7168_v15, %v7167_v11  ;;  %v7979_v11 = vld [vmem:[#allocation34] sm:$0xff]   ;;  %v7977_v12 = vld [vmem:[#allocation32 + $0x30] sm:$0xff]  }
 0xb12   :  { %v5274_v1 = vadd.f32 %v7141_v32, %v6507_v27  ;;  %v5320_v18 = vadd.f32 %v7166_v10, %v5271_v14  ;;  %v7976_v10 = vld [vmem:[#allocation32 + $0x28] sm:$0xff]   ;;  %v7978_v32 = vld [vmem:[#allocation32 + $0x38] sm:$0xff]   ;;  %v7981_v15 = vld [vmem:[#allocation34 + $0x10] sm:$0xff]  }
 0xb13   :  { %v7980_v14 = vld [vmem:[#allocation34 + $0x8] sm:$0xff]  }
 0xb14   :  { %v5323_v19 = vadd.f32 %v7169_v16, %v5274_v1  ;;  %v7982_v16 = vld [vmem:[#allocation34 + $0x18] sm:$0xff]   ;;  %v7983_v1 = vld [vmem:[#allocation34 + $0x20] sm:$0xff]  }
 0xb24   :  { %v7443_v26 = vpop.f32.mrb[80].mxu0 }
 0xb25   :  { %v5369_v21 = vadd.f32 %v7443_v26, %v5320_v18  ;;  %v5360_v22 = vpop.f32.mrb[81].mxu0  ;;  %v7984_v18 = vld [vmem:[#allocation34 + $0x28] sm:$0xff]  }
 0xb26   :  { %v5361_v23 = vadd.f32 %v5360_v22, %v5312_v43  ;;  %v7444_v24 = vpop.f32.mrb[82].mxu0 }
 0xb27   :  { %v5372_v33 = vadd.f32 %v7444_v24, %v5323_v19  ;;  %v5363_v34 = vpop.f32.mrb[83].mxu0  ;;  %v5377_v38 = vmax.f32 %v5369_v21, 0.0  ;;  %v6552_v24 = vld [vmem:[#allocation31] ss:$0 sm:$0xff] }
 0xb28   :  { %v5364_v35 = vadd.f32 %v5363_v34, %v5315_v48  ;;  %v5375_v2 = vmax.f32 %v5361_v23, 0.0  ;;  %v7971_v48 = vld [vmem:[#allocation32] sm:$0xff]  }
 0xb29   :  { %v5378_v37 = vmax.f32 %v5372_v33, 0.0 }
 0xb2a   :  { %v5376_v53 = vmax.f32 %v5364_v35, 0.0 }
 0xb2b   :  { %v5380_v3 = vpack.c.bf16 %v5378_v37, %v5377_v38 }
 0xb2c   :  { %v5379_v39 = vpack.c.bf16 %v5376_v53, %v5375_v2 }
 0xb2d   :  { %v5389_v40 = vshrl.u32 %v5380_v3, 16  ;;  %v5392_v44 = vshll.u32 %v5380_v3, 16  ;;  %v5738_v3 = vunpack.c.l.bf16 %v9238_v13 }
 0xb2e   :  { %v5382_v41 = vshrl.u32 %v5379_v39, 16  ;;  %v5385_v30 = vshll.u32 %v5379_v39, 16 }
 0xb2f   :  { %v5391_v42 = vrot.slane %v5389_v40, 7 }
 0xb30   :  { %v5384_v36 = vrot.slane %v5382_v41, 7 }
 0xb31   :  { %v5394_v45 = vor.u32 %v5392_v44, %v5391_v42  ;;  %v5402_v31 = vsel %vm9085_vm12, %v5391_v42, 0  ;;  %v5739_v42 = vunpack.c.h.bf16 %v9238_v13 }
 0xb32   :  { %v5387_v61 = vor.u32 %v5385_v30, %v5384_v36  ;;  %v5401_v46 = vsel %vm9085_vm12, %v5384_v36, 0  ;;  %v5437_v29 = vrot.slane %v5402_v31, 1  ;;  %v5423_v20 = vshll.u32 %v5402_v31, 16 }
 0xb33   :  { %v5400_v47 = vsel %vm9085_vm12, 0, %v5394_v45  ;;  %v5434_v25 = vrot.slane %v5401_v46, 1  ;;  %v5411_v28 = vshll.u32 %v5401_v46, 16 }
 0xb34   :  { %v5399_v4 = vsel %vm9085_vm12, 0, %v5387_v61  ;;  %v5436_v0 = vrot.slane %v5400_v47, 1  ;;  %v5418_v49 = vshll.u32 %v5400_v47, 16  ;;  %v5416_v56 = vshrl.u32 %v5400_v47, 16 }
 0xb35   :  { %v5433_v50 = vrot.slane %v5399_v4, 1  ;;  %v5406_v27 = vshll.u32 %v5399_v4, 16  ;;  %v5404_v52 = vshrl.u32 %v5399_v4, 16  ;;  %v5413_v58 = vrot.slane %v5411_v28, 1 }
 0xb36   :  { %v5420_v51 = vrot.slane %v5418_v49, 1  ;;  %v5438_v57 = vsel %vm596_vm4, %v5436_v0, %v5437_v29  ;;  %v5425_v43 = vrot.slane %v5423_v20, 1  ;;  %v5741_v28 = vunpack.c.h.bf16 %v9236_v6 }
 0xb37   :  { %v5435_v54 = vsel %vm596_vm4, %v5433_v50, %v5434_v25  ;;  %v5408_v55 = vrot.slane %v5406_v27, 1  ;;  %v5740_v25 = vunpack.c.l.bf16 %v9236_v6 }
 0xb38   :  { %7461 = vmatprep.mubr.bf16.mxu0 %v5435_v54  ;;  %v5421_v59 = vor.u32 %v5420_v51, %v5416_v56 }
 0xb39   :  { %7462 = vmatmul.mubr.bf16.vlgmr.msra.gmra.mrb[84].mxu0 %v5438_v57  ;;  %v5409_v17 = vor.u32 %v5408_v55, %v5404_v52 }
 0xb3a   :  { %v5426_v60 = vsel %vm565_vm3, %v5421_v59, %v5425_v43  ;;  %7501 = vmatprep.mubr.msk.bf16.mxu0 %vm8581_vm13, %v8580_v63  ;;  %7486 = vmatpush3.bf16.msra.mxu0 %v7979_v11 }
 0xb3b   :  { %v5414_v7 = vsel %vm565_vm3, %v5409_v17, %v5413_v58  ;;  %7487 = vmatprep.subr.bf16.mxu0 %v8580_v63 }
 0xb3c   :  { %5672 = vmatprep.mubr.bf16.mxu1 %v5414_v7 }
 0xb3d   :  { %5673 = vmatmul.mubr.bf16.vlgmr.msra.gmra.mrb[88].mxu1 %v5399_v4 }
 0xb3e   :  { %5680 = vmatprep.mubr.bf16.mxu1 %v5426_v60  ;;  %7466 = vmatpush3.bf16.msra.mxu1 %v7971_v48 }
 0xb3f   :  { %7467 = vmatprep.subr.bf16.mxu1 %v8580_v63  ;;  %7488 = vmatpush3.bf16.msra.mxu0 %v7980_v14 }
 0xb40   :  { %7489 = vmatprep.subr.bf16.mxu0 %v8580_v63 }
 0xb42   :  { %7468 = vmatpush3.bf16.msra.mxu1 %v7972_v62 }
 0xb43   :  { %7469 = vmatprep.subr.bf16.mxu1 %v8580_v63  ;;  %7490 = vmatpush3.bf16.msra.mxu0 %v7981_v15 }
 0xb44   :  { %7491 = vmatprep.subr.bf16.mxu0 %v8580_v63 }
 0xb45   :  { %5681 = vmatmul.mubr.bf16.gmra.mrb[92].mxu1 %v5400_v47 }
 0xb46   :  { %7481 = vmatprep.mubr.msk.bf16.mxu1 %vm8581_vm13, %v8580_v63  ;;  %7470 = vmatpush3.bf16.msra.mxu1 %v7973_v8 }
 0xb47   :  { %7471 = vmatprep.subr.bf16.mxu1 %v8580_v63  ;;  %7492 = vmatpush3.bf16.msra.mxu0 %v7982_v16 }
 0xb48   :  { %7493 = vmatprep.subr.bf16.mxu0 %v8580_v63 }
 0xb4a   :  { %7472 = vmatpush3.bf16.msra.mxu1 %v7974_v9 }
 0xb4b   :  { %7473 = vmatprep.subr.bf16.mxu1 %v8580_v63  ;;  %7494 = vmatpush3.bf16.msra.mxu0 %v7983_v1 }
 0xb4c   :  { %7495 = vmatprep.subr.bf16.mxu0 %v8580_v63 }
 0xb4e   :  { %7474 = vmatpush3.bf16.msra.mxu1 %v7975_v5 }
 0xb4f   :  { %7475 = vmatprep.subr.bf16.mxu1 %v8580_v63  ;;  %7496 = vmatpush3.bf16.msra.mxu0 %v7984_v18 }
 0xb50   :  { %7497 = vmatprep.subr.bf16.mxu0 %v8580_v63 }
 0xb52   :  { %7476 = vmatpush3.bf16.msra.mxu1 %v7976_v10 }
 0xb53   :  { %7477 = vmatprep.subr.bf16.mxu1 %v8580_v63 }
 0xb56   :  { %7478 = vmatpush3.bf16.msra.mxu1 %v7977_v12 }
 0xb57   :  { %7479 = vmatprep.subr.bf16.mxu1 %v8580_v63 }
 0xb5a   :  { %7480 = vmatpush3.bf16.msra.mxu1 %v7978_v32 }
 0xb5b   :  { %7505 = vmatprep.subr.bf16.mxu1 %v8580_v63 }
 0xc0c   :  { %v7463_v19 = vpop.f32.mrb[84].mxu0 }
 0xc0d   :  { %v5723_v26 = vpop.f32.mrb[85].mxu0 }
 0xc0e   :  { %v7464_v21 = vpop.f32.mrb[86].mxu0 }
 0xc0f   :  { %v5726_v22 = vpop.f32.mrb[87].mxu0 }
 0xc10   :  { %v7196_v23 = vpop.f32.mrb[88].mxu1 }
 0xc11   :  { %v7197_v33 = vpop.f32.mrb[89].mxu1 }
 0xc12   :  { %v7198_v34 = vadd.f32 %v7197_v33, %v7196_v23  ;;  %v7199_v35 = vpop.f32.mrb[90].mxu1  ;;  %v7987_v23 = vld [vmem:[#allocation35] sm:$0xff]   ;;  %v7989_v33 = vld [vmem:[#allocation35 + $0x10] sm:$0xff]  }
 0xc13   :  { %v7200_v38 = vpop.f32.mrb[91].mxu1 }
 0xc14   :  { %v5675_v37 = vadd.f32 %v7198_v34, %v6552_v24  ;;  %v7201_v2 = vadd.f32 %v7200_v38, %v7199_v35  ;;  %v7990_v34 = vld [vmem:[#allocation35 + $0x18] sm:$0xff]   ;;  %v7991_v35 = vld [vmem:[#allocation35 + $0x20] sm:$0xff]   ;;  %v7992_v38 = vld [vmem:[#allocation35 + $0x28] sm:$0xff]  }
 0xc16   :  { %v5724_v53 = vadd.f32 %v5723_v26, %v5675_v37  ;;  %v5678_v39 = vadd.f32 %v7201_v2, %v6552_v24  ;;  %v6577_v37 = vld [vmem:[%s9481_s9] ss:$0 sm:$0xff] }
 0xc18   :  { %v5742_v40 = vadd.f32 %v5738_v3, %v5724_v53  ;;  %v5727_v41 = vadd.f32 %v5726_v22, %v5678_v39  ;;  %v7202_v44 = vpop.f32.mrb[92].mxu1  ;;  %v7986_v22 = vld [vmem:[#allocation34 + $0x38] sm:$0xff]  }
 0xc19   :  { %v7203_v36 = vpop.f32.mrb[93].mxu1 }
 0xc1a   :  { %v5743_v30 = vadd.f32 %v5739_v42, %v5727_v41  ;;  %v7204_v45 = vadd.f32 %v7203_v36, %v7202_v44  ;;  %v7205_v61 = vpop.f32.mrb[94].mxu1  ;;  %v5746_v47 = vmax.f32 %v5742_v40, 0.0  ;;  %v7993_v44 = vld [vmem:[#allocation35 + $0x30] sm:$0xff]   ;;  %v7994_v36 = vld [vmem:[#allocation35 + $0x38] sm:$0xff]  }
 0xc1b   :  { %v7206_v46 = vpop.f32.mrb[95].mxu1 }
 0xc1c   :  { %v5747_v31 = vmax.f32 %v5743_v30, 0.0  ;;  %v5683_v4 = vadd.f32 %v7204_v45, %v6552_v24  ;;  %v7207_v0 = vadd.f32 %v7206_v46, %v7205_v61  ;;  %v6586_v30 = vld [vmem:[%s8721_s20] ss:$0 sm:$0xff] }
 0xc1e   :  { %v5750_v49 = vpack.c.bf16 %v5747_v31, %v5746_v47  ;;  %v5732_v50 = vadd.f32 %v7463_v19, %v5683_v4  ;;  %v5686_v27 = vadd.f32 %v7207_v0, %v6552_v24  ;;  %v7988_v24 = vld [vmem:[#allocation35 + $0x8] sm:$0xff]  }
 0xc20   :  { %v5752_v29 = vunpack.c.l.bf16 %v5750_v49  ;;  %v5753_v51 = vunpack.c.h.bf16 %v5750_v49  ;;  %v5744_v13 = vadd.f32 %v5740_v25, %v5732_v50  ;;  %v5735_v20 = vadd.f32 %v7464_v21, %v5686_v27  ;;  %v7985_v21 = vld [vmem:[#allocation34 + $0x30] sm:$0xff]   ;;  %v6595_v49 = vld [vmem:[%s8731_s5] ss:$0 sm:$0xff] }
 0xc21   :  { %7498 = vmatpush3.bf16.msra.mxu0 %v7985_v21 }
 0xc22   :  { %v5756_v54 = vadd.f32 %v5753_v51, %v5752_v29  ;;  %v5745_v52 = vadd.f32 %v5741_v28, %v5735_v20  ;;  %v5748_v56 = vmax.f32 %v5744_v13, 0.0  ;;  %7499 = vmatprep.subr.bf16.mxu0 %v8580_v63 }
 0xc24   :  { %v5757_v55 = vrot.slane %v5756_v54, 4  ;;  %v5749_v57 = vmax.f32 %v5745_v52, 0.0 }
 0xc25   :  { %7500 = vmatpush3.bf16.msra.mxu0 %v7986_v22 }
 0xc26   :  { %v5758_v17 = vadd.f32 %v5757_v55, %v5756_v54  ;;  %v5751_v58 = vpack.c.bf16 %v5749_v57, %v5748_v56 }
 0xc28   :  { %v5759_v59 = vrot.slane %v5758_v17, 2  ;;  %v5754_v7 = vunpack.c.l.bf16 %v5751_v58  ;;  %v5755_v43 = vunpack.c.h.bf16 %v5751_v58 }
 0xc2a   :  { %v5760_v60 = vadd.f32 %v5759_v59, %v5758_v17  ;;  %v5763_v48 = vadd.f32 %v5755_v43, %v5754_v7 }
 0xc2c   :  { %v5761_v62 = vrot.slane %v5760_v60, 1  ;;  %v5764_v8 = vrot.slane %v5763_v48, 4 }
 0xc2e   :  { %v5765_v9 = vadd.f32 %v5764_v8, %v5763_v48  ;;  %v5762_v5 = vadd.f32 %v5761_v62, %v5760_v60 }
 0xc30   :  { %v5766_v6 = vrot.slane %v5765_v9, 2  ;;  %v5771_v12 = vmul.f32 0.0625, %v5762_v5 }
 0xc32   :  { %v5767_v10 = vadd.f32 %v5766_v6, %v5765_v9  ;;  %v5773_v15 = vpack.c.bf16 %v5771_v12, %v5771_v12 }
 0xc34   :  { %v5768_v11 = vrot.slane %v5767_v10, 1  ;;  %v5800_v1 = vunpack.c.l.b16 %v5773_v15 }
 0xc36   :  { %v5769_v14 = vadd.f32 %v5768_v11, %v5767_v10 }
 0xc38   :  { %v5772_v32 = vmul.f32 0.0625, %v5769_v14 }
 0xc3a   :  { %v5774_v16 = vpack.c.bf16 %v5772_v32, %v5772_v32 }
 0xc3c   :  { %v5801_v18 = vunpack.c.l.b16 %v5774_v16 }
 0xc3e   :  { %v5803_v19 = vsel %vm5802_vm14, %v5801_v18, %v5800_v1 }
 0xc3f   :  { %v5804_v26 = vpack.c.b16 %v5803_v19, %v5803_v19 }
 0xc41   :  { %7482 = vmatmul.mubr.bf16.vlgmr.msra.gmra.mrb[96].mxu1 %v5804_v26 }
 0xc42   :  { %7521 = vmatprep.mubr.msk.bf16.mxu1 %vm8581_vm13, %v8580_v63  ;;  %7506 = vmatpush3.bf16.msra.mxu1 %v7987_v23 }
 0xc43   :  { %7507 = vmatprep.subr.bf16.mxu1 %v8580_v63 }
 0xc46   :  { %7508 = vmatpush3.bf16.msra.mxu1 %v7988_v24 }
 0xc47   :  { %7509 = vmatprep.subr.bf16.mxu1 %v8580_v63 }
 0xc4a   :  { %7510 = vmatpush3.bf16.msra.mxu1 %v7989_v33 }
 0xc4b   :  { %7511 = vmatprep.subr.bf16.mxu1 %v8580_v63 }
 0xc4e   :  { %7512 = vmatpush3.bf16.msra.mxu1 %v7990_v34 }
 0xc4f   :  { %7513 = vmatprep.subr.bf16.mxu1 %v8580_v63 }
 0xc52   :  { %7514 = vmatpush3.bf16.msra.mxu1 %v7991_v35 }
 0xc53   :  { %7515 = vmatprep.subr.bf16.mxu1 %v8580_v63 }
 0xc56   :  { %7516 = vmatpush3.bf16.msra.mxu1 %v7992_v38 }
 0xc57   :  { %7517 = vmatprep.subr.bf16.mxu1 %v8580_v63 }
 0xc5a   :  { %7518 = vmatpush3.bf16.msra.mxu1 %v7993_v44 }
 0xc5b   :  { %7519 = vmatprep.subr.bf16.mxu1 %v8580_v63 }
 0xc5e   :  { %7520 = vmatpush3.bf16.msra.mxu1 %v7994_v36 }
 0xd14   :  { %v5888_v2 = vpop.f32.mrb[96].mxu1 }
 0xd15   :  { %v5889_v53 = vadd.f32 %v6577_v37, %v5888_v2  ;;  %v7483_v3 = vpop.f32.mrb[97].mxu1 }
 0xd16   :  { %v5891_v39 = vpop.f32.mrb[98].mxu1 }
 0xd17   :  { %v5894_v40 = vmax.f32 %v5889_v53, 0.0  ;;  %v7484_v41 = vpop.f32.mrb[99].mxu1 }
 0xd19   :  { %v5895_v42 = vpack.c.bf16 %v5894_v40, %v5894_v40 }
 0xd1b   :  { %7502 = vmatmul.mubr.bf16.vlgmr.msra.gmra.mrb[88].mxu0 %v5895_v42 }
 0xdee   :  { %v6001_v45 = vpop.f32.mrb[88].mxu0 }
 0xdef   :  { %v6002_v61 = vadd.f32 %v6586_v30, %v6001_v45  ;;  %v7503_v46 = vpop.f32.mrb[89].mxu0 }
 0xdf0   :  { %v6004_v47 = vpop.f32.mrb[90].mxu0 }
 0xdf1   :  { %v6007_v31 = vmax.f32 %v6002_v61, 0.0  ;;  %v7504_v4 = vpop.f32.mrb[91].mxu0 }
 0xdf3   :  { %v6008_v0 = vpack.c.bf16 %v6007_v31, %v6007_v31 }
 0xdf5   :  { %7522 = vmatmul.mubr.bf16.vlgmr.msra.gmra.mrb[100].mxu1 %v6008_v0 }
 0xec8   :  { %v6114_v50 = vpop.f32.mrb[100].mxu1 }
 0xec9   :  { %v6115_v25 = vadd.f32 %v6595_v49, %v6114_v50  ;;  %v7523_v27 = vpop.f32.mrb[101].mxu1 }
 0xeca   :  { %v6117_v28 = vpop.f32.mrb[102].mxu1 }
 0xecb   :  { %6120 = vst [vmem:[#allocation37] sm:$0x3] %v6115_v25  ;;  %v7524_v63 = vpop.f32.mrb[103].mxu1 }
 0xecc   :  { %8490 = shalt.err (!%p8487_p12)
}
 0xecd   :  { %s8491_s5 = scalar_lea.hbm %s8736_s6, 32 }
 0xece   :  { %p8492_p13 = scmp.ne.s32.totalorder %s8736_s6, %s8491_s5  ;;  %p8495_p0 = scmp.lt.u32.totalorder %s8491_s5, %s8736_s6 }
 0xed0   :  { %p8497_p1 = pnand %p8495_p0, %p8492_p13 }
 0xed2   :  { %8500 = shalt.err (!%p8497_p1)
}
 0xed3   :  { %6130 = dma.vmem_to_hbm [thread:$0]  %s6128_s11, 32, %s8736_s6, [#allocation4]  }
 0xed4   :  { %8525 = dma.done.wait [#allocation4], 32  }
 0xed5   :  { %8526 = vsyncadd [#allocation4], 4294967264 }
 0xed6   :  { %6134 = vsyncpa [#allocation3], 1 }
 0xed7   :  { %6135 = vsyncpa [#allocation6], 1 }
 0xed8   :  { %6136 = vsyncpa [#allocation9], 1 }
 0xed9   :  { %6137 = vsyncpa [#allocation12], 1 }
 0xeda   :  { %6138 = vsyncpa [#allocation15], 1 }
 0xedb   :  { %6139 = vsyncpa [#allocation18], 1 }
 0xedc   :  { %6140 = vsyncpa [#allocation21], 1 }
 0xedd   :  { %6141 = vsyncpa [#allocation24], 1 }
 0xede   :  { %6142 = vsyncpa [#allocation27], 1 }
 0xedf   :  { %6143 = vsyncpa [#allocation30], 1 }
 0xee0   :  { %6144 = vsyncpa [#allocation33], 1 }
 0xee1   :  { %6145 = vsyncpa [#allocation36], 1 }
 0xee2   :  { %6146 = vsyncpa [#allocation4], 1 }

</bundles_post_ra>
